<compile_context>
chip_gen: v5e
topology: v5e:2x2
jax: 0.10.0
libtpu: 0.0.40
codegen_flags: <defaults>
</compile_context>

<pallas_src>
import math
import functools

import jax
import jax.numpy as jnp
import numpy as np
from jax.experimental import pallas as pl
from jax.experimental.pallas import tpu as pltpu


_SQRT_HALF = 0.7071067811865476  # 1/sqrt(2)
_LN_EPS = 1e-5
_COMPUTE_DTYPE = jnp.bfloat16    # MXU operand dtype


def _round_up(x, m):
    return ((x + m - 1) // m) * m


# ----------------------------------------------------------------------------
# Fully-fused BrainMLP kernel body
# ----------------------------------------------------------------------------
def _make_brain_mlp_kernel(n_blocks, out_dim, clip_size, use_projector):
    """Build the kernel body; refs arrive in the exact order assembled below."""

    def kernel(*refs):
        it = iter(refs)
        x_ref = next(it)
        w0, b0, g0, be0 = next(it), next(it), next(it), next(it)
        blocks = [(next(it), next(it), next(it), next(it))
                  for _ in range(n_blocks)]
        w1, b1 = next(it), next(it)
        if use_projector:
            pg0, pbt0, pw0, pbb0 = next(it), next(it), next(it), next(it)
            pg1, pbt1, pw1, pbb1 = next(it), next(it), next(it), next(it)
            pg2, pbt2, pw2, pbb2 = next(it), next(it), next(it), next(it)
            out_ref, proj_ref = next(it), next(it)
        else:
            out_ref = next(it)

        def lin(a, w_ref, b_ref):
            # bf16 x bf16 -> f32 accumulate on the MXU; bias add in f32.
            y = jnp.dot(a.astype(_COMPUTE_DTYPE), w_ref[...],
                        preferred_element_type=jnp.float32)
            return y + b_ref[...]                              # (1, N) bcast

        def ln(a, g_ref, b_ref):
            # PyTorch nn.LayerNorm: biased variance over last dim, eps=1e-5.
            m = jnp.mean(a, axis=-1, keepdims=True)
            v = jnp.mean(jnp.square(a - m), axis=-1, keepdims=True)
            a_hat = (a - m) * jax.lax.rsqrt(v + _LN_EPS)
            return a_hat * g_ref[...] + b_ref[...]

        def gelu(a):
            # Exact (erf) GELU, matching PyTorch nn.GELU() default.
            return 0.5 * a * (1.0 + jax.lax.erf(a * _SQRT_HALF))

        # lin0: Linear -> LayerNorm -> GELU -> Dropout(eval: identity)
        h = gelu(ln(lin(x_ref[...], w0, b0), g0, be0))

        # residual MLP blocks; residual stays in VMEM/vregs (no HBM traffic).
        res = h
        for (wi, bi, gi, bei) in blocks:
            h = gelu(ln(lin(h, wi, bi), gi, bei)) + res
            res = h

        # lin1
        y = lin(h, w1, b1)
        out_ref[...] = y.astype(out_ref.dtype)

        if use_projector:
            # projector operates per clip_size-sized token:
            # (bm, out_dim) -> (bm * out_dim//clip_size, clip_size)
            z = y.reshape(-1, clip_size)
            z = lin(gelu(ln(z, pg0, pbt0)), pw0, pbb0)
            z = lin(gelu(ln(z, pg1, pbt1)), pw1, pbb1)
            z = lin(gelu(ln(z, pg2, pbt2)), pw2, pbb2)
            proj_ref[...] = z.reshape(y.shape[0], out_dim).astype(proj_ref.dtype)

    return kernel


# ----------------------------------------------------------------------------
# Wrapper: one pallas_call for the whole forward pass
# ----------------------------------------------------------------------------
def brain_mlp_forward(params, x, *, n_blocks, clip_size, use_projector=True):
    bs = x.shape[0]
    # Hand the kernel bf16 rows: matmul operands are bf16 anyway, and this
    # halves the input HBM->VMEM DMA bytes.
    x2 = x.reshape(bs, -1).astype(_COMPUTE_DTYPE)
    M, in_dim = x2.shape
    out_dim = params['lin1_w'].shape[1]

    # Row-block: up to 128 rows (good MXU utilization + parallel grid axis for
    # the v7x megacore); pad the batch so it divides evenly.
    block_m = min(128, _round_up(M, 8))
    M_pad = _round_up(M, block_m)
    if M_pad != M:
        x2 = jnp.pad(x2, ((0, M_pad - M), (0, 0)))

    args = [x2]
    in_specs = [pl.BlockSpec((block_m, in_dim), lambda i: (i, 0))]

    def add(name):
        a = params[name]
        # Constant-index block: the parameter is fetched once and stays
        # resident in VMEM across all grid steps (no re-DMA per step).
        args.append(a)
        in_specs.append(pl.BlockSpec(a.shape, lambda i: (0, 0)))

    for n in ('lin0_w', 'lin0_b', 'lin0_g', 'lin0_be'):
        add(n)
    for i in range(n_blocks):
        for suf in ('w', 'b', 'g', 'be'):
            add(f'mlp{i}_{suf}')
    add('lin1_w')
    add('lin1_b')
    if use_projector:
        for n in ('pln0_g', 'pln0_b', 'plin0_w', 'plin0_b',
                  'pln1_g', 'pln1_b', 'plin1_w', 'plin1_b',
                  'pln2_g', 'pln2_b', 'plin2_w', 'plin2_b'):
            add(n)

    kernel = _make_brain_mlp_kernel(n_blocks, out_dim, clip_size, use_projector)

    out_block = pl.BlockSpec((block_m, out_dim), lambda i: (i, 0))
    if use_projector:
        out_specs = (out_block,
                     pl.BlockSpec((block_m, out_dim), lambda i: (i, 0)))
        out_shape = (jax.ShapeDtypeStruct((M_pad, out_dim), jnp.float32),
                     jax.ShapeDtypeStruct((M_pad, out_dim), jnp.float32))
    else:
        out_specs = out_block
        out_shape = jax.ShapeDtypeStruct((M_pad, out_dim), jnp.float32)

    result = pl.pallas_call(
        kernel,
        out_shape=out_shape,
        grid_spec=pltpu.PrefetchScalarGridSpec(
            num_scalar_prefetch=0,
            grid=(M_pad // block_m,),
            in_specs=in_specs,
            out_specs=out_specs,
        ),
        compiler_params=pltpu.CompilerParams(
            dimension_semantics=("parallel",)),
    )(*args)

    if use_projector:
        out, proj = result
        out = out[:M]
        proj = proj[:M].reshape(bs, out_dim // clip_size, clip_size)
        return out, proj
    return result[:M]


# ----------------------------------------------------------------------------
# Parameter construction (deterministic)
# ----------------------------------------------------------------------------
def init_brain_mlp_params(key, *, in_dim, h, out_dim, clip_size, proj_h,
                          n_blocks, weight_dtype=_COMPUTE_DTYPE):
    params = {}

    def linear(key, fan_in, fan_out):
        kw, kb = jax.random.split(key)
        bound = 1.0 / math.sqrt(fan_in)
        w = jax.random.uniform(kw, (fan_in, fan_out), jnp.float32,
                               -bound, bound).astype(weight_dtype)
        b = jax.random.uniform(kb, (1, fan_out), jnp.float32, -bound, bound)
        return w, b

    def ln(key, dim):
        kg, kb = jax.random.split(key)
        g = 1.0 + 0.02 * jax.random.normal(kg, (1, dim), jnp.float32)
        b = 0.02 * jax.random.normal(kb, (1, dim), jnp.float32)
        return g, b

    keys = jax.random.split(key, 9 + 2 * n_blocks)
    ki = iter(range(len(keys)))

    params['lin0_w'], params['lin0_b'] = linear(keys[next(ki)], in_dim, h)
    params['lin0_g'], params['lin0_be'] = ln(keys[next(ki)], h)

    for i in range(n_blocks):
        params[f'mlp{i}_w'], params[f'mlp{i}_b'] = linear(keys[next(ki)], h, h)
        params[f'mlp{i}_g'], params[f'mlp{i}_be'] = ln(keys[next(ki)], h)

    params['lin1_w'], params['lin1_b'] = linear(keys[next(ki)], h, out_dim)

    # projector: LN(clip) GELU Lin(clip->proj_h) LN GELU Lin(proj_h->proj_h)
    #            LN GELU Lin(proj_h->clip)
    params['pln0_g'], params['pln0_b'] = ln(keys[next(ki)], clip_size)
    params['plin0_w'], params['plin0_b'] = linear(keys[next(ki)], clip_size, proj_h)
    params['pln1_g'], params['pln1_b'] = ln(keys[next(ki)], proj_h)
    params['plin1_w'], params['plin1_b'] = linear(keys[next(ki)], proj_h, proj_h)
    params['pln2_g'], params['pln2_b'] = ln(keys[next(ki)], proj_h)
    params['plin2_w'], params['plin2_b'] = linear(keys[next(ki)], proj_h, clip_size)
    return params


# ----------------------------------------------------------------------------
# Pure-JAX reference (same math, incl. bf16 matmul operands) for correctness
# ----------------------------------------------------------------------------
def brain_mlp_reference(params, x, *, n_blocks, clip_size):
    bs = x.shape[0]
    xf = x.reshape(bs, -1).astype(jnp.float32)

    def lin(a, w, b):
        return jnp.dot(a.astype(_COMPUTE_DTYPE), w,
                       preferred_element_type=jnp.float32) + b

    def ln(a, g, b):
        m = jnp.mean(a, -1, keepdims=True)
        v = jnp.mean(jnp.square(a - m), -1, keepdims=True)
        return (a - m) * jax.lax.rsqrt(v + _LN_EPS) * g + b

    def gelu(a):
        return 0.5 * a * (1.0 + jax.lax.erf(a * _SQRT_HALF))

    h = gelu(ln(lin(xf, params['lin0_w'], params['lin0_b']),
                params['lin0_g'], params['lin0_be']))
    res = h
    for i in range(n_blocks):
        h = gelu(ln(lin(h, params[f'mlp{i}_w'], params[f'mlp{i}_b']),
                    params[f'mlp{i}_g'], params[f'mlp{i}_be'])) + res
        res = h
    y = lin(h, params['lin1_w'], params['lin1_b'])

    z = y.reshape(-1, clip_size)
    z = lin(gelu(ln(z, params['pln0_g'], params['pln0_b'])),
            params['plin0_w'], params['plin0_b'])
    z = lin(gelu(ln(z, params['pln1_g'], params['pln1_b'])),
            params['plin1_w'], params['plin1_b'])
    z = lin(gelu(ln(z, params['pln2_g'], params['pln2_b'])),
            params['plin2_w'], params['plin2_b'])
    return y, z.reshape(bs, -1, clip_size)


# ----------------------------------------------------------------------------
if __name__ == "__main__":
    # Small, TPU-friendly configuration consistent with BrainMLP's forward:
    #   x: (bs, 1, in_dim) -> flatten -> lin0 -> n_blocks residual MLP ->
    #   lin1 -> (x, projector(x reshaped to (bs, -1, clip_size))).
    BS = 8
    IN_DIM = 512
    H = 256
    OUT_DIM = 128
    CLIP_SIZE = 128     # out_dim == clip_size (as in the default module)
    PROJ_H = 256        # stands in for the module's 2048 projector width
    N_BLOCKS = 4

    key = jax.random.PRNGKey(0)
    k_params, k_x = jax.random.split(key)
    params = init_brain_mlp_params(
        k_params, in_dim=IN_DIM, h=H, out_dim=OUT_DIM,
        clip_size=CLIP_SIZE, proj_h=PROJ_H, n_blocks=N_BLOCKS)

    x = jax.random.normal(k_x, (BS, 1, IN_DIM), jnp.float32)

    fwd = jax.jit(functools.partial(
        brain_mlp_forward, n_blocks=N_BLOCKS, clip_size=CLIP_SIZE,
        use_projector=True))
    out, proj = fwd(params, x)
    out = jax.block_until_ready(out)
    proj = jax.block_until_ready(proj)

    # correctness check against pure-JAX reference (same bf16 matmul operands)
    ref_out, ref_proj = brain_mlp_reference(
        params, x, n_blocks=N_BLOCKS, clip_size=CLIP_SIZE)
    np.testing.assert_allclose(np.asarray(out), np.asarray(ref_out),
                               rtol=2e-3, atol=2e-3)
    np.testing.assert_allclose(np.asarray(proj), np.asarray(ref_proj),
                               rtol=2e-3, atol=2e-3)

    assert out.shape == (BS, OUT_DIM)
    assert proj.shape == (BS, OUT_DIM // CLIP_SIZE, CLIP_SIZE)
    print("KERNEL_OK")
</pallas_src>

<mosaic_0001>
module attributes {stable_mosaic.version = 11 : i64} {
  func.func @kernel(%arg0: i32, %arg1: memref<8x512xbf16, #tpu.memory_space<vmem>>, %arg2: memref<512x256xbf16, #tpu.memory_space<vmem>>, %arg3: memref<1x256xf32, #tpu.memory_space<vmem>>, %arg4: memref<1x256xf32, #tpu.memory_space<vmem>>, %arg5: memref<1x256xf32, #tpu.memory_space<vmem>>, %arg6: memref<256x256xbf16, #tpu.memory_space<vmem>>, %arg7: memref<1x256xf32, #tpu.memory_space<vmem>>, %arg8: memref<1x256xf32, #tpu.memory_space<vmem>>, %arg9: memref<1x256xf32, #tpu.memory_space<vmem>>, %arg10: memref<256x256xbf16, #tpu.memory_space<vmem>>, %arg11: memref<1x256xf32, #tpu.memory_space<vmem>>, %arg12: memref<1x256xf32, #tpu.memory_space<vmem>>, %arg13: memref<1x256xf32, #tpu.memory_space<vmem>>, %arg14: memref<256x256xbf16, #tpu.memory_space<vmem>>, %arg15: memref<1x256xf32, #tpu.memory_space<vmem>>, %arg16: memref<1x256xf32, #tpu.memory_space<vmem>>, %arg17: memref<1x256xf32, #tpu.memory_space<vmem>>, %arg18: memref<256x256xbf16, #tpu.memory_space<vmem>>, %arg19: memref<1x256xf32, #tpu.memory_space<vmem>>, %arg20: memref<1x256xf32, #tpu.memory_space<vmem>>, %arg21: memref<1x256xf32, #tpu.memory_space<vmem>>, %arg22: memref<256x128xbf16, #tpu.memory_space<vmem>>, %arg23: memref<1x128xf32, #tpu.memory_space<vmem>>, %arg24: memref<1x128xf32, #tpu.memory_space<vmem>>, %arg25: memref<1x128xf32, #tpu.memory_space<vmem>>, %arg26: memref<128x256xbf16, #tpu.memory_space<vmem>>, %arg27: memref<1x256xf32, #tpu.memory_space<vmem>>, %arg28: memref<1x256xf32, #tpu.memory_space<vmem>>, %arg29: memref<1x256xf32, #tpu.memory_space<vmem>>, %arg30: memref<256x256xbf16, #tpu.memory_space<vmem>>, %arg31: memref<1x256xf32, #tpu.memory_space<vmem>>, %arg32: memref<1x256xf32, #tpu.memory_space<vmem>>, %arg33: memref<1x256xf32, #tpu.memory_space<vmem>>, %arg34: memref<256x128xbf16, #tpu.memory_space<vmem>>, %arg35: memref<1x128xf32, #tpu.memory_space<vmem>>, %arg36: memref<8x128xf32, #tpu.memory_space<vmem>>, %arg37: memref<8x128xf32, #tpu.memory_space<vmem>>) attributes {dimension_semantics = [#tpu.dimension_semantics<parallel>], iteration_bounds = array<i64: 1>, scalar_prefetch = 0 : i64, scratch_operands = 0 : i64, tpu.core_type = #tpu.core_type<tc>, window_params = [{transform_indices = @transform_0, window_bounds = array<i64: 8, 512>}, {pipeline_mode = #tpu.pipeline_mode<synchronous>, transform_indices = @transform_1, window_bounds = array<i64: 512, 256>}, {pipeline_mode = #tpu.pipeline_mode<synchronous>, transform_indices = @transform_2, window_bounds = array<i64: 1, 256>}, {pipeline_mode = #tpu.pipeline_mode<synchronous>, transform_indices = @transform_3, window_bounds = array<i64: 1, 256>}, {pipeline_mode = #tpu.pipeline_mode<synchronous>, transform_indices = @transform_4, window_bounds = array<i64: 1, 256>}, {pipeline_mode = #tpu.pipeline_mode<synchronous>, transform_indices = @transform_5, window_bounds = array<i64: 256, 256>}, {pipeline_mode = #tpu.pipeline_mode<synchronous>, transform_indices = @transform_6, window_bounds = array<i64: 1, 256>}, {pipeline_mode = #tpu.pipeline_mode<synchronous>, transform_indices = @transform_7, window_bounds = array<i64: 1, 256>}, {pipeline_mode = #tpu.pipeline_mode<synchronous>, transform_indices = @transform_8, window_bounds = array<i64: 1, 256>}, {pipeline_mode = #tpu.pipeline_mode<synchronous>, transform_indices = @transform_9, window_bounds = array<i64: 256, 256>}, {pipeline_mode = #tpu.pipeline_mode<synchronous>, transform_indices = @transform_10, window_bounds = array<i64: 1, 256>}, {pipeline_mode = #tpu.pipeline_mode<synchronous>, transform_indices = @transform_11, window_bounds = array<i64: 1, 256>}, {pipeline_mode = #tpu.pipeline_mode<synchronous>, transform_indices = @transform_12, window_bounds = array<i64: 1, 256>}, {pipeline_mode = #tpu.pipeline_mode<synchronous>, transform_indices = @transform_13, window_bounds = array<i64: 256, 256>}, {pipeline_mode = #tpu.pipeline_mode<synchronous>, transform_indices = @transform_14, window_bounds = array<i64: 1, 256>}, {pipeline_mode = #tpu.pipeline_mode<synchronous>, transform_indices = @transform_15, window_bounds = array<i64: 1, 256>}, {pipeline_mode = #tpu.pipeline_mode<synchronous>, transform_indices = @transform_16, window_bounds = array<i64: 1, 256>}, {pipeline_mode = #tpu.pipeline_mode<synchronous>, transform_indices = @transform_17, window_bounds = array<i64: 256, 256>}, {pipeline_mode = #tpu.pipeline_mode<synchronous>, transform_indices = @transform_18, window_bounds = array<i64: 1, 256>}, {pipeline_mode = #tpu.pipeline_mode<synchronous>, transform_indices = @transform_19, window_bounds = array<i64: 1, 256>}, {pipeline_mode = #tpu.pipeline_mode<synchronous>, transform_indices = @transform_20, window_bounds = array<i64: 1, 256>}, {pipeline_mode = #tpu.pipeline_mode<synchronous>, transform_indices = @transform_21, window_bounds = array<i64: 256, 128>}, {pipeline_mode = #tpu.pipeline_mode<synchronous>, transform_indices = @transform_22, window_bounds = array<i64: 1, 128>}, {pipeline_mode = #tpu.pipeline_mode<synchronous>, transform_indices = @transform_23, window_bounds = array<i64: 1, 128>}, {pipeline_mode = #tpu.pipeline_mode<synchronous>, transform_indices = @transform_24, window_bounds = array<i64: 1, 128>}, {pipeline_mode = #tpu.pipeline_mode<synchronous>, transform_indices = @transform_25, window_bounds = array<i64: 128, 256>}, {pipeline_mode = #tpu.pipeline_mode<synchronous>, transform_indices = @transform_26, window_bounds = array<i64: 1, 256>}, {pipeline_mode = #tpu.pipeline_mode<synchronous>, transform_indices = @transform_27, window_bounds = array<i64: 1, 256>}, {pipeline_mode = #tpu.pipeline_mode<synchronous>, transform_indices = @transform_28, window_bounds = array<i64: 1, 256>}, {pipeline_mode = #tpu.pipeline_mode<synchronous>, transform_indices = @transform_29, window_bounds = array<i64: 256, 256>}, {pipeline_mode = #tpu.pipeline_mode<synchronous>, transform_indices = @transform_30, window_bounds = array<i64: 1, 256>}, {pipeline_mode = #tpu.pipeline_mode<synchronous>, transform_indices = @transform_31, window_bounds = array<i64: 1, 256>}, {pipeline_mode = #tpu.pipeline_mode<synchronous>, transform_indices = @transform_32, window_bounds = array<i64: 1, 256>}, {pipeline_mode = #tpu.pipeline_mode<synchronous>, transform_indices = @transform_33, window_bounds = array<i64: 256, 128>}, {pipeline_mode = #tpu.pipeline_mode<synchronous>, transform_indices = @transform_34, window_bounds = array<i64: 1, 128>}, {transform_indices = @transform_35, window_bounds = array<i64: 8, 128>}, {transform_indices = @transform_36, window_bounds = array<i64: 8, 128>}]} {
    %c0 = arith.constant 0 : index
    %c0_0 = arith.constant 0 : index
    %0 = vector.load %arg1[%c0, %c0_0] : memref<8x512xbf16, #tpu.memory_space<vmem>>, vector<8x512xbf16>
    %c0_1 = arith.constant 0 : index
    %c0_2 = arith.constant 0 : index
    %1 = vector.load %arg2[%c0_1, %c0_2] : memref<512x256xbf16, #tpu.memory_space<vmem>>, vector<512x256xbf16>
    %cst = arith.constant dense<0.000000e+00> : vector<8x256xf32>
    %2 = tpu.matmul %0, %1, %cst {dimension_numbers = #tpu.dot_dimension_numbers<[1], [0], [0], [1], [0, 0, 1, 1], [], []>} : vector<8x512xbf16>, vector<512x256xbf16>, vector<8x256xf32> -> vector<8x256xf32>
    %c0_3 = arith.constant 0 : index
    %c0_4 = arith.constant 0 : index
    %3 = vector.load %arg3[%c0_3, %c0_4] : memref<1x256xf32, #tpu.memory_space<vmem>>, vector<1x256xf32>
    %4 = vector.broadcast %3 : vector<1x256xf32> to vector<8x256xf32>
    %5 = arith.addf %2, %4 : vector<8x256xf32>
    %cst_5 = arith.constant dense<0.000000e+00> : vector<8xf32>
    %6 = vector.multi_reduction <add>, %5, %cst_5 [1] : vector<8x256xf32> to vector<8xf32>
    %7 = vector.shape_cast %6 : vector<8xf32> to vector<8x1xf32>
    %cst_6 = arith.constant 2.560000e+02 : f32
    %8 = vector.broadcast %cst_6 : f32 to vector<8x1xf32>
    %9 = arith.divf %7, %8 : vector<8x1xf32>
    %10 = vector.broadcast %9 : vector<8x1xf32> to vector<8x256xf32>
    %11 = arith.subf %5, %10 : vector<8x256xf32>
    %12 = arith.mulf %11, %11 : vector<8x256xf32>
    %cst_7 = arith.constant dense<0.000000e+00> : vector<8xf32>
    %13 = vector.multi_reduction <add>, %12, %cst_7 [1] : vector<8x256xf32> to vector<8xf32>
    %14 = vector.shape_cast %13 : vector<8xf32> to vector<8x1xf32>
    %cst_8 = arith.constant 2.560000e+02 : f32
    %15 = vector.broadcast %cst_8 : f32 to vector<8x1xf32>
    %16 = arith.divf %14, %15 : vector<8x1xf32>
    %17 = vector.broadcast %9 : vector<8x1xf32> to vector<8x256xf32>
    %18 = arith.subf %5, %17 : vector<8x256xf32>
    %cst_9 = arith.constant 9.99999974E-6 : f32
    %19 = vector.broadcast %cst_9 : f32 to vector<8x1xf32>
    %20 = arith.addf %16, %19 : vector<8x1xf32>
    %21 = math.rsqrt %20 : vector<8x1xf32>
    %22 = vector.broadcast %21 : vector<8x1xf32> to vector<8x256xf32>
    %23 = arith.mulf %18, %22 : vector<8x256xf32>
    %c0_10 = arith.constant 0 : index
    %c0_11 = arith.constant 0 : index
    %24 = vector.load %arg4[%c0_10, %c0_11] : memref<1x256xf32, #tpu.memory_space<vmem>>, vector<1x256xf32>
    %25 = vector.broadcast %24 : vector<1x256xf32> to vector<8x256xf32>
    %26 = arith.mulf %23, %25 : vector<8x256xf32>
    %c0_12 = arith.constant 0 : index
    %c0_13 = arith.constant 0 : index
    %27 = vector.load %arg5[%c0_12, %c0_13] : memref<1x256xf32, #tpu.memory_space<vmem>>, vector<1x256xf32>
    %28 = vector.broadcast %27 : vector<1x256xf32> to vector<8x256xf32>
    %29 = arith.addf %26, %28 : vector<8x256xf32>
    %cst_14 = arith.constant 5.000000e-01 : f32
    %30 = vector.broadcast %cst_14 : f32 to vector<8x256xf32>
    %31 = arith.mulf %30, %29 : vector<8x256xf32>
    %cst_15 = arith.constant 0.707106769 : f32
    %32 = vector.broadcast %cst_15 : f32 to vector<8x256xf32>
    %33 = arith.mulf %29, %32 : vector<8x256xf32>
    %34 = math.erf %33 : vector<8x256xf32>
    %cst_16 = arith.constant 1.000000e+00 : f32
    %35 = vector.broadcast %cst_16 : f32 to vector<8x256xf32>
    %36 = arith.addf %35, %34 : vector<8x256xf32>
    %37 = arith.mulf %31, %36 : vector<8x256xf32>
    %38 = arith.truncf %37 : vector<8x256xf32> to vector<8x256xbf16>
    %c0_17 = arith.constant 0 : index
    %c0_18 = arith.constant 0 : index
    %39 = vector.load %arg6[%c0_17, %c0_18] : memref<256x256xbf16, #tpu.memory_space<vmem>>, vector<256x256xbf16>
    %cst_19 = arith.constant dense<0.000000e+00> : vector<8x256xf32>
    %40 = tpu.matmul %38, %39, %cst_19 {dimension_numbers = #tpu.dot_dimension_numbers<[1], [0], [0], [1], [0, 0, 1, 1], [], []>} : vector<8x256xbf16>, vector<256x256xbf16>, vector<8x256xf32> -> vector<8x256xf32>
    %c0_20 = arith.constant 0 : index
    %c0_21 = arith.constant 0 : index
    %41 = vector.load %arg7[%c0_20, %c0_21] : memref<1x256xf32, #tpu.memory_space<vmem>>, vector<1x256xf32>
    %42 = vector.broadcast %41 : vector<1x256xf32> to vector<8x256xf32>
    %43 = arith.addf %40, %42 : vector<8x256xf32>
    %cst_22 = arith.constant dense<0.000000e+00> : vector<8xf32>
    %44 = vector.multi_reduction <add>, %43, %cst_22 [1] : vector<8x256xf32> to vector<8xf32>
    %45 = vector.shape_cast %44 : vector<8xf32> to vector<8x1xf32>
    %cst_23 = arith.constant 2.560000e+02 : f32
    %46 = vector.broadcast %cst_23 : f32 to vector<8x1xf32>
    %47 = arith.divf %45, %46 : vector<8x1xf32>
    %48 = vector.broadcast %47 : vector<8x1xf32> to vector<8x256xf32>
    %49 = arith.subf %43, %48 : vector<8x256xf32>
    %50 = arith.mulf %49, %49 : vector<8x256xf32>
    %cst_24 = arith.constant dense<0.000000e+00> : vector<8xf32>
    %51 = vector.multi_reduction <add>, %50, %cst_24 [1] : vector<8x256xf32> to vector<8xf32>
    %52 = vector.shape_cast %51 : vector<8xf32> to vector<8x1xf32>
    %cst_25 = arith.constant 2.560000e+02 : f32
    %53 = vector.broadcast %cst_25 : f32 to vector<8x1xf32>
    %54 = arith.divf %52, %53 : vector<8x1xf32>
    %55 = vector.broadcast %47 : vector<8x1xf32> to vector<8x256xf32>
    %56 = arith.subf %43, %55 : vector<8x256xf32>
    %cst_26 = arith.constant 9.99999974E-6 : f32
    %57 = vector.broadcast %cst_26 : f32 to vector<8x1xf32>
    %58 = arith.addf %54, %57 : vector<8x1xf32>
    %59 = math.rsqrt %58 : vector<8x1xf32>
    %60 = vector.broadcast %59 : vector<8x1xf32> to vector<8x256xf32>
    %61 = arith.mulf %56, %60 : vector<8x256xf32>
    %c0_27 = arith.constant 0 : index
    %c0_28 = arith.constant 0 : index
    %62 = vector.load %arg8[%c0_27, %c0_28] : memref<1x256xf32, #tpu.memory_space<vmem>>, vector<1x256xf32>
    %63 = vector.broadcast %62 : vector<1x256xf32> to vector<8x256xf32>
    %64 = arith.mulf %61, %63 : vector<8x256xf32>
    %c0_29 = arith.constant 0 : index
    %c0_30 = arith.constant 0 : index
    %65 = vector.load %arg9[%c0_29, %c0_30] : memref<1x256xf32, #tpu.memory_space<vmem>>, vector<1x256xf32>
    %66 = vector.broadcast %65 : vector<1x256xf32> to vector<8x256xf32>
    %67 = arith.addf %64, %66 : vector<8x256xf32>
    %cst_31 = arith.constant 5.000000e-01 : f32
    %68 = vector.broadcast %cst_31 : f32 to vector<8x256xf32>
    %69 = arith.mulf %68, %67 : vector<8x256xf32>
    %cst_32 = arith.constant 0.707106769 : f32
    %70 = vector.broadcast %cst_32 : f32 to vector<8x256xf32>
    %71 = arith.mulf %67, %70 : vector<8x256xf32>
    %72 = math.erf %71 : vector<8x256xf32>
    %cst_33 = arith.constant 1.000000e+00 : f32
    %73 = vector.broadcast %cst_33 : f32 to vector<8x256xf32>
    %74 = arith.addf %73, %72 : vector<8x256xf32>
    %75 = arith.mulf %69, %74 : vector<8x256xf32>
    %76 = arith.addf %75, %37 : vector<8x256xf32>
    %77 = arith.truncf %76 : vector<8x256xf32> to vector<8x256xbf16>
    %c0_34 = arith.constant 0 : index
    %c0_35 = arith.constant 0 : index
    %78 = vector.load %arg10[%c0_34, %c0_35] : memref<256x256xbf16, #tpu.memory_space<vmem>>, vector<256x256xbf16>
    %cst_36 = arith.constant dense<0.000000e+00> : vector<8x256xf32>
    %79 = tpu.matmul %77, %78, %cst_36 {dimension_numbers = #tpu.dot_dimension_numbers<[1], [0], [0], [1], [0, 0, 1, 1], [], []>} : vector<8x256xbf16>, vector<256x256xbf16>, vector<8x256xf32> -> vector<8x256xf32>
    %c0_37 = arith.constant 0 : index
    %c0_38 = arith.constant 0 : index
    %80 = vector.load %arg11[%c0_37, %c0_38] : memref<1x256xf32, #tpu.memory_space<vmem>>, vector<1x256xf32>
    %81 = vector.broadcast %80 : vector<1x256xf32> to vector<8x256xf32>
    %82 = arith.addf %79, %81 : vector<8x256xf32>
    %cst_39 = arith.constant dense<0.000000e+00> : vector<8xf32>
    %83 = vector.multi_reduction <add>, %82, %cst_39 [1] : vector<8x256xf32> to vector<8xf32>
    %84 = vector.shape_cast %83 : vector<8xf32> to vector<8x1xf32>
    %cst_40 = arith.constant 2.560000e+02 : f32
    %85 = vector.broadcast %cst_40 : f32 to vector<8x1xf32>
    %86 = arith.divf %84, %85 : vector<8x1xf32>
    %87 = vector.broadcast %86 : vector<8x1xf32> to vector<8x256xf32>
    %88 = arith.subf %82, %87 : vector<8x256xf32>
    %89 = arith.mulf %88, %88 : vector<8x256xf32>
    %cst_41 = arith.constant dense<0.000000e+00> : vector<8xf32>
    %90 = vector.multi_reduction <add>, %89, %cst_41 [1] : vector<8x256xf32> to vector<8xf32>
    %91 = vector.shape_cast %90 : vector<8xf32> to vector<8x1xf32>
    %cst_42 = arith.constant 2.560000e+02 : f32
    %92 = vector.broadcast %cst_42 : f32 to vector<8x1xf32>
    %93 = arith.divf %91, %92 : vector<8x1xf32>
    %94 = vector.broadcast %86 : vector<8x1xf32> to vector<8x256xf32>
    %95 = arith.subf %82, %94 : vector<8x256xf32>
    %cst_43 = arith.constant 9.99999974E-6 : f32
    %96 = vector.broadcast %cst_43 : f32 to vector<8x1xf32>
    %97 = arith.addf %93, %96 : vector<8x1xf32>
    %98 = math.rsqrt %97 : vector<8x1xf32>
    %99 = vector.broadcast %98 : vector<8x1xf32> to vector<8x256xf32>
    %100 = arith.mulf %95, %99 : vector<8x256xf32>
    %c0_44 = arith.constant 0 : index
    %c0_45 = arith.constant 0 : index
    %101 = vector.load %arg12[%c0_44, %c0_45] : memref<1x256xf32, #tpu.memory_space<vmem>>, vector<1x256xf32>
    %102 = vector.broadcast %101 : vector<1x256xf32> to vector<8x256xf32>
    %103 = arith.mulf %100, %102 : vector<8x256xf32>
    %c0_46 = arith.constant 0 : index
    %c0_47 = arith.constant 0 : index
    %104 = vector.load %arg13[%c0_46, %c0_47] : memref<1x256xf32, #tpu.memory_space<vmem>>, vector<1x256xf32>
    %105 = vector.broadcast %104 : vector<1x256xf32> to vector<8x256xf32>
    %106 = arith.addf %103, %105 : vector<8x256xf32>
    %cst_48 = arith.constant 5.000000e-01 : f32
    %107 = vector.broadcast %cst_48 : f32 to vector<8x256xf32>
    %108 = arith.mulf %107, %106 : vector<8x256xf32>
    %cst_49 = arith.constant 0.707106769 : f32
    %109 = vector.broadcast %cst_49 : f32 to vector<8x256xf32>
    %110 = arith.mulf %106, %109 : vector<8x256xf32>
    %111 = math.erf %110 : vector<8x256xf32>
    %cst_50 = arith.constant 1.000000e+00 : f32
    %112 = vector.broadcast %cst_50 : f32 to vector<8x256xf32>
    %113 = arith.addf %112, %111 : vector<8x256xf32>
    %114 = arith.mulf %108, %113 : vector<8x256xf32>
    %115 = arith.addf %114, %76 : vector<8x256xf32>
    %116 = arith.truncf %115 : vector<8x256xf32> to vector<8x256xbf16>
    %c0_51 = arith.constant 0 : index
    %c0_52 = arith.constant 0 : index
    %117 = vector.load %arg14[%c0_51, %c0_52] : memref<256x256xbf16, #tpu.memory_space<vmem>>, vector<256x256xbf16>
    %cst_53 = arith.constant dense<0.000000e+00> : vector<8x256xf32>
    %118 = tpu.matmul %116, %117, %cst_53 {dimension_numbers = #tpu.dot_dimension_numbers<[1], [0], [0], [1], [0, 0, 1, 1], [], []>} : vector<8x256xbf16>, vector<256x256xbf16>, vector<8x256xf32> -> vector<8x256xf32>
    %c0_54 = arith.constant 0 : index
    %c0_55 = arith.constant 0 : index
    %119 = vector.load %arg15[%c0_54, %c0_55] : memref<1x256xf32, #tpu.memory_space<vmem>>, vector<1x256xf32>
    %120 = vector.broadcast %119 : vector<1x256xf32> to vector<8x256xf32>
    %121 = arith.addf %118, %120 : vector<8x256xf32>
    %cst_56 = arith.constant dense<0.000000e+00> : vector<8xf32>
    %122 = vector.multi_reduction <add>, %121, %cst_56 [1] : vector<8x256xf32> to vector<8xf32>
    %123 = vector.shape_cast %122 : vector<8xf32> to vector<8x1xf32>
    %cst_57 = arith.constant 2.560000e+02 : f32
    %124 = vector.broadcast %cst_57 : f32 to vector<8x1xf32>
    %125 = arith.divf %123, %124 : vector<8x1xf32>
    %126 = vector.broadcast %125 : vector<8x1xf32> to vector<8x256xf32>
    %127 = arith.subf %121, %126 : vector<8x256xf32>
    %128 = arith.mulf %127, %127 : vector<8x256xf32>
    %cst_58 = arith.constant dense<0.000000e+00> : vector<8xf32>
    %129 = vector.multi_reduction <add>, %128, %cst_58 [1] : vector<8x256xf32> to vector<8xf32>
    %130 = vector.shape_cast %129 : vector<8xf32> to vector<8x1xf32>
    %cst_59 = arith.constant 2.560000e+02 : f32
    %131 = vector.broadcast %cst_59 : f32 to vector<8x1xf32>
    %132 = arith.divf %130, %131 : vector<8x1xf32>
    %133 = vector.broadcast %125 : vector<8x1xf32> to vector<8x256xf32>
    %134 = arith.subf %121, %133 : vector<8x256xf32>
    %cst_60 = arith.constant 9.99999974E-6 : f32
    %135 = vector.broadcast %cst_60 : f32 to vector<8x1xf32>
    %136 = arith.addf %132, %135 : vector<8x1xf32>
    %137 = math.rsqrt %136 : vector<8x1xf32>
    %138 = vector.broadcast %137 : vector<8x1xf32> to vector<8x256xf32>
    %139 = arith.mulf %134, %138 : vector<8x256xf32>
    %c0_61 = arith.constant 0 : index
    %c0_62 = arith.constant 0 : index
    %140 = vector.load %arg16[%c0_61, %c0_62] : memref<1x256xf32, #tpu.memory_space<vmem>>, vector<1x256xf32>
    %141 = vector.broadcast %140 : vector<1x256xf32> to vector<8x256xf32>
    %142 = arith.mulf %139, %141 : vector<8x256xf32>
    %c0_63 = arith.constant 0 : index
    %c0_64 = arith.constant 0 : index
    %143 = vector.load %arg17[%c0_63, %c0_64] : memref<1x256xf32, #tpu.memory_space<vmem>>, vector<1x256xf32>
    %144 = vector.broadcast %143 : vector<1x256xf32> to vector<8x256xf32>
    %145 = arith.addf %142, %144 : vector<8x256xf32>
    %cst_65 = arith.constant 5.000000e-01 : f32
    %146 = vector.broadcast %cst_65 : f32 to vector<8x256xf32>
    %147 = arith.mulf %146, %145 : vector<8x256xf32>
    %cst_66 = arith.constant 0.707106769 : f32
    %148 = vector.broadcast %cst_66 : f32 to vector<8x256xf32>
    %149 = arith.mulf %145, %148 : vector<8x256xf32>
    %150 = math.erf %149 : vector<8x256xf32>
    %cst_67 = arith.constant 1.000000e+00 : f32
    %151 = vector.broadcast %cst_67 : f32 to vector<8x256xf32>
    %152 = arith.addf %151, %150 : vector<8x256xf32>
    %153 = arith.mulf %147, %152 : vector<8x256xf32>
    %154 = arith.addf %153, %115 : vector<8x256xf32>
    %155 = arith.truncf %154 : vector<8x256xf32> to vector<8x256xbf16>
    %c0_68 = arith.constant 0 : index
    %c0_69 = arith.constant 0 : index
    %156 = vector.load %arg18[%c0_68, %c0_69] : memref<256x256xbf16, #tpu.memory_space<vmem>>, vector<256x256xbf16>
    %cst_70 = arith.constant dense<0.000000e+00> : vector<8x256xf32>
    %157 = tpu.matmul %155, %156, %cst_70 {dimension_numbers = #tpu.dot_dimension_numbers<[1], [0], [0], [1], [0, 0, 1, 1], [], []>} : vector<8x256xbf16>, vector<256x256xbf16>, vector<8x256xf32> -> vector<8x256xf32>
    %c0_71 = arith.constant 0 : index
    %c0_72 = arith.constant 0 : index
    %158 = vector.load %arg19[%c0_71, %c0_72] : memref<1x256xf32, #tpu.memory_space<vmem>>, vector<1x256xf32>
    %159 = vector.broadcast %158 : vector<1x256xf32> to vector<8x256xf32>
    %160 = arith.addf %157, %159 : vector<8x256xf32>
    %cst_73 = arith.constant dense<0.000000e+00> : vector<8xf32>
    %161 = vector.multi_reduction <add>, %160, %cst_73 [1] : vector<8x256xf32> to vector<8xf32>
    %162 = vector.shape_cast %161 : vector<8xf32> to vector<8x1xf32>
    %cst_74 = arith.constant 2.560000e+02 : f32
    %163 = vector.broadcast %cst_74 : f32 to vector<8x1xf32>
    %164 = arith.divf %162, %163 : vector<8x1xf32>
    %165 = vector.broadcast %164 : vector<8x1xf32> to vector<8x256xf32>
    %166 = arith.subf %160, %165 : vector<8x256xf32>
    %167 = arith.mulf %166, %166 : vector<8x256xf32>
    %cst_75 = arith.constant dense<0.000000e+00> : vector<8xf32>
    %168 = vector.multi_reduction <add>, %167, %cst_75 [1] : vector<8x256xf32> to vector<8xf32>
    %169 = vector.shape_cast %168 : vector<8xf32> to vector<8x1xf32>
    %cst_76 = arith.constant 2.560000e+02 : f32
    %170 = vector.broadcast %cst_76 : f32 to vector<8x1xf32>
    %171 = arith.divf %169, %170 : vector<8x1xf32>
    %172 = vector.broadcast %164 : vector<8x1xf32> to vector<8x256xf32>
    %173 = arith.subf %160, %172 : vector<8x256xf32>
    %cst_77 = arith.constant 9.99999974E-6 : f32
    %174 = vector.broadcast %cst_77 : f32 to vector<8x1xf32>
    %175 = arith.addf %171, %174 : vector<8x1xf32>
    %176 = math.rsqrt %175 : vector<8x1xf32>
    %177 = vector.broadcast %176 : vector<8x1xf32> to vector<8x256xf32>
    %178 = arith.mulf %173, %177 : vector<8x256xf32>
    %c0_78 = arith.constant 0 : index
    %c0_79 = arith.constant 0 : index
    %179 = vector.load %arg20[%c0_78, %c0_79] : memref<1x256xf32, #tpu.memory_space<vmem>>, vector<1x256xf32>
    %180 = vector.broadcast %179 : vector<1x256xf32> to vector<8x256xf32>
    %181 = arith.mulf %178, %180 : vector<8x256xf32>
    %c0_80 = arith.constant 0 : index
    %c0_81 = arith.constant 0 : index
    %182 = vector.load %arg21[%c0_80, %c0_81] : memref<1x256xf32, #tpu.memory_space<vmem>>, vector<1x256xf32>
    %183 = vector.broadcast %182 : vector<1x256xf32> to vector<8x256xf32>
    %184 = arith.addf %181, %183 : vector<8x256xf32>
    %cst_82 = arith.constant 5.000000e-01 : f32
    %185 = vector.broadcast %cst_82 : f32 to vector<8x256xf32>
    %186 = arith.mulf %185, %184 : vector<8x256xf32>
    %cst_83 = arith.constant 0.707106769 : f32
    %187 = vector.broadcast %cst_83 : f32 to vector<8x256xf32>
    %188 = arith.mulf %184, %187 : vector<8x256xf32>
    %189 = math.erf %188 : vector<8x256xf32>
    %cst_84 = arith.constant 1.000000e+00 : f32
    %190 = vector.broadcast %cst_84 : f32 to vector<8x256xf32>
    %191 = arith.addf %190, %189 : vector<8x256xf32>
    %192 = arith.mulf %186, %191 : vector<8x256xf32>
    %193 = arith.addf %192, %154 : vector<8x256xf32>
    %194 = arith.truncf %193 : vector<8x256xf32> to vector<8x256xbf16>
    %c0_85 = arith.constant 0 : index
    %c0_86 = arith.constant 0 : index
    %195 = vector.load %arg22[%c0_85, %c0_86] : memref<256x128xbf16, #tpu.memory_space<vmem>>, vector<256x128xbf16>
    %cst_87 = arith.constant dense<0.000000e+00> : vector<8x128xf32>
    %196 = tpu.matmul %194, %195, %cst_87 {dimension_numbers = #tpu.dot_dimension_numbers<[1], [0], [0], [1], [0, 0, 1, 1], [], []>} : vector<8x256xbf16>, vector<256x128xbf16>, vector<8x128xf32> -> vector<8x128xf32>
    %c0_88 = arith.constant 0 : index
    %c0_89 = arith.constant 0 : index
    %197 = vector.load %arg23[%c0_88, %c0_89] : memref<1x128xf32, #tpu.memory_space<vmem>>, vector<1x128xf32>
    %198 = vector.broadcast %197 : vector<1x128xf32> to vector<8x128xf32>
    %199 = arith.addf %196, %198 : vector<8x128xf32>
    %c0_90 = arith.constant 0 : index
    %c0_91 = arith.constant 0 : index
    %200 = vector.load %arg36[%c0_90, %c0_91] : memref<8x128xf32, #tpu.memory_space<vmem>>, vector<8x128xf32>
    tpu.vector_store %arg36[%c0_90, %c0_91], %199 {strides = array<i32>} : memref<8x128xf32, #tpu.memory_space<vmem>>, vector<8x128xf32>,
    %cst_92 = arith.constant dense<0.000000e+00> : vector<8xf32>
    %201 = vector.multi_reduction <add>, %199, %cst_92 [1] : vector<8x128xf32> to vector<8xf32>
    %202 = vector.shape_cast %201 : vector<8xf32> to vector<8x1xf32>
    %cst_93 = arith.constant 1.280000e+02 : f32
    %203 = vector.broadcast %cst_93 : f32 to vector<8x1xf32>
    %204 = arith.divf %202, %203 : vector<8x1xf32>
    %205 = vector.broadcast %204 : vector<8x1xf32> to vector<8x128xf32>
    %206 = arith.subf %199, %205 : vector<8x128xf32>
    %207 = arith.mulf %206, %206 : vector<8x128xf32>
    %cst_94 = arith.constant dense<0.000000e+00> : vector<8xf32>
    %208 = vector.multi_reduction <add>, %207, %cst_94 [1] : vector<8x128xf32> to vector<8xf32>
    %209 = vector.shape_cast %208 : vector<8xf32> to vector<8x1xf32>
    %cst_95 = arith.constant 1.280000e+02 : f32
    %210 = vector.broadcast %cst_95 : f32 to vector<8x1xf32>
    %211 = arith.divf %209, %210 : vector<8x1xf32>
    %212 = vector.broadcast %204 : vector<8x1xf32> to vector<8x128xf32>
    %213 = arith.subf %199, %212 : vector<8x128xf32>
    %cst_96 = arith.constant 9.99999974E-6 : f32
    %214 = vector.broadcast %cst_96 : f32 to vector<8x1xf32>
    %215 = arith.addf %211, %214 : vector<8x1xf32>
    %216 = math.rsqrt %215 : vector<8x1xf32>
    %217 = vector.broadcast %216 : vector<8x1xf32> to vector<8x128xf32>
    %218 = arith.mulf %213, %217 : vector<8x128xf32>
    %c0_97 = arith.constant 0 : index
    %c0_98 = arith.constant 0 : index
    %219 = vector.load %arg24[%c0_97, %c0_98] : memref<1x128xf32, #tpu.memory_space<vmem>>, vector<1x128xf32>
    %220 = vector.broadcast %219 : vector<1x128xf32> to vector<8x128xf32>
    %221 = arith.mulf %218, %220 : vector<8x128xf32>
    %c0_99 = arith.constant 0 : index
    %c0_100 = arith.constant 0 : index
    %222 = vector.load %arg25[%c0_99, %c0_100] : memref<1x128xf32, #tpu.memory_space<vmem>>, vector<1x128xf32>
    %223 = vector.broadcast %222 : vector<1x128xf32> to vector<8x128xf32>
    %224 = arith.addf %221, %223 : vector<8x128xf32>
    %cst_101 = arith.constant 5.000000e-01 : f32
    %225 = vector.broadcast %cst_101 : f32 to vector<8x128xf32>
    %226 = arith.mulf %225, %224 : vector<8x128xf32>
    %cst_102 = arith.constant 0.707106769 : f32
    %227 = vector.broadcast %cst_102 : f32 to vector<8x128xf32>
    %228 = arith.mulf %224, %227 : vector<8x128xf32>
    %229 = math.erf %228 : vector<8x128xf32>
    %cst_103 = arith.constant 1.000000e+00 : f32
    %230 = vector.broadcast %cst_103 : f32 to vector<8x128xf32>
    %231 = arith.addf %230, %229 : vector<8x128xf32>
    %232 = arith.mulf %226, %231 : vector<8x128xf32>
    %233 = arith.truncf %232 : vector<8x128xf32> to vector<8x128xbf16>
    %c0_104 = arith.constant 0 : index
    %c0_105 = arith.constant 0 : index
    %234 = vector.load %arg26[%c0_104, %c0_105] : memref<128x256xbf16, #tpu.memory_space<vmem>>, vector<128x256xbf16>
    %cst_106 = arith.constant dense<0.000000e+00> : vector<8x256xf32>
    %235 = tpu.matmul %233, %234, %cst_106 {dimension_numbers = #tpu.dot_dimension_numbers<[1], [0], [0], [1], [0, 0, 1, 1], [], []>} : vector<8x128xbf16>, vector<128x256xbf16>, vector<8x256xf32> -> vector<8x256xf32>
    %c0_107 = arith.constant 0 : index
    %c0_108 = arith.constant 0 : index
    %236 = vector.load %arg27[%c0_107, %c0_108] : memref<1x256xf32, #tpu.memory_space<vmem>>, vector<1x256xf32>
    %237 = vector.broadcast %236 : vector<1x256xf32> to vector<8x256xf32>
    %238 = arith.addf %235, %237 : vector<8x256xf32>
    %cst_109 = arith.constant dense<0.000000e+00> : vector<8xf32>
    %239 = vector.multi_reduction <add>, %238, %cst_109 [1] : vector<8x256xf32> to vector<8xf32>
    %240 = vector.shape_cast %239 : vector<8xf32> to vector<8x1xf32>
    %cst_110 = arith.constant 2.560000e+02 : f32
    %241 = vector.broadcast %cst_110 : f32 to vector<8x1xf32>
    %242 = arith.divf %240, %241 : vector<8x1xf32>
    %243 = vector.broadcast %242 : vector<8x1xf32> to vector<8x256xf32>
    %244 = arith.subf %238, %243 : vector<8x256xf32>
    %245 = arith.mulf %244, %244 : vector<8x256xf32>
    %cst_111 = arith.constant dense<0.000000e+00> : vector<8xf32>
    %246 = vector.multi_reduction <add>, %245, %cst_111 [1] : vector<8x256xf32> to vector<8xf32>
    %247 = vector.shape_cast %246 : vector<8xf32> to vector<8x1xf32>
    %cst_112 = arith.constant 2.560000e+02 : f32
    %248 = vector.broadcast %cst_112 : f32 to vector<8x1xf32>
    %249 = arith.divf %247, %248 : vector<8x1xf32>
    %250 = vector.broadcast %242 : vector<8x1xf32> to vector<8x256xf32>
    %251 = arith.subf %238, %250 : vector<8x256xf32>
    %cst_113 = arith.constant 9.99999974E-6 : f32
    %252 = vector.broadcast %cst_113 : f32 to vector<8x1xf32>
    %253 = arith.addf %249, %252 : vector<8x1xf32>
    %254 = math.rsqrt %253 : vector<8x1xf32>
    %255 = vector.broadcast %254 : vector<8x1xf32> to vector<8x256xf32>
    %256 = arith.mulf %251, %255 : vector<8x256xf32>
    %c0_114 = arith.constant 0 : index
    %c0_115 = arith.constant 0 : index
    %257 = vector.load %arg28[%c0_114, %c0_115] : memref<1x256xf32, #tpu.memory_space<vmem>>, vector<1x256xf32>
    %258 = vector.broadcast %257 : vector<1x256xf32> to vector<8x256xf32>
    %259 = arith.mulf %256, %258 : vector<8x256xf32>
    %c0_116 = arith.constant 0 : index
    %c0_117 = arith.constant 0 : index
    %260 = vector.load %arg29[%c0_116, %c0_117] : memref<1x256xf32, #tpu.memory_space<vmem>>, vector<1x256xf32>
    %261 = vector.broadcast %260 : vector<1x256xf32> to vector<8x256xf32>
    %262 = arith.addf %259, %261 : vector<8x256xf32>
    %cst_118 = arith.constant 5.000000e-01 : f32
    %263 = vector.broadcast %cst_118 : f32 to vector<8x256xf32>
    %264 = arith.mulf %263, %262 : vector<8x256xf32>
    %cst_119 = arith.constant 0.707106769 : f32
    %265 = vector.broadcast %cst_119 : f32 to vector<8x256xf32>
    %266 = arith.mulf %262, %265 : vector<8x256xf32>
    %267 = math.erf %266 : vector<8x256xf32>
    %cst_120 = arith.constant 1.000000e+00 : f32
    %268 = vector.broadcast %cst_120 : f32 to vector<8x256xf32>
    %269 = arith.addf %268, %267 : vector<8x256xf32>
    %270 = arith.mulf %264, %269 : vector<8x256xf32>
    %271 = arith.truncf %270 : vector<8x256xf32> to vector<8x256xbf16>
    %c0_121 = arith.constant 0 : index
    %c0_122 = arith.constant 0 : index
    %272 = vector.load %arg30[%c0_121, %c0_122] : memref<256x256xbf16, #tpu.memory_space<vmem>>, vector<256x256xbf16>
    %cst_123 = arith.constant dense<0.000000e+00> : vector<8x256xf32>
    %273 = tpu.matmul %271, %272, %cst_123 {dimension_numbers = #tpu.dot_dimension_numbers<[1], [0], [0], [1], [0, 0, 1, 1], [], []>} : vector<8x256xbf16>, vector<256x256xbf16>, vector<8x256xf32> -> vector<8x256xf32>
    %c0_124 = arith.constant 0 : index
    %c0_125 = arith.constant 0 : index
    %274 = vector.load %arg31[%c0_124, %c0_125] : memref<1x256xf32, #tpu.memory_space<vmem>>, vector<1x256xf32>
    %275 = vector.broadcast %274 : vector<1x256xf32> to vector<8x256xf32>
    %276 = arith.addf %273, %275 : vector<8x256xf32>
    %cst_126 = arith.constant dense<0.000000e+00> : vector<8xf32>
    %277 = vector.multi_reduction <add>, %276, %cst_126 [1] : vector<8x256xf32> to vector<8xf32>
    %278 = vector.shape_cast %277 : vector<8xf32> to vector<8x1xf32>
    %cst_127 = arith.constant 2.560000e+02 : f32
    %279 = vector.broadcast %cst_127 : f32 to vector<8x1xf32>
    %280 = arith.divf %278, %279 : vector<8x1xf32>
    %281 = vector.broadcast %280 : vector<8x1xf32> to vector<8x256xf32>
    %282 = arith.subf %276, %281 : vector<8x256xf32>
    %283 = arith.mulf %282, %282 : vector<8x256xf32>
    %cst_128 = arith.constant dense<0.000000e+00> : vector<8xf32>
    %284 = vector.multi_reduction <add>, %283, %cst_128 [1] : vector<8x256xf32> to vector<8xf32>
    %285 = vector.shape_cast %284 : vector<8xf32> to vector<8x1xf32>
    %cst_129 = arith.constant 2.560000e+02 : f32
    %286 = vector.broadcast %cst_129 : f32 to vector<8x1xf32>
    %287 = arith.divf %285, %286 : vector<8x1xf32>
    %288 = vector.broadcast %280 : vector<8x1xf32> to vector<8x256xf32>
    %289 = arith.subf %276, %288 : vector<8x256xf32>
    %cst_130 = arith.constant 9.99999974E-6 : f32
    %290 = vector.broadcast %cst_130 : f32 to vector<8x1xf32>
    %291 = arith.addf %287, %290 : vector<8x1xf32>
    %292 = math.rsqrt %291 : vector<8x1xf32>
    %293 = vector.broadcast %292 : vector<8x1xf32> to vector<8x256xf32>
    %294 = arith.mulf %289, %293 : vector<8x256xf32>
    %c0_131 = arith.constant 0 : index
    %c0_132 = arith.constant 0 : index
    %295 = vector.load %arg32[%c0_131, %c0_132] : memref<1x256xf32, #tpu.memory_space<vmem>>, vector<1x256xf32>
    %296 = vector.broadcast %295 : vector<1x256xf32> to vector<8x256xf32>
    %297 = arith.mulf %294, %296 : vector<8x256xf32>
    %c0_133 = arith.constant 0 : index
    %c0_134 = arith.constant 0 : index
    %298 = vector.load %arg33[%c0_133, %c0_134] : memref<1x256xf32, #tpu.memory_space<vmem>>, vector<1x256xf32>
    %299 = vector.broadcast %298 : vector<1x256xf32> to vector<8x256xf32>
    %300 = arith.addf %297, %299 : vector<8x256xf32>
    %cst_135 = arith.constant 5.000000e-01 : f32
    %301 = vector.broadcast %cst_135 : f32 to vector<8x256xf32>
    %302 = arith.mulf %301, %300 : vector<8x256xf32>
    %cst_136 = arith.constant 0.707106769 : f32
    %303 = vector.broadcast %cst_136 : f32 to vector<8x256xf32>
    %304 = arith.mulf %300, %303 : vector<8x256xf32>
    %305 = math.erf %304 : vector<8x256xf32>
    %cst_137 = arith.constant 1.000000e+00 : f32
    %306 = vector.broadcast %cst_137 : f32 to vector<8x256xf32>
    %307 = arith.addf %306, %305 : vector<8x256xf32>
    %308 = arith.mulf %302, %307 : vector<8x256xf32>
    %309 = arith.truncf %308 : vector<8x256xf32> to vector<8x256xbf16>
    %c0_138 = arith.constant 0 : index
    %c0_139 = arith.constant 0 : index
    %310 = vector.load %arg34[%c0_138, %c0_139] : memref<256x128xbf16, #tpu.memory_space<vmem>>, vector<256x128xbf16>
    %cst_140 = arith.constant dense<0.000000e+00> : vector<8x128xf32>
    %311 = tpu.matmul %309, %310, %cst_140 {dimension_numbers = #tpu.dot_dimension_numbers<[1], [0], [0], [1], [0, 0, 1, 1], [], []>} : vector<8x256xbf16>, vector<256x128xbf16>, vector<8x128xf32> -> vector<8x128xf32>
    %c0_141 = arith.constant 0 : index
    %c0_142 = arith.constant 0 : index
    %312 = vector.load %arg35[%c0_141, %c0_142] : memref<1x128xf32, #tpu.memory_space<vmem>>, vector<1x128xf32>
    %313 = vector.broadcast %312 : vector<1x128xf32> to vector<8x128xf32>
    %314 = arith.addf %311, %313 : vector<8x128xf32>
    %c0_143 = arith.constant 0 : index
    %c0_144 = arith.constant 0 : index
    %315 = vector.load %arg37[%c0_143, %c0_144] : memref<8x128xf32, #tpu.memory_space<vmem>>, vector<8x128xf32>
    tpu.vector_store %arg37[%c0_143, %c0_144], %314 {strides = array<i32>} : memref<8x128xf32, #tpu.memory_space<vmem>>, vector<8x128xf32>,
    return
  }
  func.func @transform_0(%arg0: i32) -> (i32, i32) {
    %c0_i32 = arith.constant 0 : i32
    %c0_i32_0 = arith.constant 0 : i32
    return %arg0, %c0_i32 : i32, i32
  }
  func.func @transform_1(%arg0: i32) -> (i32, i32) {
    %c0_i32 = arith.constant 0 : i32
    %c0_i32_0 = arith.constant 0 : i32
    %c0_i32_1 = arith.constant 0 : i32
    return %c0_i32, %c0_i32_0 : i32, i32
  }
  func.func @transform_2(%arg0: i32) -> (i32, i32) {
    %c0_i32 = arith.constant 0 : i32
    %c0_i32_0 = arith.constant 0 : i32
    %c0_i32_1 = arith.constant 0 : i32
    return %c0_i32, %c0_i32_0 : i32, i32
  }
  func.func @transform_3(%arg0: i32) -> (i32, i32) {
    %c0_i32 = arith.constant 0 : i32
    %c0_i32_0 = arith.constant 0 : i32
    %c0_i32_1 = arith.constant 0 : i32
    return %c0_i32, %c0_i32_0 : i32, i32
  }
  func.func @transform_4(%arg0: i32) -> (i32, i32) {
    %c0_i32 = arith.constant 0 : i32
    %c0_i32_0 = arith.constant 0 : i32
    %c0_i32_1 = arith.constant 0 : i32
    return %c0_i32, %c0_i32_0 : i32, i32
  }
  func.func @transform_5(%arg0: i32) -> (i32, i32) {
    %c0_i32 = arith.constant 0 : i32
    %c0_i32_0 = arith.constant 0 : i32
    %c0_i32_1 = arith.constant 0 : i32
    return %c0_i32, %c0_i32_0 : i32, i32
  }
  func.func @transform_6(%arg0: i32) -> (i32, i32) {
    %c0_i32 = arith.constant 0 : i32
    %c0_i32_0 = arith.constant 0 : i32
    %c0_i32_1 = arith.constant 0 : i32
    return %c0_i32, %c0_i32_0 : i32, i32
  }
  func.func @transform_7(%arg0: i32) -> (i32, i32) {
    %c0_i32 = arith.constant 0 : i32
    %c0_i32_0 = arith.constant 0 : i32
    %c0_i32_1 = arith.constant 0 : i32
    return %c0_i32, %c0_i32_0 : i32, i32
  }
  func.func @transform_8(%arg0: i32) -> (i32, i32) {
    %c0_i32 = arith.constant 0 : i32
    %c0_i32_0 = arith.constant 0 : i32
    %c0_i32_1 = arith.constant 0 : i32
    return %c0_i32, %c0_i32_0 : i32, i32
  }
  func.func @transform_9(%arg0: i32) -> (i32, i32) {
    %c0_i32 = arith.constant 0 : i32
    %c0_i32_0 = arith.constant 0 : i32
    %c0_i32_1 = arith.constant 0 : i32
    return %c0_i32, %c0_i32_0 : i32, i32
  }
  func.func @transform_10(%arg0: i32) -> (i32, i32) {
    %c0_i32 = arith.constant 0 : i32
    %c0_i32_0 = arith.constant 0 : i32
    %c0_i32_1 = arith.constant 0 : i32
    return %c0_i32, %c0_i32_0 : i32, i32
  }
  func.func @transform_11(%arg0: i32) -> (i32, i32) {
    %c0_i32 = arith.constant 0 : i32
    %c0_i32_0 = arith.constant 0 : i32
    %c0_i32_1 = arith.constant 0 : i32
    return %c0_i32, %c0_i32_0 : i32, i32
  }
  func.func @transform_12(%arg0: i32) -> (i32, i32) {
    %c0_i32 = arith.constant 0 : i32
    %c0_i32_0 = arith.constant 0 : i32
    %c0_i32_1 = arith.constant 0 : i32
    return %c0_i32, %c0_i32_0 : i32, i32
  }
  func.func @transform_13(%arg0: i32) -> (i32, i32) {
    %c0_i32 = arith.constant 0 : i32
    %c0_i32_0 = arith.constant 0 : i32
    %c0_i32_1 = arith.constant 0 : i32
    return %c0_i32, %c0_i32_0 : i32, i32
  }
  func.func @transform_14(%arg0: i32) -> (i32, i32) {
    %c0_i32 = arith.constant 0 : i32
    %c0_i32_0 = arith.constant 0 : i32
    %c0_i32_1 = arith.constant 0 : i32
    return %c0_i32, %c0_i32_0 : i32, i32
  }
  func.func @transform_15(%arg0: i32) -> (i32, i32) {
    %c0_i32 = arith.constant 0 : i32
    %c0_i32_0 = arith.constant 0 : i32
    %c0_i32_1 = arith.constant 0 : i32
    return %c0_i32, %c0_i32_0 : i32, i32
  }
  func.func @transform_16(%arg0: i32) -> (i32, i32) {
    %c0_i32 = arith.constant 0 : i32
    %c0_i32_0 = arith.constant 0 : i32
    %c0_i32_1 = arith.constant 0 : i32
    return %c0_i32, %c0_i32_0 : i32, i32
  }
  func.func @transform_17(%arg0: i32) -> (i32, i32) {
    %c0_i32 = arith.constant 0 : i32
    %c0_i32_0 = arith.constant 0 : i32
    %c0_i32_1 = arith.constant 0 : i32
    return %c0_i32, %c0_i32_0 : i32, i32
  }
  func.func @transform_18(%arg0: i32) -> (i32, i32) {
    %c0_i32 = arith.constant 0 : i32
    %c0_i32_0 = arith.constant 0 : i32
    %c0_i32_1 = arith.constant 0 : i32
    return %c0_i32, %c0_i32_0 : i32, i32
  }
  func.func @transform_19(%arg0: i32) -> (i32, i32) {
    %c0_i32 = arith.constant 0 : i32
    %c0_i32_0 = arith.constant 0 : i32
    %c0_i32_1 = arith.constant 0 : i32
    return %c0_i32, %c0_i32_0 : i32, i32
  }
  func.func @transform_20(%arg0: i32) -> (i32, i32) {
    %c0_i32 = arith.constant 0 : i32
    %c0_i32_0 = arith.constant 0 : i32
    %c0_i32_1 = arith.constant 0 : i32
    return %c0_i32, %c0_i32_0 : i32, i32
  }
  func.func @transform_21(%arg0: i32) -> (i32, i32) {
    %c0_i32 = arith.constant 0 : i32
    %c0_i32_0 = arith.constant 0 : i32
    %c0_i32_1 = arith.constant 0 : i32
    return %c0_i32, %c0_i32_0 : i32, i32
  }
  func.func @transform_22(%arg0: i32) -> (i32, i32) {
    %c0_i32 = arith.constant 0 : i32
    %c0_i32_0 = arith.constant 0 : i32
    %c0_i32_1 = arith.constant 0 : i32
    return %c0_i32, %c0_i32_0 : i32, i32
  }
  func.func @transform_23(%arg0: i32) -> (i32, i32) {
    %c0_i32 = arith.constant 0 : i32
    %c0_i32_0 = arith.constant 0 : i32
    %c0_i32_1 = arith.constant 0 : i32
    return %c0_i32, %c0_i32_0 : i32, i32
  }
  func.func @transform_24(%arg0: i32) -> (i32, i32) {
    %c0_i32 = arith.constant 0 : i32
    %c0_i32_0 = arith.constant 0 : i32
    %c0_i32_1 = arith.constant 0 : i32
    return %c0_i32, %c0_i32_0 : i32, i32
  }
  func.func @transform_25(%arg0: i32) -> (i32, i32) {
    %c0_i32 = arith.constant 0 : i32
    %c0_i32_0 = arith.constant 0 : i32
    %c0_i32_1 = arith.constant 0 : i32
    return %c0_i32, %c0_i32_0 : i32, i32
  }
  func.func @transform_26(%arg0: i32) -> (i32, i32) {
    %c0_i32 = arith.constant 0 : i32
    %c0_i32_0 = arith.constant 0 : i32
    %c0_i32_1 = arith.constant 0 : i32
    return %c0_i32, %c0_i32_0 : i32, i32
  }
  func.func @transform_27(%arg0: i32) -> (i32, i32) {
    %c0_i32 = arith.constant 0 : i32
    %c0_i32_0 = arith.constant 0 : i32
    %c0_i32_1 = arith.constant 0 : i32
    return %c0_i32, %c0_i32_0 : i32, i32
  }
  func.func @transform_28(%arg0: i32) -> (i32, i32) {
    %c0_i32 = arith.constant 0 : i32
    %c0_i32_0 = arith.constant 0 : i32
    %c0_i32_1 = arith.constant 0 : i32
    return %c0_i32, %c0_i32_0 : i32, i32
  }
  func.func @transform_29(%arg0: i32) -> (i32, i32) {
    %c0_i32 = arith.constant 0 : i32
    %c0_i32_0 = arith.constant 0 : i32
    %c0_i32_1 = arith.constant 0 : i32
    return %c0_i32, %c0_i32_0 : i32, i32
  }
  func.func @transform_30(%arg0: i32) -> (i32, i32) {
    %c0_i32 = arith.constant 0 : i32
    %c0_i32_0 = arith.constant 0 : i32
    %c0_i32_1 = arith.constant 0 : i32
    return %c0_i32, %c0_i32_0 : i32, i32
  }
  func.func @transform_31(%arg0: i32) -> (i32, i32) {
    %c0_i32 = arith.constant 0 : i32
    %c0_i32_0 = arith.constant 0 : i32
    %c0_i32_1 = arith.constant 0 : i32
    return %c0_i32, %c0_i32_0 : i32, i32
  }
  func.func @transform_32(%arg0: i32) -> (i32, i32) {
    %c0_i32 = arith.constant 0 : i32
    %c0_i32_0 = arith.constant 0 : i32
    %c0_i32_1 = arith.constant 0 : i32
    return %c0_i32, %c0_i32_0 : i32, i32
  }
  func.func @transform_33(%arg0: i32) -> (i32, i32) {
    %c0_i32 = arith.constant 0 : i32
    %c0_i32_0 = arith.constant 0 : i32
    %c0_i32_1 = arith.constant 0 : i32
    return %c0_i32, %c0_i32_0 : i32, i32
  }
  func.func @transform_34(%arg0: i32) -> (i32, i32) {
    %c0_i32 = arith.constant 0 : i32
    %c0_i32_0 = arith.constant 0 : i32
    %c0_i32_1 = arith.constant 0 : i32
    return %c0_i32, %c0_i32_0 : i32, i32
  }
  func.func @transform_35(%arg0: i32) -> (i32, i32) {
    %c0_i32 = arith.constant 0 : i32
    %c0_i32_0 = arith.constant 0 : i32
    return %arg0, %c0_i32 : i32, i32
  }
  func.func @transform_36(%arg0: i32) -> (i32, i32) {
    %c0_i32 = arith.constant 0 : i32
    %c0_i32_0 = arith.constant 0 : i32
    return %arg0, %c0_i32 : i32, i32
  }
}

</mosaic_0001>

<bundles_post_ra>
// kernel: brain_mlp_forward.1
= control target key start
LH: loop header
LB: loop body
LE: loop exit
PB: predicated region body
PF: predicated region fallthrough
CT: control target
= control target key end

     0   :  { %s5344_s6 = smov 1   ;;  %s5345_s10 = smov 2   ;;  %s5975_s0 = inlined_call_operand.smem [shape: u32[37], index: -1, kind: input, shape index: {}] }
   0x1   :  { %s5405_s5 = sld [smem:[%s5975_s0]]   ;;  %s5346_s14 = smov 3  }
   0x2   :  { %s5410_s9 = sld [smem:[%s5975_s0 + %s5344_s6]]   ;;  %s5347_s18 = smov 4  }
   0x3   :  { %s5415_s13 = sld [smem:[%s5975_s0 + %s5345_s10]]   ;;  %s5348_s22 = smov 5  }
   0x4   :  { %s5420_s17 = sld [smem:[%s5975_s0 + %s5346_s14]]   ;;  %s5349_s26 = smov 6  }
   0x5   :  { %s5425_s21 = sld [smem:[%s5975_s0 + %s5347_s18]]   ;;  %s5350_s30 = smov 7  }
   0x6   :  { %s5430_s25 = sld [smem:[%s5975_s0 + %s5348_s22]]   ;;  %s5351_s4 = smov 8  }
   0x7   :  { %s5435_s29 = sld [smem:[%s5975_s0 + %s5349_s26]]   ;;  %s5352_s10 = smov 9  }
   0x8   :  { %s5440_s3 = sld [smem:[%s5975_s0 + %s5350_s30]]   ;;  %s5353_s15 = smov 10  }
   0x9   :  { %s5445_s8 = sld [smem:[%s5975_s0 + %s5351_s4]]   ;;  %s5354_s20 = smov 11  }
   0xa   :  { %s5450_s14 = sld [smem:[%s5975_s0 + %s5352_s10]]   ;;  %s5355_s26 = smov 12  }
   0xb   :  { %s5455_s19 = sld [smem:[%s5975_s0 + %s5353_s15]]   ;;  %s5356_s1 = smov 13  }
   0xc   :  { %s5460_s24 = sld [smem:[%s5975_s0 + %s5354_s20]]   ;;  %s5357_s7 = smov 14  }
   0xd   :  { %s5465_s30 = sld [smem:[%s5975_s0 + %s5355_s26]]   ;;  %s5358_s15 = smov 15  }
   0xe   :  { %s5470_s6 = sld [smem:[%s5975_s0 + %s5356_s1]]   ;;  %s5359_s22 = smov 16  }
   0xf   :  { %5976 = sst [smem:[#allocation27_spill]] %s5445_s8  ;;  %s5360_s28 = smov 17  }
  0x10   :  { %s5475_s12 = sld [smem:[%s5975_s0 + %s5357_s7]]   ;;  %s5361_s7 = smov 18  }
  0x11   :  { %5977 = sst [smem:[#allocation28_spill]] %s5455_s19 }
  0x12   :  { %5978 = sst [smem:[#allocation29_spill]] %s5460_s24 }
  0x13   :  { %5979 = sst [smem:[#allocation30_spill]] %s5465_s30 }
  0x14   :  { %s5480_s20 = sld [smem:[%s5975_s0 + %s5358_s15]]   ;;  %s5362_s15 = smov 19  }
  0x15   :  { %s5485_s27 = sld [smem:[%s5975_s0 + %s5359_s22]]   ;;  %s5363_s22 = smov 20  }
  0x16   :  { %5980 = sst [smem:[#allocation31_spill]] %s5475_s12 }
  0x17   :  { %s5490_s4 = sld [smem:[%s5975_s0 + %s5360_s28]]   ;;  %s5364_s28 = smov 21  }
  0x18   :  { %s5495_s12 = sld [smem:[%s5975_s0 + %s5361_s7]]   ;;  %s5365_s7 = smov 22  }
  0x19   :  { %s5510_s30 = sld [smem:[%s5975_s0 + %s5364_s28]]   ;;  %s5368_s28 = smov 25  }
  0x1a   :  { %5981 = sst [smem:[#allocation32_spill]] %s5480_s20 }
  0x1b   :  { %5982 = sst [smem:[#allocation33_spill]] %s5485_s27 }
  0x1c   :  { %s5500_s20 = sld [smem:[%s5975_s0 + %s5362_s15]]   ;;  %s5366_s15 = smov 23  }
  0x1d   :  { %s5505_s27 = sld [smem:[%s5975_s0 + %s5363_s22]]   ;;  %s5367_s22 = smov 24  }
  0x1e   :  { %5983 = sst [smem:[#allocation34_spill]] %s5495_s12 }
  0x1f   :  { %s5515_s12 = sld [smem:[%s5975_s0 + %s5365_s7]]   ;;  %s5369_s7 = smov 26  }
  0x20   :  { %s5530_s24 = sld [smem:[%s5975_s0 + %s5368_s28]]   ;;  %s5372_s28 = smov 29  }
  0x21   :  { %s5550_s19 = sld [smem:[%s5975_s0 + %s5372_s28]]   ;;  %s5376_s28 = smov 33  }
  0x22   :  { %5984 = sst [smem:[#allocation35_spill]] %s5500_s20 }
  0x23   :  { %5985 = sst [smem:[#allocation36_spill]] %s5505_s27 }
  0x24   :  { %s5520_s20 = sld [smem:[%s5975_s0 + %s5366_s15]]   ;;  %s5370_s15 = smov 27  }
  0x25   :  { %5986 = sst [smem:[#allocation37_spill]] %s5515_s12 }
  0x26   :  { %s5525_s27 = sld [smem:[%s5975_s0 + %s5367_s22]]   ;;  %s5371_s22 = smov 28  }
  0x27   :  { %s5535_s12 = sld [smem:[%s5975_s0 + %s5369_s7]]   ;;  %s5373_s7 = smov 30  }
  0x28   :  { %s5570_s8 = sld [smem:[%s5975_s0 + %s5376_s28]]  }
  0x2a   :  { %5987 = sst [smem:[#allocation38_spill]] %s5520_s20 }
  0x2b   :  { %s5540_s20 = sld [smem:[%s5975_s0 + %s5370_s15]]   ;;  %s5374_s15 = smov 31  }
  0x2c   :  { %5988 = sst [smem:[#allocation39_spill]] %s5525_s27 }
  0x2d   :  { %5989 = sst [smem:[#allocation40_spill]] %s5535_s12 }
  0x2e   :  { %s5545_s27 = sld [smem:[%s5975_s0 + %s5371_s22]]   ;;  %s5375_s22 = smov 32  }
  0x2f   :  { %s5555_s12 = sld [smem:[%s5975_s0 + %s5373_s7]]   ;;  %s5377_s7 = smov 34  }
  0x31   :  { %5990 = sst [smem:[#allocation41_spill]] %s5540_s20 }
  0x32   :  { %s5560_s20 = sld [smem:[%s5975_s0 + %s5374_s15]]   ;;  %s5378_s15 = smov 35  }
  0x34   :  { %5991 = sst [smem:[#allocation42_spill]] %s5545_s27 }
  0x35   :  { %5992 = sst [smem:[#allocation43_spill]] %s5555_s12 }
  0x36   :  { %s5565_s27 = sld [smem:[%s5975_s0 + %s5375_s22]]   ;;  %s5379_s22 = smov 36  }
  0x37   :  { %s5575_s12 = sld [smem:[%s5975_s0 + %s5377_s7]]  }
  0x38   :  { %5993 = sst [smem:[#allocation44_spill]] %s5560_s20 }
  0x39   :  { %s5580_s20 = sld [smem:[%s5975_s0 + %s5378_s15]]  }
  0x3c   :  { %5994 = sst [smem:[#allocation45_spill]] %s5565_s27 }
  0x3d   :  { %s5585_s27 = sld [smem:[%s5975_s0 + %s5379_s22]]  }
  0x3e   :  { %79 = vsyncpa [#allocation3], 0 }
  0x3f   :  { %80 = vsyncpa [#allocation6], 0 }
  0x40   :  { %81 = vsyncpa [#allocation9], 0 }
  0x41   :  { %82 = vsyncpa [#allocation12], 0 }
  0x42   :  { %83 = vsyncpa [#allocation15], 0 }
  0x43   :  { %84 = vsyncpa [#allocation4], 0 }
  0x44   :  { %85 = vsyncpa [#allocation19], 0  ;;  %s111_s28 = sshll.u32 %s5430_s25, 4  ;;  %s5380_s1 = smov [#allocation5]   ;;  %s112_s28 = int_to_ptr.hbm [resolvable:$true] %s111_s28 }
  0x45   :  { %s113_s2 = sshll.u32 %s5380_s1, 4  ;;  %s149_s7 = sshll.u32 %s5470_s6, 4  ;;  %s114_s2 = int_to_ptr.vmem [resolvable:$true] %s113_s2  ;;  %s150_s7 = int_to_ptr.hbm [resolvable:$true] %s149_s7 }
  0x46   :  { %s5066_s10 = sshra.s32 %s112_s28, 4  ;;  %s5070_s11 = scalar_lea.hbm %s5430_s25, 256  ;;  %s5067_s10 = int_to_ptr.hbm [resolvable:$true] %s5066_s10 }
  0x47   :  { %s5068_s0 = scalar_lea.hbm %s5067_s10, 256  ;;  %p5071_p1 = scmp.lt.s32.totalorder %s5067_s10, %s5430_s25 }
  0x48   :  { %p5069_p0 = scmp.ne.s32.totalorder %s5067_s10, %s5068_s0  ;;  %p5072_p2 = scmp.lt.s32.totalorder %s5070_s11, %s5068_s0 }
  0x4a   :  { %p5073_p3 = por %p5072_p2, %p5071_p1 }
  0x4c   :  { %p5074_p4 = pnand %p5073_p3, %p5069_p0 }
  0x4e   :  { %5077 = shalt.err (!%p5074_p4)
}
  0x4f   :  { %s5381_s15 = smov 128   ;;  %s5382_s16 = smov 8  }
  0x50   :  { %119 = dma.hbm_to_vmem [thread:$0]  %s112_s28, 4096, %s114_s2, [#allocation6], %s5381_s15, %s5381_s15, %s5382_s16  }
  0x51   :  { %s5383_s18 = smov [#allocation8]   ;;  %s187_s23 = sshll.u32 %s5510_s30, 4  ;;  %s5595_s23 = int_to_ptr.hbm [resolvable:$true] %s187_s23 }
  0x52   :  { %s151_s22 = sshll.u32 %s5383_s18, 4  ;;  %s5090_s25 = sshra.s32 %s150_s7, 4  ;;  %s152_s22 = int_to_ptr.vmem [resolvable:$true] %s151_s22  ;;  %s5091_s25 = int_to_ptr.hbm [resolvable:$true] %s5090_s25 }
  0x53   :  { %s5092_s26 = scalar_lea.hbm %s5091_s25, 256  ;;  %s5094_s1 = scalar_lea.hbm %s5470_s6, 256 }
  0x54   :  { %p5093_p5 = scmp.ne.s32.totalorder %s5091_s25, %s5092_s26  ;;  %p5095_p6 = scmp.lt.s32.totalorder %s5091_s25, %s5470_s6 }
  0x55   :  { %p5096_p7 = scmp.lt.s32.totalorder %s5094_s1, %s5092_s26 }
  0x57   :  { %p5097_p8 = por %p5096_p7, %p5095_p6 }
  0x59   :  { %p5098_p9 = pnand %p5097_p8, %p5093_p5 }
  0x5b   :  { %5101 = shalt.err (!%p5098_p9)
}
  0x5c   :  { %157 = dma.hbm_to_vmem [thread:$0]  %s150_s7, 4096, %s152_s22, [#allocation9], %s5381_s15, %s5381_s15, %s5382_s16  }
  0x5d   :  { %s5384_s28 = smov [#allocation11]   ;;  %s225_s10 = sshll.u32 %s5550_s19, 4  ;;  %s226_s10 = int_to_ptr.hbm [resolvable:$true] %s225_s10 }
  0x5e   :  { %s189_s2 = sshll.u32 %s5384_s28, 4  ;;  %s5114_s0 = sshra.s32 %s5595_s23, 4  ;;  %s190_s2 = int_to_ptr.vmem [resolvable:$true] %s189_s2  ;;  %s5115_s0 = int_to_ptr.hbm [resolvable:$true] %s5114_s0 }
  0x5f   :  { %s5116_s11 = scalar_lea.hbm %s5115_s0, 128  ;;  %s5118_s6 = scalar_lea.hbm %s5510_s30, 128 }
  0x60   :  { %p5117_p10 = scmp.ne.s32.totalorder %s5115_s0, %s5116_s11  ;;  %p5119_p11 = scmp.lt.s32.totalorder %s5115_s0, %s5510_s30 }
  0x61   :  { %p5120_p12 = scmp.lt.s32.totalorder %s5118_s6, %s5116_s11 }
  0x63   :  { %p5121_p13 = por %p5120_p12, %p5119_p11 }
  0x65   :  { %p5122_p0 = pnand %p5121_p13, %p5117_p10 }
  0x67   :  { %5125 = shalt.err (!%p5122_p0)
}
  0x68   :  { %s5385_s18 = smov 64   ;;  %s5386_s7 = smov 4  }
  0x69   :  { %195 = dma.hbm_to_vmem [thread:$0]  %s5595_s23, 2048, %s190_s2, [#allocation12], %s5385_s18, %s5385_s18, %s5386_s7  }
  0x6a   :  { %s5387_s22 = smov [#allocation14]   ;;  %s92_s26 = sshll.u32 %s5410_s9, 4  ;;  %s5611_s26 = int_to_ptr.hbm [resolvable:$true] %s92_s26 }
  0x6b   :  { %s227_s25 = sshll.u32 %s5387_s22, 4  ;;  %s5138_s30 = sshra.s32 %s226_s10, 4  ;;  %s228_s25 = int_to_ptr.vmem [resolvable:$true] %s227_s25  ;;  %s5139_s30 = int_to_ptr.hbm [resolvable:$true] %s5138_s30 }
  0x6c   :  { %s5140_s1 = scalar_lea.hbm %s5139_s30, 256  ;;  %s5142_s28 = scalar_lea.hbm %s5550_s19, 256 }
  0x6d   :  { %p5141_p1 = scmp.ne.s32.totalorder %s5139_s30, %s5140_s1  ;;  %p5143_p2 = scmp.lt.s32.totalorder %s5139_s30, %s5550_s19 }
  0x6e   :  { %p5144_p3 = scmp.lt.s32.totalorder %s5142_s28, %s5140_s1 }
  0x70   :  { %p5145_p4 = por %p5144_p3, %p5143_p2 }
  0x72   :  { %p5146_p5 = pnand %p5145_p4, %p5141_p1 }
  0x74   :  { %5149 = shalt.err (!%p5146_p5)
}
  0x75   :  { %233 = dma.hbm_to_vmem [thread:$0]  %s226_s10, 4096, %s228_s25, [#allocation15], %s5381_s15, %s5381_s15, %s5382_s16  }
  0x76   :  { %s130_s23 = sshll.u32 %s5450_s14, 4  ;;  %s5388_s2 = smov [#allocation2]   ;;  %s5619_s23 = int_to_ptr.hbm [resolvable:$true] %s130_s23 }
  0x77   :  { %s94_s0 = sshll.u32 %s5388_s2, 4  ;;  %s5162_s11 = sshra.s32 %s5611_s26, 4  ;;  %s95_s0 = int_to_ptr.vmem [resolvable:$true] %s94_s0  ;;  %s5163_s11 = int_to_ptr.hbm [resolvable:$true] %s5162_s11 }
  0x78   :  { %s5164_s19 = scalar_lea.hbm %s5163_s11, 512  ;;  %s5166_s6 = scalar_lea.hbm %s5410_s9, 512 }
  0x79   :  { %p5165_p6 = scmp.ne.s32.totalorder %s5163_s11, %s5164_s19  ;;  %p5167_p7 = scmp.lt.s32.totalorder %s5163_s11, %s5410_s9 }
  0x7a   :  { %p5168_p8 = scmp.lt.s32.totalorder %s5166_s6, %s5164_s19 }
  0x7c   :  { %p5169_p9 = por %p5168_p8, %p5167_p7 }
  0x7e   :  { %p5170_p10 = pnand %p5169_p9, %p5165_p6 }
  0x80   :  { %5173 = shalt.err (!%p5170_p10)
}
  0x81   :  { %100 = dma.hbm_to_vmem [thread:$0]  %s5611_s26, 8192, %s95_s0, [#allocation3], %s5381_s15, %s5381_s15, %s5382_s16  }
  0x82   :  { %s5389_s10 = smov [#allocation7]   ;;  %s168_s25 = sshll.u32 %s5490_s4, 4  ;;  %s5629_s25 = int_to_ptr.hbm [resolvable:$true] %s168_s25 }
  0x83   :  { %s132_s22 = sshll.u32 %s5389_s10, 4  ;;  %s5186_s9 = sshra.s32 %s5619_s23, 4  ;;  %s133_s22 = int_to_ptr.vmem [resolvable:$true] %s132_s22  ;;  %s5187_s9 = int_to_ptr.hbm [resolvable:$true] %s5186_s9 }
  0x84   :  { %s5188_s30 = scalar_lea.hbm %s5187_s9, 256  ;;  %s5190_s1 = scalar_lea.hbm %s5450_s14, 256 }
  0x85   :  { %p5189_p11 = scmp.ne.s32.totalorder %s5187_s9, %s5188_s30  ;;  %p5191_p12 = scmp.lt.s32.totalorder %s5187_s9, %s5450_s14 }
  0x86   :  { %p5192_p13 = scmp.lt.s32.totalorder %s5190_s1, %s5188_s30 }
  0x88   :  { %p5193_p0 = por %p5192_p13, %p5191_p12 }
  0x8a   :  { %p5194_p1 = pnand %p5193_p0, %p5189_p11 }
  0x8c   :  { %5197 = shalt.err (!%p5194_p1)
}
  0x8d   :  { %138 = dma.hbm_to_vmem [thread:$0]  %s5619_s23, 4096, %s133_s22, [#allocation6], %s5381_s15, %s5381_s15, %s5382_s16  }
  0x8e   :  { %s206_s26 = sshll.u32 %s5530_s24, 4  ;;  %s5390_s28 = smov [#allocation10]   ;;  %s5639_s26 = int_to_ptr.hbm [resolvable:$true] %s206_s26 }
  0x8f   :  { %s170_s2 = sshll.u32 %s5390_s28, 4  ;;  %s5210_s14 = sshra.s32 %s5629_s25, 4  ;;  %s171_s2 = int_to_ptr.vmem [resolvable:$true] %s170_s2  ;;  %s5211_s14 = int_to_ptr.hbm [resolvable:$true] %s5210_s14 }
  0x90   :  { %s5212_s0 = scalar_lea.hbm %s5211_s14, 256  ;;  %s5214_s11 = scalar_lea.hbm %s5490_s4, 256 }
  0x91   :  { %p5213_p2 = scmp.ne.s32.totalorder %s5211_s14, %s5212_s0  ;;  %p5215_p3 = scmp.lt.s32.totalorder %s5211_s14, %s5490_s4 }
  0x92   :  { %p5216_p4 = scmp.lt.s32.totalorder %s5214_s11, %s5212_s0 }
  0x94   :  { %p5217_p5 = por %p5216_p4, %p5215_p3 }
  0x96   :  { %p5218_p6 = pnand %p5217_p5, %p5213_p2 }
  0x98   :  { %5221 = shalt.err (!%p5218_p6)
}
  0x99   :  { %176 = dma.hbm_to_vmem [thread:$0]  %s5629_s25, 4096, %s171_s2, [#allocation9], %s5381_s15, %s5381_s15, %s5382_s16  }
  0x9a   :  { %s5391_s23 = smov [#allocation13]   ;;  %s244_s6 = sshll.u32 %s5570_s8, 4  ;;  %s245_s6 = int_to_ptr.hbm [resolvable:$true] %s244_s6 }
  0x9b   :  { %s208_s19 = sshll.u32 %s5391_s23, 4  ;;  %s5234_s10 = sshra.s32 %s5639_s26, 4  ;;  %s209_s19 = int_to_ptr.vmem [resolvable:$true] %s208_s19  ;;  %s5235_s10 = int_to_ptr.hbm [resolvable:$true] %s5234_s10 }
  0x9c   :  { %s5236_s4 = scalar_lea.hbm %s5235_s10, 128  ;;  %s5238_s22 = scalar_lea.hbm %s5530_s24, 128 }
  0x9d   :  { %p5237_p7 = scmp.ne.s32.totalorder %s5235_s10, %s5236_s4  ;;  %p5239_p8 = scmp.lt.s32.totalorder %s5235_s10, %s5530_s24 }
  0x9e   :  { %p5240_p9 = scmp.lt.s32.totalorder %s5238_s22, %s5236_s4 }
  0xa0   :  { %p5241_p10 = por %p5240_p9, %p5239_p8 }
  0xa2   :  { %p5242_p11 = pnand %p5241_p10, %p5237_p7 }
  0xa4   :  { %5245 = shalt.err (!%p5242_p11)
}
  0xa5   :  { %214 = dma.hbm_to_vmem [thread:$0]  %s5639_s26, 2048, %s209_s19, [#allocation12], %s5381_s15, %s5381_s15, %s5382_s16  }
  0xa6   :  { %s5392_s25 = smov [#allocation16]   ;;  %s5258_s30 = sshra.s32 %s245_s6, 4  ;;  %s5259_s30 = int_to_ptr.hbm [resolvable:$true] %s5258_s30 }
  0xa7   :  { %s246_s9 = sshll.u32 %s5392_s25, 4  ;;  %s5260_s1 = scalar_lea.hbm %s5259_s30, 128  ;;  %s247_s9 = int_to_ptr.vmem [resolvable:$true] %s246_s9 }
  0xa8   :  { %p5261_p12 = scmp.ne.s32.totalorder %s5259_s30, %s5260_s1  ;;  %s5262_s24 = scalar_lea.hbm %s5570_s8, 128 }
  0xa9   :  { %p5263_p13 = scmp.lt.s32.totalorder %s5259_s30, %s5570_s8  ;;  %p5264_p0 = scmp.lt.s32.totalorder %s5262_s24, %s5260_s1 }
  0xab   :  { %p5265_p1 = por %p5264_p0, %p5263_p13 }
  0xad   :  { %p5266_p2 = pnand %p5265_p1, %p5261_p12 }
  0xaf   :  { %5269 = shalt.err (!%p5266_p2)
}
  0xb0   :  { %252 = dma.hbm_to_vmem [thread:$0]  %s245_s6, 2048, %s247_s9, [#allocation15], %s5385_s18, %s5385_s18, %s5386_s7  }
  0xb1   :  { %5330 = dma.done.wait [#allocation3], 8192  }
  0xb2   :  { %5331 = vsyncadd [#allocation3], 4294959104 }
  0xb3   :  { %5332 = dma.done.wait [#allocation6], 8192  }
  0xb4   :  { %5333 = vsyncadd [#allocation6], 4294959104 }
  0xb5   :  { %5334 = dma.done.wait [#allocation9], 8192  }
  0xb6   :  { %5335 = vsyncadd [#allocation9], 4294959104 }
  0xb7   :  { %5336 = dma.done.wait [#allocation12], 4096  }
  0xb8   :  { %5337 = vsyncadd [#allocation12], 4294963200 }
  0xb9   :  { %5338 = dma.done.wait [#allocation15], 6144  }
  0xba   :  { %5339 = vsyncadd [#allocation15], 4294961152  ;;  %v3642_v0 = vld [vmem:[#allocation2 + $0x70] sm:$0xf]  ;;  %v4702_v1 = vld [vmem:[#allocation2 + $0x74] sm:$0xf0] }
  0xbb   :  { %v3706_v2 = vld [vmem:[#allocation2 + $0xf0] sm:$0xf]  ;;  %v3643_v3 = vor.u32 %v4702_v1, %v3642_v0  ;;  %v4718_v4 = vld [vmem:[#allocation2 + $0xf4] sm:$0xf0]  ;;  %v3634_v11 = vld [vmem:[#allocation2 + $0x60] sm:$0xf] }
  0xbc   :  { %v3770_v5 = vld [vmem:[#allocation2 + $0x170] sm:$0xf]  ;;  %v4734_v6 = vld [vmem:[#allocation2 + $0x174] sm:$0xf0]  ;;  %v3707_v7 = vor.u32 %v4718_v4, %v3706_v2  ;;  %v4700_v13 = vld [vmem:[#allocation2 + $0x64] sm:$0xf0] }
  0xbd   :  { %v3771_v8 = vor.u32 %v4734_v6, %v3770_v5  ;;  %v3834_v9 = vld [vmem:[#allocation2 + $0x1f0] sm:$0xf]  ;;  %v4750_v10 = vld [vmem:[#allocation2 + $0x1f4] sm:$0xf0]  ;;  %697 = vmatpush.bf16.msra.mxu0 %v3643_v3  ;;  %v3698_v14 = vld [vmem:[#allocation2 + $0xe0] sm:$0xf]  ;;  %v3635_v16 = vor.u32 %v4700_v13, %v3634_v11 }
  0xbe   :  { %v3835_v12 = vor.u32 %v4750_v10, %v3834_v9  ;;  %v4716_v15 = vld [vmem:[#allocation2 + $0xe4] sm:$0xf0]  ;;  %710 = vmatpush.bf16.msra.mxu1 %v3707_v7  ;;  %v3762_v18 = vld [vmem:[#allocation2 + $0x160] sm:$0xf]  ;;  %v3626_v23 = vld [vmem:[#allocation2 + $0x50] sm:$0xf] }
  0xbf   :  { %723 = vmatpush.bf16.msra.mxu2 %v3771_v8  ;;  %v3699_v17 = vor.u32 %v4716_v15, %v3698_v14  ;;  %v4732_v19 = vld [vmem:[#allocation2 + $0x164] sm:$0xf0]  ;;  %v3826_v20 = vld [vmem:[#allocation2 + $0x1e0] sm:$0xf]  ;;  %v4698_v24 = vld [vmem:[#allocation2 + $0x54] sm:$0xf0] }
  0xc0   :  { %736 = vmatpush.bf16.msra.mxu3 %v3835_v12  ;;  %v3763_v21 = vor.u32 %v4732_v19, %v3762_v18  ;;  %v4748_v22 = vld [vmem:[#allocation2 + $0x1e4] sm:$0xf0]  ;;  %v3690_v26 = vld [vmem:[#allocation2 + $0xd0] sm:$0xf]  ;;  %v4714_v27 = vld [vmem:[#allocation2 + $0xd4] sm:$0xf0]  ;;  %v3627_v29 = vor.u32 %v4698_v24, %v3626_v23 }
  0xc1   :  { %v3827_v25 = vor.u32 %v4748_v22, %v3826_v20  ;;  %v3754_v28 = vld [vmem:[#allocation2 + $0x150] sm:$0xf]  ;;  %698 = vmatpush.bf16.msra.mxu0 %v3635_v16  ;;  %v4730_v30 = vld [vmem:[#allocation2 + $0x154] sm:$0xf0]  ;;  %v3691_v33 = vor.u32 %v4714_v27, %v3690_v26  ;;  %v3618_v35 = vld [vmem:[#allocation2 + $0x40] sm:$0xf] }
  0xc2   :  { %v3818_v31 = vld [vmem:[#allocation2 + $0x1d0] sm:$0xf]  ;;  %v4746_v32 = vld [vmem:[#allocation2 + $0x1d4] sm:$0xf0]  ;;  %711 = vmatpush.bf16.msra.mxu1 %v3699_v17  ;;  %v3755_v34 = vor.u32 %v4730_v30, %v3754_v28  ;;  %v4696_v36 = vld [vmem:[#allocation2 + $0x44] sm:$0xf0] }
  0xc3   :  { %724 = vmatpush.bf16.msra.mxu2 %v3763_v21  ;;  %v3682_v37 = vld [vmem:[#allocation2 + $0xc0] sm:$0xf]  ;;  %v3819_v38 = vor.u32 %v4746_v32, %v3818_v31  ;;  %v4712_v39 = vld [vmem:[#allocation2 + $0xc4] sm:$0xf0]  ;;  %v3619_v44 = vor.u32 %v4696_v36, %v3618_v35  ;;  %v3610_v47 = vld [vmem:[#allocation2 + $0x30] sm:$0xf] }
  0xc4   :  { %737 = vmatpush.bf16.msra.mxu3 %v3827_v25  ;;  %v3746_v40 = vld [vmem:[#allocation2 + $0x140] sm:$0xf]  ;;  %v4728_v41 = vld [vmem:[#allocation2 + $0x144] sm:$0xf0]  ;;  %v3683_v45 = vor.u32 %v4712_v39, %v3682_v37  ;;  %v4694_v48 = vld [vmem:[#allocation2 + $0x34] sm:$0xf0] }
  0xc5   :  { %v3810_v42 = vld [vmem:[#allocation2 + $0x1c0] sm:$0xf]  ;;  %v4744_v43 = vld [vmem:[#allocation2 + $0x1c4] sm:$0xf0]  ;;  %699 = vmatpush.bf16.msra.mxu0 %v3627_v29  ;;  %v3747_v46 = vor.u32 %v4728_v41, %v3746_v40  ;;  %v3674_v49 = vld [vmem:[#allocation2 + $0xb0] sm:$0xf]  ;;  %v3611_v56 = vor.u32 %v4694_v48, %v3610_v47 }
  0xc6   :  { %712 = vmatpush.bf16.msra.mxu1 %v3691_v33  ;;  %v3811_v50 = vor.u32 %v4744_v43, %v3810_v42  ;;  %v4710_v51 = vld [vmem:[#allocation2 + $0xb4] sm:$0xf0]  ;;  %v3738_v52 = vld [vmem:[#allocation2 + $0x130] sm:$0xf]  ;;  %v3602_v59 = vld [vmem:[#allocation2 + $0x20] sm:$0xf] }
  0xc7   :  { %725 = vmatpush.bf16.msra.mxu2 %v3755_v34  ;;  %v4726_v53 = vld [vmem:[#allocation2 + $0x134] sm:$0xf0]  ;;  %v3802_v54 = vld [vmem:[#allocation2 + $0x1b0] sm:$0xf]  ;;  %v3675_v57 = vor.u32 %v4710_v51, %v3674_v49  ;;  %v4692_v60 = vld [vmem:[#allocation2 + $0x24] sm:$0xf0] }
  0xc8   :  { %738 = vmatpush.bf16.msra.mxu3 %v3819_v38  ;;  %v4742_v55 = vld [vmem:[#allocation2 + $0x1b4] sm:$0xf0]  ;;  %v3739_v58 = vor.u32 %v4726_v53, %v3738_v52  ;;  %v3666_v61 = vld [vmem:[#allocation2 + $0xa0] sm:$0xf]  ;;  %v4708_v63 = vld [vmem:[#allocation2 + $0xa4] sm:$0xf0]  ;;  %v3603_v4 = vor.u32 %v4692_v60, %v3602_v59 }
  0xc9   :  { %700 = vmatpush.bf16.msra.mxu0 %v3619_v44  ;;  %v3803_v62 = vor.u32 %v4742_v55, %v3802_v54  ;;  %v3730_v0 = vld [vmem:[#allocation2 + $0x120] sm:$0xf]  ;;  %v4724_v1 = vld [vmem:[#allocation2 + $0x124] sm:$0xf0]  ;;  %v3667_v5 = vor.u32 %v4708_v63, %v3666_v61  ;;  %v3594_v7 = vld [vmem:[#allocation2 + $0x10] sm:$0xf] }
  0xca   :  { %713 = vmatpush.bf16.msra.mxu1 %v3683_v45  ;;  %v3794_v2 = vld [vmem:[#allocation2 + $0x1a0] sm:$0xf]  ;;  %v4740_v3 = vld [vmem:[#allocation2 + $0x1a4] sm:$0xf0]  ;;  %v3731_v6 = vor.u32 %v4724_v1, %v3730_v0  ;;  %v4690_v8 = vld [vmem:[#allocation2 + $0x14] sm:$0xf0] }
  0xcb   :  { %726 = vmatpush.bf16.msra.mxu2 %v3747_v46  ;;  %v3658_v9 = vld [vmem:[#allocation2 + $0x90] sm:$0xf]  ;;  %v3795_v10 = vor.u32 %v4740_v3, %v3794_v2  ;;  %v4706_v11 = vld [vmem:[#allocation2 + $0x94] sm:$0xf0]  ;;  %v3595_v16 = vor.u32 %v4690_v8, %v3594_v7  ;;  %v3586_v17 = vld [vmem:[#allocation2] sm:$0xf] }
  0xcc   :  { %739 = vmatpush.bf16.msra.mxu3 %v3811_v50  ;;  %v3722_v12 = vld [vmem:[#allocation2 + $0x110] sm:$0xf]  ;;  %v4722_v13 = vld [vmem:[#allocation2 + $0x114] sm:$0xf0]  ;;  %v4688_v18 = vld [vmem:[#allocation2 + $0x4] sm:$0xf0]  ;;  %v3659_v20 = vor.u32 %v4706_v11, %v3658_v9 }
  0xcd   :  { %701 = vmatpush.bf16.msra.mxu0 %v3611_v56  ;;  %v3786_v14 = vld [vmem:[#allocation2 + $0x190] sm:$0xf]  ;;  %v4738_v15 = vld [vmem:[#allocation2 + $0x194] sm:$0xf0]  ;;  %v3650_v19 = vld [vmem:[#allocation2 + $0x80] sm:$0xf]  ;;  %v3723_v21 = vor.u32 %v4722_v13, %v3722_v12  ;;  %v3587_v32 = vor.u32 %v4688_v18, %v3586_v17 }
  0xce   :  { %714 = vmatpush.bf16.msra.mxu1 %v3675_v57  ;;  %v4704_v22 = vld [vmem:[#allocation2 + $0x84] sm:$0xf0]  ;;  %v3714_v23 = vld [vmem:[#allocation2 + $0x100] sm:$0xf]  ;;  %v3787_v25 = vor.u32 %v4738_v15, %v3786_v14  ;;  %v4701_v28 = vld [vmem:[#allocation2 + $0x74] sm:$0xf] }
  0xcf   :  { %727 = vmatpush.bf16.msra.mxu2 %v3739_v58  ;;  %v4720_v24 = vld [vmem:[#allocation2 + $0x104] sm:$0xf0]  ;;  %v3778_v26 = vld [vmem:[#allocation2 + $0x180] sm:$0xf]  ;;  %v3644_v29 = vld [vmem:[#allocation2 + $0x78] sm:$0xf0]  ;;  %v3651_v37 = vor.u32 %v4704_v22, %v3650_v19 }
  0xd0   :  { %740 = vmatpush.bf16.msra.mxu3 %v3803_v62  ;;  %v4736_v27 = vld [vmem:[#allocation2 + $0x184] sm:$0xf0]  ;;  %v4717_v30 = vld [vmem:[#allocation2 + $0xf4] sm:$0xf]  ;;  %v3708_v33 = vld [vmem:[#allocation2 + $0xf8] sm:$0xf0]  ;;  %v3715_v38 = vor.u32 %v4720_v24, %v3714_v23  ;;  %v3647_v43 = vor.u32 %v4701_v28, %v3644_v29 }
  0xd1   :  { %702 = vmatpush.bf16.msra.mxu0 %v3603_v4  ;;  %v292_v31 = vld [vmem:[%s5405_s5 + $0x8] sm:$0xff]  ;;  %v4733_v34 = vld [vmem:[#allocation2 + $0x174] sm:$0xf]  ;;  %v3772_v35 = vld [vmem:[#allocation2 + $0x178] sm:$0xf0]  ;;  %v3779_v42 = vor.u32 %v4736_v27, %v3778_v26  ;;  %v3711_v45 = vor.u32 %v4717_v30, %v3708_v33  ;;  %s6001_s8 = sld [smem:[#allocation33_spill]] }
  0xd2   :  { %715 = vmatpush.bf16.msra.mxu1 %v3667_v5  ;;  %v367_v36 = vunpack.c.l.b16 %v292_v31  ;;  %v4749_v39 = vld [vmem:[#allocation2 + $0x1f4] sm:$0xf]  ;;  %v3836_v40 = vld [vmem:[#allocation2 + $0x1f8] sm:$0xf0]  ;;  %v368_v41 = vunpack.c.h.b16 %v292_v31  ;;  %v291_v44 = vld [vmem:[%s5405_s5] sm:$0xff]  ;;  %v3775_v46 = vor.u32 %v4733_v34, %v3772_v35  ;;  %s5995_s5 = sld [smem:[#allocation27_spill]] }
  0xd3   :  { %728 = vmatpush.bf16.msra.mxu2 %v3731_v6  ;;  %v4699_v47 = vld [vmem:[#allocation2 + $0x64] sm:$0xf]  ;;  %v3636_v48 = vld [vmem:[#allocation2 + $0x68] sm:$0xf0]  ;;  %v365_v50 = vunpack.c.l.b16 %v291_v44  ;;  %v366_v51 = vunpack.c.h.b16 %v291_v44  ;;  %v3839_v52 = vor.u32 %v4749_v39, %v3836_v40  ;;  %v4697_v1 = vld [vmem:[#allocation2 + $0x54] sm:$0xf] }
  0xd4   :  { %741 = vmatpush.bf16.msra.mxu3 %v3795_v10  ;;  %v4715_v49 = vld [vmem:[#allocation2 + $0xe4] sm:$0xf]  ;;  %v3700_v53 = vld [vmem:[#allocation2 + $0xe8] sm:$0xf0]  ;;  %v5663_v56 = vpack.c.b16 %v367_v36, %v367_v36  ;;  %v5667_v60 = vpack.c.b16 %v368_v41, %v368_v41  ;;  %v3639_v61 = vor.u32 %v4699_v47, %v3636_v48  ;;  %v3628_v2 = vld [vmem:[#allocation2 + $0x58] sm:$0xf0] }
  0xd5   :  { %703 = vmatpush.bf16.msra.mxu0 %v3595_v16  ;;  %v4731_v54 = vld [vmem:[#allocation2 + $0x164] sm:$0xf]  ;;  %v3764_v55 = vld [vmem:[#allocation2 + $0x168] sm:$0xf0]  ;;  %v5665_v59 = vpack.c.b16 %v365_v50, %v365_v50  ;;  %v5669_v62 = vpack.c.b16 %v366_v51, %v366_v51  ;;  %v3703_v63 = vor.u32 %v4715_v49, %v3700_v53  ;;  %v4713_v3 = vld [vmem:[#allocation2 + $0xd4] sm:$0xf]  ;;  %v3631_v10 = vor.u32 %v4697_v1, %v3628_v2 }
  0xd6   :  { %716 = vmatpush.bf16.msra.mxu1 %v3659_v20  ;;  %v4747_v57 = vld [vmem:[#allocation2 + $0x1e4] sm:$0xf]  ;;  %v3828_v58 = vld [vmem:[#allocation2 + $0x1e8] sm:$0xf0]  ;;  %v3767_v0 = vor.u32 %v4731_v54, %v3764_v55  ;;  %v3692_v5 = vld [vmem:[#allocation2 + $0xd8] sm:$0xf0] }
  0xd7   :  { %729 = vmatpush.bf16.msra.mxu2 %v3723_v21  ;;  %v3831_v4 = vor.u32 %v4747_v57, %v3828_v58  ;;  %v4729_v6 = vld [vmem:[#allocation2 + $0x154] sm:$0xf]  ;;  %v3756_v7 = vld [vmem:[#allocation2 + $0x158] sm:$0xf0]  ;;  %v3695_v11 = vor.u32 %v4713_v3, %v3692_v5  ;;  %v4695_v13 = vld [vmem:[#allocation2 + $0x44] sm:$0xf] }
  0xd8   :  { %742 = vmatpush.bf16.msra.mxu3 %v3787_v25  ;;  %v4745_v8 = vld [vmem:[#allocation2 + $0x1d4] sm:$0xf]  ;;  %v3820_v9 = vld [vmem:[#allocation2 + $0x1d8] sm:$0xf0]  ;;  %v3759_v12 = vor.u32 %v4729_v6, %v3756_v7  ;;  %v3620_v14 = vld [vmem:[#allocation2 + $0x48] sm:$0xf0] }
  0xd9   :  { %704 = vmatpush.bf16.msra.mxu0 %v3587_v32  ;;  %v4711_v15 = vld [vmem:[#allocation2 + $0xc4] sm:$0xf]  ;;  %v3823_v16 = vor.u32 %v4745_v8, %v3820_v9  ;;  %v3684_v17 = vld [vmem:[#allocation2 + $0xc8] sm:$0xf0]  ;;  %v3623_v22 = vor.u32 %v4695_v13, %v3620_v14  ;;  %v4693_v23 = vld [vmem:[#allocation2 + $0x34] sm:$0xf] }
  0xda   :  { %717 = vmatpush.bf16.msra.mxu1 %v3651_v37  ;;  %v4727_v18 = vld [vmem:[#allocation2 + $0x144] sm:$0xf]  ;;  %v3748_v19 = vld [vmem:[#allocation2 + $0x148] sm:$0xf0]  ;;  %v3612_v24 = vld [vmem:[#allocation2 + $0x38] sm:$0xf0]  ;;  %v3687_v25 = vor.u32 %v4711_v15, %v3684_v17 }
  0xdb   :  { %730 = vmatpush.bf16.msra.mxu2 %v3715_v38  ;;  %v4743_v20 = vld [vmem:[#allocation2 + $0x1c4] sm:$0xf]  ;;  %v3812_v21 = vld [vmem:[#allocation2 + $0x1c8] sm:$0xf0]  ;;  %v3751_v26 = vor.u32 %v4727_v18, %v3748_v19  ;;  %v4709_v27 = vld [vmem:[#allocation2 + $0xb4] sm:$0xf]  ;;  %v3615_v34 = vor.u32 %v4693_v23, %v3612_v24 }
  0xdc   :  { %743 = vmatpush.bf16.msra.mxu3 %v3779_v42  ;;  %705 = vmatmul.bf16.vlgmr.msra.gmra.mxu0 %v5665_v59  ;;  %v3676_v28 = vld [vmem:[#allocation2 + $0xb8] sm:$0xf0]  ;;  %v4725_v29 = vld [vmem:[#allocation2 + $0x134] sm:$0xf]  ;;  %v3815_v30 = vor.u32 %v4743_v20, %v3812_v21  ;;  %v4691_v37 = vld [vmem:[#allocation2 + $0x24] sm:$0xf] }
  0xdd   :  { %749 = vmatpush.bf16.msrb.mxu0 %v3647_v43  ;;  %718 = vmatmul.bf16.vlgmr.msra.gmra.mxu1 %v5669_v62  ;;  %v3740_v31 = vld [vmem:[#allocation2 + $0x138] sm:$0xf0]  ;;  %v4741_v32 = vld [vmem:[#allocation2 + $0x1b4] sm:$0xf]  ;;  %v3679_v35 = vor.u32 %v4709_v27, %v3676_v28  ;;  %v3604_v38 = vld [vmem:[#allocation2 + $0x28] sm:$0xf0] }
  0xde   :  { %762 = vmatpush.bf16.msrb.mxu1 %v3711_v45  ;;  %731 = vmatmul.bf16.vlgmr.msra.gmra.mxu2 %v5663_v56  ;;  %v3804_v33 = vld [vmem:[#allocation2 + $0x1b8] sm:$0xf0]  ;;  %v3743_v36 = vor.u32 %v4725_v29, %v3740_v31  ;;  %v4707_v39 = vld [vmem:[#allocation2 + $0xa4] sm:$0xf]  ;;  %v3668_v41 = vld [vmem:[#allocation2 + $0xa8] sm:$0xf0] }
  0xdf   :  { %775 = vmatpush.bf16.msrb.mxu2 %v3775_v46  ;;  %744 = vmatmul.bf16.vlgmr.msra.gmra.mxu3 %v5667_v60  ;;  %v3807_v40 = vor.u32 %v4741_v32, %v3804_v33  ;;  %v4723_v42 = vld [vmem:[#allocation2 + $0x124] sm:$0xf]  ;;  %v3732_v43 = vld [vmem:[#allocation2 + $0x128] sm:$0xf0]  ;;  %v3607_v46 = vor.u32 %v4691_v37, %v3604_v38  ;;  %v3671_v47 = vor.u32 %v4707_v39, %v3668_v41  ;;  %v4689_v49 = vld [vmem:[#allocation2 + $0x14] sm:$0xf] }
  0xe0   :  { %788 = vmatpush.bf16.msrb.mxu3 %v3839_v52  ;;  %v4739_v44 = vld [vmem:[#allocation2 + $0x1a4] sm:$0xf]  ;;  %v3796_v45 = vld [vmem:[#allocation2 + $0x1a8] sm:$0xf0]  ;;  %v3735_v48 = vor.u32 %v4723_v42, %v3732_v43  ;;  %v3596_v50 = vld [vmem:[#allocation2 + $0x18] sm:$0xf0] }
  0xe1   :  { %750 = vmatpush.bf16.msrb.mxu0 %v3639_v61  ;;  %v4705_v51 = vld [vmem:[#allocation2 + $0x94] sm:$0xf]  ;;  %v3799_v52 = vor.u32 %v4739_v44, %v3796_v45  ;;  %v3660_v53 = vld [vmem:[#allocation2 + $0x98] sm:$0xf0]  ;;  %v3599_v61 = vor.u32 %v4689_v49, %v3596_v50  ;;  %v4687_v1 = vld [vmem:[#allocation2 + $0x4] sm:$0xf] }
  0xe2   :  { %763 = vmatpush.bf16.msrb.mxu1 %v3703_v63  ;;  %v4721_v54 = vld [vmem:[#allocation2 + $0x114] sm:$0xf]  ;;  %v3724_v55 = vld [vmem:[#allocation2 + $0x118] sm:$0xf0]  ;;  %v3663_v63 = vor.u32 %v4705_v51, %v3660_v53  ;;  %v3588_v2 = vld [vmem:[#allocation2 + $0x8] sm:$0xf0] }
  0xe3   :  { %776 = vmatpush.bf16.msrb.mxu2 %v3767_v0  ;;  %v4737_v57 = vld [vmem:[#allocation2 + $0x194] sm:$0xf]  ;;  %v3788_v58 = vld [vmem:[#allocation2 + $0x198] sm:$0xf0]  ;;  %v3727_v0 = vor.u32 %v4721_v54, %v3724_v55  ;;  %v4703_v3 = vld [vmem:[#allocation2 + $0x84] sm:$0xf] }
  0xe4   :  { %789 = vmatpush.bf16.msrb.mxu3 %v3831_v4  ;;  %v3791_v4 = vor.u32 %v4737_v57, %v3788_v58  ;;  %v3652_v5 = vld [vmem:[#allocation2 + $0x88] sm:$0xf0]  ;;  %v4719_v6 = vld [vmem:[#allocation2 + $0x104] sm:$0xf]  ;;  %v5393_v38 = vmov 256.0   ;;  %s6002_s15 = sld [smem:[#allocation34_spill]] }
  0xe5   :  { %751 = vmatpush.bf16.msrb.mxu0 %v3631_v10  ;;  %v3716_v7 = vld [vmem:[#allocation2 + $0x108] sm:$0xf0]  ;;  %v4735_v8 = vld [vmem:[#allocation2 + $0x184] sm:$0xf]  ;;  %v3591_v10 = vor.u32 %v4687_v1, %v3588_v2  ;;  %5016 = vrcp.f32 %v5393_v38  ;;  %v4766_v53 = vld [vmem:[#allocation5 + $0x74] sm:$0xf0] }
  0xe6   :  { %764 = vmatpush.bf16.msrb.mxu1 %v3695_v11  ;;  %v3780_v9 = vld [vmem:[#allocation2 + $0x188] sm:$0xf0]  ;;  %v3655_v11 = vor.u32 %v4703_v3, %v3652_v5  ;;  %v3964_v54 = vld [vmem:[#allocation5 + $0xf0] sm:$0xf]  ;;  %v4782_v57 = vld [vmem:[#allocation5 + $0xf4] sm:$0xf0] }
  0xe7   :  { %777 = vmatpush.bf16.msrb.mxu2 %v3759_v12  ;;  %v3719_v12 = vor.u32 %v4719_v6, %v3716_v7  ;;  %v3783_v13 = vor.u32 %v4735_v8, %v3780_v9  ;;  %v4765_v58 = vld [vmem:[#allocation5 + $0x74] sm:$0xf]  ;;  %v3966_v2 = vld [vmem:[#allocation5 + $0xf8] sm:$0xf0]  ;;  %v3892_v3 = vld [vmem:[#allocation5 + $0x60] sm:$0xf] }
  0xe8   :  { %790 = vmatpush.bf16.msrb.mxu3 %v3823_v16  ;;  %v4781_v1 = vld [vmem:[#allocation5 + $0xf4] sm:$0xf]  ;;  %v4764_v5 = vld [vmem:[#allocation5 + $0x64] sm:$0xf0]  ;;  %v3956_v6 = vld [vmem:[#allocation5 + $0xe0] sm:$0xf] }
  0xe9   :  { %752 = vmatpush.bf16.msrb.mxu0 %v3623_v22  ;;  %v357_v22 = vld [vmem:[%s5415_s13] sm:$0x3]  ;;  %v4780_v7 = vld [vmem:[#allocation5 + $0xe4] sm:$0xf0]  ;;  %v3893_v8 = vor.u32 %v4764_v5, %v3892_v3  ;;  %v3868_v38 = vld [vmem:[#allocation5 + $0x30] sm:$0xf] }
  0xea   :  { %765 = vmatpush.bf16.msrb.mxu1 %v3687_v25  ;;  %v359_v23 = vperm.slane %v357_v22, 0  ;;  %v360_v24 = vperm.slane %v357_v22, 1  ;;  %v3957_v9 = vor.u32 %v4780_v7, %v3956_v6  ;;  %v3852_v7 = vld [vmem:[#allocation5 + $0x10] sm:$0xf]  ;;  %s5996_s13 = sld [smem:[#allocation28_spill]]  ;;  %s5395_s6 = smov [#allocation17]  }
  0xeb   :  { %778 = vmatpush.bf16.msrb.mxu2 %v3751_v26  ;;  %v5017_v39 = vpop.eup %5016  ;;  %s6003_s16 = sld [smem:[#allocation35_spill]]  ;;  %s3516_s10 = sshll.u32 %s5395_s6, 4  ;;  %s3517_s10 = int_to_ptr.vmem [resolvable:$true] %s3516_s10 }
  0xec   :  { %791 = vmatpush.bf16.msrb.mxu3 %v3815_v30  ;;  %vm809_vm0 = vweird.f32 %v5017_v39  ;;  %s6004_s18 = sld [smem:[#allocation36_spill]]  ;;  %s3518_s4 = sshll.u32 %s5580_s20, 4  ;;  %s3519_s4 = int_to_ptr.hbm [resolvable:$true] %s3518_s4 }
  0xed   :  { %753 = vmatpush.bf16.msrb.mxu0 %v3615_v34  ;;  %s6005_s7 = sld [smem:[#allocation37_spill]]  ;;  %s5294_s22 = sshra.s32 %s3519_s4, 4  ;;  %s5295_s22 = int_to_ptr.hbm [resolvable:$true] %s5294_s22 }
  0xee   :  { %766 = vmatpush.bf16.msrb.mxu1 %v3679_v35  ;;  %s6006_s26 = sld [smem:[#allocation38_spill]]  ;;  %s5296_s25 = scalar_lea.hbm %s5295_s22, 8 }
  0xef   :  { %779 = vmatpush.bf16.msrb.mxu2 %v3743_v36  ;;  %s6007_s28 = sld [smem:[#allocation39_spill]]  ;;  %p5297_p3 = scmp.ne.s32.totalorder %s5295_s22, %s5296_s25 }
  0xf0   :  { %792 = vmatpush.bf16.msrb.mxu3 %v3807_v40  ;;  %v805_v40 = vmul.f32 256.0, %v5017_v39  ;;  %s6008_s2 = sld [smem:[#allocation40_spill]]  ;;  %s5298_s9 = scalar_lea.hbm %s5580_s20, 8 }
  0xf1   :  { %754 = vmatpush.bf16.msrb.mxu0 %v3607_v46  ;;  %s6009_s14 = sld [smem:[#allocation41_spill]]  ;;  %p5299_p4 = scmp.lt.s32.totalorder %s5295_s22, %s5580_s20 }
  0xf2   :  { %767 = vmatpush.bf16.msrb.mxu1 %v3671_v47  ;;  %v806_v41 = vsub.f32 1.0, %v805_v40  ;;  %v3932_v40 = vld [vmem:[#allocation5 + $0xb0] sm:$0xf]  ;;  %s6010_s0 = sld [smem:[#allocation42_spill]]  ;;  %p5300_p5 = scmp.lt.s32.totalorder %s5298_s9, %s5296_s25 }
  0xf3   :  { %780 = vmatpush.bf16.msrb.mxu2 %v3735_v48  ;;  %s6011_s11 = sld [smem:[#allocation43_spill]] }
  0xf4   :  { %793 = vmatpush.bf16.msrb.mxu3 %v3799_v52  ;;  %v807_v42 = vmul.f32 %v5017_v39, %v806_v41  ;;  %v3900_v52 = vld [vmem:[#allocation5 + $0x70] sm:$0xf]  ;;  %s6012_s23 = sld [smem:[#allocation44_spill]]  ;;  %p5301_p6 = por %p5300_p5, %p5299_p4 }
  0xf5   :  { %755 = vmatpush.bf16.msrb.mxu0 %v3599_v61  ;;  %v3901_v55 = vor.u32 %v4766_v53, %v3900_v52  ;;  %v3902_v61 = vld [vmem:[#allocation5 + $0x78] sm:$0xf0]  ;;  %v3860_v53 = vld [vmem:[#allocation5 + $0x20] sm:$0xf]  ;;  %s6013_s19 = sld [smem:[#allocation45_spill]] }
  0xf6   :  { %768 = vmatpush.bf16.msrb.mxu1 %v3663_v63  ;;  %v808_v43 = vadd.f32 %v5017_v39, %v807_v42  ;;  %v3965_v63 = vor.u32 %v4782_v57, %v3964_v54  ;;  %v4774_v42 = vld [vmem:[#allocation5 + $0xb4] sm:$0xf0]  ;;  %v4756_v54 = vld [vmem:[#allocation5 + $0x24] sm:$0xf0]  ;;  %p5302_p7 = pnand %p5301_p6, %p5297_p3 }
  0xf7   :  { %781 = vmatpush.bf16.msrb.mxu2 %v3727_v0  ;;  %v3905_v0 = vor.u32 %v4765_v58, %v3902_v61  ;;  %v4772_v58 = vld [vmem:[#allocation5 + $0xa4] sm:$0xf0]  ;;  %v4755_v61 = vld [vmem:[#allocation5 + $0x24] sm:$0xf] }
  0xf8   :  { %794 = vmatpush.bf16.msrb.mxu3 %v3791_v4  ;;  %v5680_v44 = vsel %vm809_vm0, %v5017_v39, %v808_v43  ;;  %v3969_v4 = vor.u32 %v4781_v1, %v3966_v2  ;;  %v4758_v39 = vld [vmem:[#allocation5 + $0x34] sm:$0xf0]  ;;  %v4757_v43 = vld [vmem:[#allocation5 + $0x34] sm:$0xf]  ;;  %v4771_v1 = vld [vmem:[#allocation5 + $0xa4] sm:$0xf] }
  0xf9   :  { %756 = vmatpush.bf16.msrb.mxu0 %v3591_v10  ;;  %v4763_v10 = vld [vmem:[#allocation5 + $0x64] sm:$0xf]  ;;  %v3926_v2 = vld [vmem:[#allocation5 + $0xa8] sm:$0xf0] }
  0xfa   :  { %769 = vmatpush.bf16.msrb.mxu1 %v3655_v11  ;;  %v3894_v11 = vld [vmem:[#allocation5 + $0x68] sm:$0xf0] }
  0xfb   :  { %782 = vmatpush.bf16.msrb.mxu2 %v3719_v12  ;;  %v4779_v12 = vld [vmem:[#allocation5 + $0xe4] sm:$0xf] }
  0xfc   :  { %795 = vmatpush.bf16.msrb.mxu3 %v3783_v13  ;;  %757 = vmatmul.bf16.vlgmr.msrb.gmra.mxu0 %v5665_v59  ;;  %v3897_v13 = vor.u32 %v4763_v10, %v3894_v11  ;;  %v3929_v11 = vor.u32 %v4771_v1, %v3926_v2 }
  0xfd   :  { %770 = vmatmul.bf16.vlgmr.msrb.gmra.mxu1 %v5669_v62  ;;  %1137 = vmatpush.bf16.msra.mxu0 %v3901_v55  ;;  %v3924_v55 = vld [vmem:[#allocation5 + $0xa0] sm:$0xf] }
  0xfe   :  { %783 = vmatmul.bf16.vlgmr.msrb.gmra.mxu2 %v5663_v56  ;;  %1150 = vmatpush.bf16.msra.mxu1 %v3965_v63  ;;  %v3862_v63 = vld [vmem:[#allocation5 + $0x28] sm:$0xf0]  ;;  %v3925_v5 = vor.u32 %v4772_v58, %v3924_v55 }
  0xff   :  { %796 = vmatmul.bf16.vlgmr.msrb.gmra.mxu3 %v5667_v60  ;;  %1163 = vmatpush.bf16.msra.mxu2 %v3905_v0  ;;  %v3865_v6 = vor.u32 %v4755_v61, %v3862_v63 }
 0x100   :  { %1176 = vmatpush.bf16.msra.mxu3 %v3969_v4  ;;  %v3861_v4 = vor.u32 %v4756_v54, %v3860_v53 }
 0x101   :  { %1138 = vmatpush.bf16.msra.mxu0 %v3893_v8  ;;  %v4754_v8 = vld [vmem:[#allocation5 + $0x14] sm:$0xf0] }
 0x102   :  { %1151 = vmatpush.bf16.msra.mxu1 %v3957_v9  ;;  %v3916_v9 = vld [vmem:[#allocation5 + $0x90] sm:$0xf] }
 0x103   :  { %1164 = vmatpush.bf16.msra.mxu2 %v3897_v13  ;;  %v4753_v13 = vld [vmem:[#allocation5 + $0x14] sm:$0xf] }
 0x159   :  { %v706_v14 = vpop.f32.mrf.mxu0 }
 0x15a   :  { %v719_v15 = vpop.f32.mrf.mxu1  ;;  %v707_v25 = vadd.f32 %v706_v14, %v359_v23  ;;  %v3958_v14 = vld [vmem:[#allocation5 + $0xe8] sm:$0xf0]  ;;  %v3886_v23 = vld [vmem:[#allocation5 + $0x58] sm:$0xf0] }
 0x15c   :  { %v720_v62 = vadd.f32 %v719_v15, %v707_v25  ;;  %v3884_v15 = vld [vmem:[#allocation5 + $0x50] sm:$0xf]  ;;  %v3950_v25 = vld [vmem:[#allocation5 + $0xd8] sm:$0xf0] }
 0x161   :  { %v732_v16 = vpop.f32.mrf.mxu2  ;;  %v708_v18 = vpop.f32.mrf.mxu0 }
 0x162   :  { %v745_v17 = vpop.f32.mrf.mxu3  ;;  %v721_v19 = vpop.f32.mrf.mxu1  ;;  %v733_v56 = vadd.f32 %v732_v16, %v720_v62  ;;  %v4762_v16 = vld [vmem:[#allocation5 + $0x54] sm:$0xf0]  ;;  %v3948_v18 = vld [vmem:[#allocation5 + $0xd0] sm:$0xf]  ;;  %v3876_v62 = vld [vmem:[#allocation5 + $0x40] sm:$0xf] }
 0x163   :  { %v4778_v19 = vld [vmem:[#allocation5 + $0xd4] sm:$0xf0]  ;;  %v3885_v22 = vor.u32 %v4762_v16, %v3884_v15  ;;  %v4769_v15 = vld [vmem:[#allocation5 + $0x94] sm:$0xf]  ;;  %v3918_v16 = vld [vmem:[#allocation5 + $0x98] sm:$0xf0] }
 0x164   :  { %v746_v33 = vadd.f32 %v745_v17, %v733_v56  ;;  %v3961_v17 = vor.u32 %v4779_v12, %v3958_v14  ;;  %v3940_v56 = vld [vmem:[#allocation5 + $0xc0] sm:$0xf]  ;;  %v4770_v12 = vld [vmem:[#allocation5 + $0x94] sm:$0xf0]  ;;  %v3854_v14 = vld [vmem:[#allocation5 + $0x18] sm:$0xf0] }
 0x165   :  { %1139 = vmatpush.bf16.msra.mxu0 %v3885_v22  ;;  %v3857_v22 = vor.u32 %v4753_v13, %v3854_v14 }
 0x166   :  { %1177 = vmatpush.bf16.msra.mxu3 %v3961_v17  ;;  %v833_v17 = vld [vmem:[%s5420_s17] sm:$0x3]  ;;  %s5997_s17 = sld [smem:[#allocation29_spill]] }
 0x169   :  { %v734_v20 = vpop.f32.mrf.mxu2 }
 0x16a   :  { %v747_v21 = vpop.f32.mrf.mxu3  ;;  %v4761_v20 = vld [vmem:[#allocation5 + $0x54] sm:$0xf] }
 0x179   :  { %v758_v26 = vpop.f32.mrf.mxu0 }
 0x17a   :  { %v759_v59 = vadd.f32 %v758_v26, %v360_v24  ;;  %v771_v27 = vpop.f32.mrf.mxu1  ;;  %v4777_v24 = vld [vmem:[#allocation5 + $0xd4] sm:$0xf] }
 0x17c   :  { %v772_v28 = vadd.f32 %v771_v27, %v759_v59  ;;  %v3949_v59 = vor.u32 %v4778_v19, %v3948_v18  ;;  %v3889_v27 = vor.u32 %v4761_v20, %v3886_v23  ;;  %v3853_v19 = vor.u32 %v4754_v8, %v3852_v7  ;;  %v3844_v20 = vld [vmem:[#allocation5] sm:$0xf]  ;;  %v4752_v23 = vld [vmem:[#allocation5 + $0x4] sm:$0xf0] }
 0x17e   :  { %1152 = vmatpush.bf16.msra.mxu1 %v3949_v59  ;;  %1165 = vmatpush.bf16.msra.mxu2 %v3889_v27  ;;  %v3921_v59 = vor.u32 %v4769_v15, %v3918_v16  ;;  %v4751_v27 = vld [vmem:[#allocation5 + $0x4] sm:$0xf] }
 0x181   :  { %v784_v29 = vpop.f32.mrf.mxu2  ;;  %v760_v31 = vpop.f32.mrf.mxu0 }
 0x182   :  { %v785_v60 = vadd.f32 %v784_v29, %v772_v28  ;;  %v797_v30 = vpop.f32.mrf.mxu3  ;;  %v773_v32 = vpop.f32.mrf.mxu1  ;;  %v4760_v28 = vld [vmem:[#allocation5 + $0x44] sm:$0xf0]  ;;  %v3953_v29 = vor.u32 %v4777_v24, %v3950_v25  ;;  %v3878_v31 = vld [vmem:[#allocation5 + $0x48] sm:$0xf0]  ;;  %v3908_v24 = vld [vmem:[#allocation5 + $0x80] sm:$0xf] }
 0x183   :  { %v4768_v25 = vld [vmem:[#allocation5 + $0x84] sm:$0xf0] }
 0x184   :  { %v798_v34 = vadd.f32 %v797_v30, %v785_v60  ;;  %v4776_v60 = vld [vmem:[#allocation5 + $0xc4] sm:$0xf0]  ;;  %v4759_v30 = vld [vmem:[#allocation5 + $0x44] sm:$0xf]  ;;  %1178 = vmatpush.bf16.msra.mxu3 %v3953_v29 }
 0x186   :  { %v801_v35 = vadd.f32 %v798_v34, %v746_v33 }
 0x188   :  { %802 = vadd.xlane.f32.xlu0 %v801_v35  ;;  %v3877_v35 = vor.u32 %v4760_v28, %v3876_v62  ;;  %v3846_v62 = vld [vmem:[#allocation5 + $0x8] sm:$0xf0]  ;;  %v4767_v28 = vld [vmem:[#allocation5 + $0x84] sm:$0xf] }
 0x189   :  { %v786_v36 = vpop.f32.mrf.mxu2 }
 0x18a   :  { %v799_v37 = vpop.f32.mrf.mxu3  ;;  %v3941_v36 = vor.u32 %v4776_v60, %v3940_v56  ;;  %1140 = vmatpush.bf16.msra.mxu0 %v3877_v35  ;;  %v3910_v56 = vld [vmem:[#allocation5 + $0x88] sm:$0xf0]  ;;  %v3845_v60 = vor.u32 %v4752_v23, %v3844_v20  ;;  %v3849_v35 = vor.u32 %v4751_v27, %v3846_v62 }
 0x18b   :  { %v3881_v37 = vor.u32 %v4759_v30, %v3878_v31  ;;  %v841_v30 = vld [vmem:[%s5425_s21] sm:$0x3]  ;;  %v835_v31 = vperm.slane %v833_v17, 0  ;;  %s5998_s21 = sld [smem:[#allocation30_spill]] }
 0x18c   :  { %1153 = vmatpush.bf16.msra.mxu1 %v3941_v36 }
 0x18d   :  { %1166 = vmatpush.bf16.msra.mxu2 %v3881_v37  ;;  %v3913_v37 = vor.u32 %v4767_v28, %v3910_v56 }
 0x1fb   :  { %v803_v45 = vpop.xlane.xlu0 %802 }
 0x1fc   :  { %v811_v46 = vmul.f32 %v5680_v44, %v803_v45  ;;  %v3870_v45 = vld [vmem:[#allocation5 + $0x38] sm:$0xf0] }
 0x1fd   :  { %v3873_v52 = vor.u32 %v4757_v43, %v3870_v45 }
 0x1fe   :  { %v5683_v47 = vsub.f32 %v746_v33, %v811_v46  ;;  %v5685_v48 = vsub.f32 %v798_v34, %v811_v46  ;;  %v4775_v33 = vld [vmem:[#allocation5 + $0xc4] sm:$0xf]  ;;  %v3942_v34 = vld [vmem:[#allocation5 + $0xc8] sm:$0xf0]  ;;  %v4773_v46 = vld [vmem:[#allocation5 + $0xb4] sm:$0xf] }
 0x1ff   :  { %v3945_v41 = vor.u32 %v4775_v33, %v3942_v34  ;;  %1167 = vmatpush.bf16.msra.mxu2 %v3873_v52  ;;  %v836_v33 = vperm.slane %v833_v17, 1  ;;  %v3909_v34 = vor.u32 %v4768_v25, %v3908_v24 }
 0x200   :  { %v814_v49 = vmul.f32 %v5683_v47, %v5683_v47  ;;  %v815_v50 = vmul.f32 %v5685_v48, %v5685_v48 }
 0x201   :  { %1179 = vmatpush.bf16.msra.mxu3 %v3945_v41  ;;  %v844_v41 = vperm.slane %v841_v30, 1 }
 0x202   :  { %v816_v51 = vadd.f32 %v815_v50, %v814_v49  ;;  %v3934_v49 = vld [vmem:[#allocation5 + $0xb8] sm:$0xf0]  ;;  %v3869_v50 = vor.u32 %v4758_v39, %v3868_v38 }
 0x203   :  { %v3937_v57 = vor.u32 %v4773_v46, %v3934_v49  ;;  %1168 = vmatpush.bf16.msra.mxu2 %v3865_v6 }
 0x204   :  { %817 = vadd.xlane.f32.xlu0 %v816_v51  ;;  %v3933_v51 = vor.u32 %v4774_v42, %v3932_v40  ;;  %1141 = vmatpush.bf16.msra.mxu0 %v3869_v50  ;;  %v843_v40 = vperm.slane %v841_v30, 0 }
 0x205   :  { %1180 = vmatpush.bf16.msra.mxu3 %v3937_v57 }
 0x206   :  { %1154 = vmatpush.bf16.msra.mxu1 %v3933_v51 }
 0x207   :  { %1169 = vmatpush.bf16.msra.mxu2 %v3857_v22 }
 0x208   :  { %1142 = vmatpush.bf16.msra.mxu0 %v3861_v4 }
 0x209   :  { %1181 = vmatpush.bf16.msra.mxu3 %v3929_v11 }
 0x20a   :  { %1155 = vmatpush.bf16.msra.mxu1 %v3925_v5 }
 0x20b   :  { %1170 = vmatpush.bf16.msra.mxu2 %v3849_v35 }
 0x20c   :  { %1143 = vmatpush.bf16.msra.mxu0 %v3853_v19 }
 0x20d   :  { %1182 = vmatpush.bf16.msra.mxu3 %v3921_v59 }
 0x210   :  { %1144 = vmatpush.bf16.msra.mxu0 %v3845_v60 }
 0x211   :  { %1183 = vmatpush.bf16.msra.mxu3 %v3913_v37 }
 0x277   :  { %v818_v21 = vpop.xlane.xlu0 %817 }
 0x278   :  { %v819_v26 = vmul.f32 %v818_v21, %v5680_v44  ;;  %v3917_v21 = vor.u32 %v4770_v12, %v3916_v9 }
 0x27a   :  { %v5692_v32 = vadd.f32 1e-05, %v819_v26  ;;  %1156 = vmatpush.bf16.msra.mxu1 %v3917_v21 }
 0x27c   :  { %5018 = vrsqrt.f32 %v5692_v32  ;;  %vm827_vm2 = vweird.f32 %v5692_v32 }
 0x27e   :  { %1157 = vmatpush.bf16.msra.mxu1 %v3909_v34 }
 0x282   :  { %v5019_v0 = vpop.eup %5018 }
 0x283   :  { %v822_v3 = vmul.f32 %v5019_v0, %v5692_v32  ;;  %vm828_vm1 = vweird.f32 %v5019_v0 }
 0x284   :  { %vm829_vm3 = vmor %vm827_vm2, %vm828_vm1 }
 0x285   :  { %v823_v10 = vmul.f32 %v5019_v0, %v822_v3 }
 0x287   :  { %v824_v18 = vmul.f32 0.5, %v823_v10 }
 0x289   :  { %v825_v26 = vsub.f32 1.5, %v824_v18 }
 0x28b   :  { %v826_v29 = vmul.f32 %v5019_v0, %v825_v26 }
 0x28d   :  { %v830_v36 = vsel %vm829_vm3, %v5019_v0, %v826_v29 }
 0x28e   :  { %v831_v38 = vmul.f32 %v830_v36, %v5683_v47  ;;  %v832_v39 = vmul.f32 %v830_v36, %v5685_v48 }
 0x290   :  { %v839_v32 = vmul.f32 %v835_v31, %v831_v38  ;;  %v840_v42 = vmul.f32 %v836_v33, %v832_v39 }
 0x292   :  { %v5701_v43 = vadd.f32 %v843_v40, %v839_v32  ;;  %v5703_v45 = vadd.f32 %v844_v41, %v840_v42 }
 0x294   :  { %v5706_v46 = vmul.f32 0.70710677, %v5701_v43  ;;  %v5709_v49 = vmul.f32 0.70710677, %v5703_v45 }
 0x296   :  { %v853_v47 = vmul.f32 %v5706_v46, %v5706_v46  ;;  %v893_v48 = vmul.f32 %v5709_v49, %v5709_v49 }
 0x298   :  { %v854_v50 = vmin.f32 %v853_v47, 16.0  ;;  %v894_v51 = vmin.f32 %v893_v48, 16.0 }
 0x29a   :  { %v855_v52 = vmul.f32 2.1237322e-06, %v854_v50  ;;  %v866_v53 = vmul.f32 3.8918573e-05, %v854_v50  ;;  %v895_v54 = vmul.f32 2.1237322e-06, %v894_v51 }
 0x29b   :  { %v906_v55 = vmul.f32 3.8918573e-05, %v894_v51 }
 0x29c   :  { %v856_v57 = vadd.f32 0.00028619796, %v855_v52  ;;  %v867_v58 = vadd.f32 0.001143296, %v866_v53  ;;  %v896_v61 = vadd.f32 0.00028619796, %v895_v54 }
 0x29d   :  { %v907_v63 = vadd.f32 0.001143296, %v906_v55 }
 0x29e   :  { %v857_v0 = vmul.f32 %v856_v57, %v854_v50  ;;  %v868_v1 = vmul.f32 %v867_v58, %v854_v50  ;;  %v897_v2 = vmul.f32 %v896_v61, %v894_v51 }
 0x29f   :  { %v908_v3 = vmul.f32 %v907_v63, %v894_v51  ;;  %v849_v63 = vmul.f32 0.5, %v5701_v43 }
 0x2a0   :  { %v858_v4 = vadd.f32 0.0036580483, %v857_v0  ;;  %v869_v5 = vadd.f32 0.014752088, %v868_v1  ;;  %v898_v8 = vadd.f32 0.0036580483, %v897_v2 }
 0x2a1   :  { %v909_v6 = vadd.f32 0.014752088, %v908_v3 }
 0x2a2   :  { %v870_v7 = vmul.f32 %v869_v5, %v854_v50  ;;  %v859_v10 = vmul.f32 %v858_v4, %v854_v50  ;;  %v899_v14 = vmul.f32 %v898_v8, %v894_v51  ;;  %v971_v5 = vld [vmem:[%s5435_s29] sm:$0x3]  ;;  %s5999_s29 = sld [smem:[#allocation31_spill]] }
 0x2a3   :  { %v910_v9 = vmul.f32 %v909_v6, %v894_v51  ;;  %v973_v6 = vperm.slane %v971_v5, 0 }
 0x2a4   :  { %v871_v11 = vadd.f32 0.112945676, %v870_v7  ;;  %v860_v16 = vadd.f32 0.05243302, %v859_v10  ;;  %v900_v20 = vadd.f32 0.05243302, %v899_v14 }
 0x2a5   :  { %v911_v12 = vadd.f32 0.112945676, %v910_v9 }
 0x2a6   :  { %v872_v13 = vmul.f32 %v871_v11, %v854_v50  ;;  %v861_v22 = vmul.f32 %v860_v16, %v854_v50  ;;  %v901_v25 = vmul.f32 %v900_v20, %v894_v51 }
 0x2a7   :  { %v912_v15 = vmul.f32 %v911_v12, %v894_v51 }
 0x2a8   :  { %v873_v17 = vadd.f32 0.4994258, %v872_v13  ;;  %v862_v26 = vadd.f32 0.18741608, %v861_v22  ;;  %v902_v59 = vadd.f32 0.18741608, %v901_v25 }
 0x2a9   :  { %v913_v18 = vadd.f32 0.4994258, %v912_v15 }
 0x2aa   :  { %v874_v19 = vmul.f32 %v873_v17, %v854_v50  ;;  %v863_v62 = vmul.f32 %v862_v26, %v854_v50  ;;  %v903_v29 = vmul.f32 %v902_v59, %v894_v51 }
 0x2ab   :  { %v914_v21 = vmul.f32 %v913_v18, %v894_v51 }
 0x2ac   :  { %v875_v23 = vadd.f32 1.0, %v874_v19  ;;  %v864_v31 = vadd.f32 1.1283791, %v863_v62  ;;  %v904_v38 = vadd.f32 1.1283791, %v903_v29 }
 0x2ad   :  { %v915_v24 = vadd.f32 1.0, %v914_v21  ;;  %v4798_v62 = vld [vmem:[#allocation7 + $0x74] sm:$0xf0] }
 0x2ae   :  { %5020 = vrcp.f32 %v875_v23  ;;  %v887_v33 = vand.u32 2147483648, %v875_v23  ;;  %v885_v36 = vand.u32 2147483647, %v875_v23  ;;  %vm881_vm6 = vweird.f32 %v875_v23  ;;  %v4814_v29 = vld [vmem:[#allocation7 + $0xf4] sm:$0xf0] }
 0x2af   :  { %5022 = vrcp.f32 %v915_v24  ;;  %v927_v37 = vand.u32 2147483648, %v915_v24  ;;  %v925_v40 = vand.u32 2147483647, %v915_v24  ;;  %vm921_vm8 = vweird.f32 %v915_v24 }
 0x2b0   :  { %v888_v32 = vor.u32 1.1754944e-38, %v887_v33  ;;  %v865_v47 = vmul.f32 %v864_v31, %v5706_v46  ;;  %vm886_vm9 = vcmp.eq.f32.partialorder %v885_v36, 8.507059e+37  ;;  %v905_v52 = vmul.f32 %v904_v38, %v5709_v49  ;;  %v4096_v36 = vld [vmem:[#allocation7 + $0xf8] sm:$0xf0]  ;;  %v4022_v38 = vld [vmem:[#allocation7 + $0x60] sm:$0xf] }
 0x2b1   :  { %v928_v50 = vor.u32 1.1754944e-38, %v927_v37  ;;  %vm926_vm11 = vcmp.eq.f32.partialorder %v925_v40, 8.507059e+37  ;;  %v850_v46 = vmul.f32 0.5, %v5703_v45  ;;  %v974_v45 = vperm.slane %v971_v5, 1  ;;  %v4086_v40 = vld [vmem:[#allocation7 + $0xe0] sm:$0xf] }
 0x2b2   :  { %v4006_v5 = vld [vmem:[#allocation7 + $0x40] sm:$0xf] }
 0x2b4   :  { %v5021_v27 = vpop.eup %5020 }
 0x2b5   :  { %v5023_v28 = vpop.eup %5022  ;;  %v877_v56 = vmul.f32 %v5021_v27, %v875_v23  ;;  %vm882_vm4 = vweird.f32 %v5021_v27 }
 0x2b6   :  { %v917_v60 = vmul.f32 %v5023_v28, %v915_v24  ;;  %vm922_vm5 = vweird.f32 %v5023_v28  ;;  %vm883_vm7 = vmor %vm881_vm6, %vm882_vm4 }
 0x2b7   :  { %v878_v30 = vsub.f32 1.0, %v877_v56  ;;  %vm923_vm10 = vmor %vm921_vm8, %vm922_vm5 }
 0x2b8   :  { %v918_v34 = vsub.f32 1.0, %v917_v60  ;;  %v4797_v60 = vld [vmem:[#allocation7 + $0x74] sm:$0xf] }
 0x2b9   :  { %v879_v35 = vmul.f32 %v5021_v27, %v878_v30  ;;  %v4032_v30 = vld [vmem:[#allocation7 + $0x78] sm:$0xf0] }
 0x2ba   :  { %v919_v39 = vmul.f32 %v5023_v28, %v918_v34  ;;  %v4035_v34 = vor.u32 %v4797_v60, %v4032_v30 }
 0x2bb   :  { %v880_v41 = vadd.f32 %v5021_v27, %v879_v35  ;;  %v4813_v35 = vld [vmem:[#allocation7 + $0xf4] sm:$0xf] }
 0x2bc   :  { %v920_v42 = vadd.f32 %v5023_v28, %v919_v39  ;;  %v4099_v37 = vor.u32 %v4813_v35, %v4096_v36  ;;  %v4796_v39 = vld [vmem:[#allocation7 + $0x64] sm:$0xf0]  ;;  %1546 = vmatpush.bf16.msrb.mxu2 %v4035_v34  ;;  %v4054_v34 = vld [vmem:[#allocation7 + $0xa0] sm:$0xf] }
 0x2bd   :  { %v884_v48 = vsel %vm883_vm7, %v5021_v27, %v880_v41  ;;  %v4030_v27 = vld [vmem:[#allocation7 + $0x70] sm:$0xf]  ;;  %v4023_v41 = vor.u32 %v4796_v39, %v4022_v38  ;;  %v4804_v35 = vld [vmem:[#allocation7 + $0xa4] sm:$0xf0]  ;;  %v4787_v38 = vld [vmem:[#allocation7 + $0x24] sm:$0xf] }
 0x2be   :  { %v889_v51 = vsel %vm886_vm9, %v888_v32, %v884_v48  ;;  %v924_v53 = vsel %vm923_vm10, %v5023_v28, %v920_v42  ;;  %v4094_v28 = vld [vmem:[#allocation7 + $0xf0] sm:$0xf]  ;;  %v4031_v56 = vor.u32 %v4798_v62, %v4030_v27  ;;  %v4812_v32 = vld [vmem:[#allocation7 + $0xe4] sm:$0xf0]  ;;  %v4795_v42 = vld [vmem:[#allocation7 + $0x64] sm:$0xf]  ;;  %1559 = vmatpush.bf16.msrb.mxu3 %v4099_v37 }
 0x2bf   :  { %v890_v54 = vmul.f32 %v889_v51, %v865_v47  ;;  %v929_v55 = vsel %vm926_vm11, %v928_v50, %v924_v53  ;;  %v4095_v33 = vor.u32 %v4814_v29, %v4094_v28  ;;  %v4024_v47 = vld [vmem:[#allocation7 + $0x68] sm:$0xf0]  ;;  %v4087_v48 = vor.u32 %v4812_v32, %v4086_v40  ;;  %v4811_v51 = vld [vmem:[#allocation7 + $0xe4] sm:$0xf]  ;;  %v4014_v53 = vld [vmem:[#allocation7 + $0x50] sm:$0xf] }
 0x2c0   :  { %v930_v57 = vmul.f32 %v929_v55, %v905_v52  ;;  %1520 = vmatpush.bf16.msrb.mxu0 %v4031_v56  ;;  %v4027_v50 = vor.u32 %v4795_v42, %v4024_v47  ;;  %v4088_v52 = vld [vmem:[#allocation7 + $0xe8] sm:$0xf0]  ;;  %v4794_v55 = vld [vmem:[#allocation7 + $0x54] sm:$0xf0]  ;;  %v4064_v27 = vld [vmem:[#allocation7 + $0xb8] sm:$0xf0] }
 0x2c1   :  { %v3840_v58 = vclamps-f32 %v890_v54, 1.0  ;;  %1533 = vmatpush.bf16.msrb.mxu1 %v4095_v33  ;;  %v4091_v54 = vor.u32 %v4811_v51, %v4088_v52  ;;  %v1214_v62 = vld [vmem:[%s5440_s3] sm:$0x3]  ;;  %v4788_v33 = vld [vmem:[#allocation7 + $0x24] sm:$0xf0]  ;;  %v4055_v52 = vor.u32 %v4804_v35, %v4054_v34  ;;  %s6000_s3 = sld [smem:[#allocation32_spill]] }
 0x2c2   :  { %v3841_v61 = vclamps-f32 %v930_v57, 1.0  ;;  %v4078_v57 = vld [vmem:[#allocation7 + $0xd0] sm:$0xf]  ;;  %1547 = vmatpush.bf16.msrb.mxu2 %v4027_v50  ;;  %v3990_v29 = vld [vmem:[#allocation7 + $0x20] sm:$0xf]  ;;  %v1216_v32 = vperm.slane %v1214_v62, 0 }
 0x2c3   :  { %v933_v0 = vadd.f32 1.0, %v3840_v58  ;;  %v4810_v58 = vld [vmem:[#allocation7 + $0xd4] sm:$0xf0]  ;;  %1560 = vmatpush.bf16.msrb.mxu3 %v4091_v54  ;;  %v3992_v39 = vld [vmem:[#allocation7 + $0x28] sm:$0xf0]  ;;  %v1217_v42 = vperm.slane %v1214_v62, 1  ;;  %v3991_v50 = vor.u32 %v4788_v33, %v3990_v29 }
 0x2c4   :  { %v934_v1 = vadd.f32 1.0, %v3841_v61  ;;  %1521 = vmatpush.bf16.msrb.mxu0 %v4023_v41  ;;  %v4015_v61 = vor.u32 %v4794_v55, %v4014_v53  ;;  %v4803_v40 = vld [vmem:[#allocation7 + $0xa4] sm:$0xf]  ;;  %v4056_v41 = vld [vmem:[#allocation7 + $0xa8] sm:$0xf0]  ;;  %v3995_v53 = vor.u32 %v4787_v38, %v3992_v39 }
 0x2c5   :  { %v5719_v2 = vmul.f32 %v933_v0, %v849_v63  ;;  %v4793_v63 = vld [vmem:[#allocation7 + $0x54] sm:$0xf]  ;;  %v4016_v0 = vld [vmem:[#allocation7 + $0x58] sm:$0xf0]  ;;  %1534 = vmatpush.bf16.msrb.mxu1 %v4087_v48  ;;  %v1222_v47 = vld [vmem:[%s5995_s5] sm:$0x3] }
 0x2c6   :  { %v5721_v3 = vmul.f32 %v934_v1, %v850_v46  ;;  %v4809_v46 = vld [vmem:[#allocation7 + $0xd4] sm:$0xf]  ;;  %v4079_v1 = vor.u32 %v4810_v58, %v4078_v57  ;;  %v3982_v51 = vld [vmem:[#allocation7 + $0x10] sm:$0xf]  ;;  %v4786_v54 = vld [vmem:[#allocation7 + $0x14] sm:$0xf0] }
 0x2c7   :  { %v937_v49 = vpack.c.bf16 %v5719_v2, %v5719_v2  ;;  %v4046_v55 = vld [vmem:[#allocation7 + $0x90] sm:$0xf]  ;;  %v4802_v57 = vld [vmem:[#allocation7 + $0x94] sm:$0xf0] }
 0x2c8   :  { %v938_v4 = vpack.c.bf16 %v5721_v3, %v5721_v3  ;;  %1522 = vmatpush.bf16.msrb.mxu0 %v4015_v61  ;;  %v4785_v61 = vld [vmem:[#allocation7 + $0x14] sm:$0xf] }
 0x2c9   :  { %1145 = vmatmul.bf16.vlgmr.msra.gmra.mxu0 %v937_v49  ;;  %1171 = vmatmul.bf16.vlgmr.msra.gmra.mxu2 %v937_v49  ;;  %v4019_v49 = vor.u32 %v4793_v63, %v4016_v0  ;;  %v3984_v63 = vld [vmem:[#allocation7 + $0x18] sm:$0xf0]  ;;  %v1224_v0 = vperm.slane %v1222_v47, 0 }
 0x2ca   :  { %1158 = vmatmul.bf16.vlgmr.msra.gmra.mxu1 %v938_v4  ;;  %1184 = vmatmul.bf16.vlgmr.msra.gmra.mxu3 %v938_v4  ;;  %v4080_v4 = vld [vmem:[#allocation7 + $0xd8] sm:$0xf0] }
 0x2cb   :  { %1535 = vmatpush.bf16.msrb.mxu1 %v4079_v1  ;;  %1548 = vmatpush.bf16.msrb.mxu2 %v4019_v49 }
 0x346   :  { %v1146_v43 = vpop.f32.mrf.mxu0 }
 0x347   :  { %v1159_v7 = vpop.f32.mrf.mxu1  ;;  %v1147_v8 = vadd.f32 %v1146_v43, %v973_v6  ;;  %v4792_v43 = vld [vmem:[#allocation7 + $0x44] sm:$0xf0]  ;;  %v4083_v6 = vor.u32 %v4809_v46, %v4080_v4  ;;  %v1225_v46 = vperm.slane %v1222_v47, 1  ;;  %v4801_v4 = vld [vmem:[#allocation7 + $0x94] sm:$0xf] }
 0x349   :  { %v1160_v13 = vadd.f32 %v1159_v7, %v1147_v8  ;;  %v4070_v7 = vld [vmem:[#allocation7 + $0xc0] sm:$0xf]  ;;  %v4791_v8 = vld [vmem:[#allocation7 + $0x44] sm:$0xf]  ;;  %1561 = vmatpush.bf16.msrb.mxu3 %v4083_v6  ;;  %v4047_v6 = vor.u32 %v4802_v57, %v4046_v55 }
 0x34c   :  { %v1172_v9 = vpop.f32.mrf.mxu2 }
 0x34d   :  { %v1173_v10 = vadd.f32 %v1172_v9, %v974_v45  ;;  %v1185_v11 = vpop.f32.mrf.mxu3  ;;  %v4808_v45 = vld [vmem:[#allocation7 + $0xc4] sm:$0xf0] }
 0x34e   :  { %v1148_v12 = vpop.f32.mrf.mxu0 }
 0x34f   :  { %v1186_v14 = vadd.f32 %v1185_v11, %v1173_v10  ;;  %v1161_v15 = vpop.f32.mrf.mxu1  ;;  %v4008_v10 = vld [vmem:[#allocation7 + $0x48] sm:$0xf0]  ;;  %v4807_v11 = vld [vmem:[#allocation7 + $0xc4] sm:$0xf] }
 0x350   :  { %v4072_v12 = vld [vmem:[#allocation7 + $0xc8] sm:$0xf0]  ;;  %v4071_v15 = vor.u32 %v4808_v45, %v4070_v7 }
 0x351   :  { %v1189_v16 = vadd.f32 %v1186_v14, %v1160_v13 }
 0x352   :  { %1536 = vmatpush.bf16.msrb.mxu1 %v4071_v15 }
 0x353   :  { %1190 = vadd.xlane.f32.xlu1 %v1189_v16  ;;  %v4011_v16 = vor.u32 %v4791_v8, %v4008_v10  ;;  %v3987_v8 = vor.u32 %v4785_v61, %v3984_v63  ;;  %v4784_v10 = vld [vmem:[#allocation7 + $0x4] sm:$0xf0] }
 0x354   :  { %v1174_v17 = vpop.f32.mrf.mxu2 }
 0x355   :  { %v1187_v18 = vpop.f32.mrf.mxu3  ;;  %v3998_v17 = vld [vmem:[#allocation7 + $0x30] sm:$0xf]  ;;  %1549 = vmatpush.bf16.msrb.mxu2 %v4011_v16  ;;  %v4799_v16 = vld [vmem:[#allocation7 + $0x84] sm:$0xf] }
 0x356   :  { %v4790_v18 = vld [vmem:[#allocation7 + $0x34] sm:$0xf0] }
 0x357   :  { %v3999_v56 = vor.u32 %v4790_v18, %v3998_v17  ;;  %v4040_v17 = vld [vmem:[#allocation7 + $0x88] sm:$0xf0] }
 0x3c6   :  { %v1191_v19 = vpop.xlane.xlu1 %1190 }
 0x3c7   :  { %v1192_v20 = vmul.f32 %v1191_v19, %v5680_v44  ;;  %v4062_v19 = vld [vmem:[#allocation7 + $0xb0] sm:$0xf] }
 0x3c9   :  { %v5729_v21 = vsub.f32 %v1160_v13, %v1192_v20  ;;  %v5731_v22 = vsub.f32 %v1186_v14, %v1192_v20  ;;  %v4007_v14 = vor.u32 %v4792_v43, %v4006_v5  ;;  %v4048_v5 = vld [vmem:[#allocation7 + $0x98] sm:$0xf0]  ;;  %v3983_v43 = vor.u32 %v4786_v54, %v3982_v51 }
 0x3cb   :  { %v1195_v23 = vmul.f32 %v5729_v21, %v5729_v21  ;;  %v1196_v24 = vmul.f32 %v5731_v22, %v5731_v22  ;;  %1523 = vmatpush.bf16.msrb.mxu0 %v4007_v14  ;;  %v4783_v14 = vld [vmem:[#allocation7 + $0x4] sm:$0xf] }
 0x3cd   :  { %v1197_v25 = vadd.f32 %v1196_v24, %v1195_v23  ;;  %v4075_v23 = vor.u32 %v4807_v11, %v4072_v12  ;;  %v4806_v24 = vld [vmem:[#allocation7 + $0xb4] sm:$0xf0]  ;;  %v4038_v11 = vld [vmem:[#allocation7 + $0x80] sm:$0xf]  ;;  %v4051_v12 = vor.u32 %v4801_v4, %v4048_v5 }
 0x3ce   :  { %v4063_v60 = vor.u32 %v4806_v24, %v4062_v19 }
 0x3cf   :  { %1198 = vadd.xlane.f32.xlu1 %v1197_v25  ;;  %v4789_v25 = vld [vmem:[#allocation7 + $0x34] sm:$0xf]  ;;  %1562 = vmatpush.bf16.msrb.mxu3 %v4075_v23 }
 0x3d0   :  { %1524 = vmatpush.bf16.msrb.mxu0 %v3999_v56  ;;  %1537 = vmatpush.bf16.msrb.mxu1 %v4063_v60 }
 0x3d4   :  { %1525 = vmatpush.bf16.msrb.mxu0 %v3991_v50  ;;  %1538 = vmatpush.bf16.msrb.mxu1 %v4055_v52 }
 0x3d8   :  { %1526 = vmatpush.bf16.msrb.mxu0 %v3983_v43  ;;  %1539 = vmatpush.bf16.msrb.mxu1 %v4047_v6 }
 0x442   :  { %v1199_v26 = vpop.xlane.xlu1 %1198 }
 0x443   :  { %v1200_v59 = vmul.f32 %v1199_v26, %v5680_v44  ;;  %v4000_v26 = vld [vmem:[#allocation7 + $0x38] sm:$0xf0] }
 0x444   :  { %v4003_v30 = vor.u32 %v4789_v25, %v4000_v26  ;;  %v4043_v25 = vor.u32 %v4799_v16, %v4040_v17 }
 0x445   :  { %v5738_v31 = vadd.f32 1e-05, %v1200_v59  ;;  %v4805_v59 = vld [vmem:[#allocation7 + $0xb4] sm:$0xf] }
 0x446   :  { %v4067_v37 = vor.u32 %v4805_v59, %v4064_v27  ;;  %1550 = vmatpush.bf16.msrb.mxu2 %v4003_v30 }
 0x447   :  { %5024 = vrsqrt.f32 %v5738_v31  ;;  %vm1208_vm13 = vweird.f32 %v5738_v31 }
 0x448   :  { %1563 = vmatpush.bf16.msrb.mxu3 %v4067_v37 }
 0x44a   :  { %1551 = vmatpush.bf16.msrb.mxu2 %v3995_v53 }
 0x44d   :  { %v5025_v9 = vpop.eup %5024 }
 0x44e   :  { %v1203_v13 = vmul.f32 %v5025_v9, %v5738_v31  ;;  %vm1209_vm12 = vweird.f32 %v5025_v9  ;;  %v4059_v31 = vor.u32 %v4803_v40, %v4056_v41  ;;  %1552 = vmatpush.bf16.msrb.mxu2 %v3987_v8 }
 0x44f   :  { %vm1210_vm14 = vmor %vm1208_vm13, %vm1209_vm12 }
 0x450   :  { %v1204_v20 = vmul.f32 %v5025_v9, %v1203_v13  ;;  %1564 = vmatpush.bf16.msrb.mxu3 %v4059_v31  ;;  %v4800_v13 = vld [vmem:[#allocation7 + $0x84] sm:$0xf0] }
 0x451   :  { %v4039_v23 = vor.u32 %v4800_v13, %v4038_v11 }
 0x452   :  { %v1205_v28 = vmul.f32 0.5, %v1204_v20 }
 0x453   :  { %1540 = vmatpush.bf16.msrb.mxu1 %v4039_v23 }
 0x454   :  { %v1206_v36 = vsub.f32 1.5, %v1205_v28  ;;  %1565 = vmatpush.bf16.msrb.mxu3 %v4051_v12 }
 0x456   :  { %v1207_v48 = vmul.f32 %v5025_v9, %v1206_v36 }
 0x458   :  { %v1211_v58 = vsel %vm1210_vm14, %v5025_v9, %v1207_v48  ;;  %v3974_v9 = vld [vmem:[#allocation7] sm:$0xf]  ;;  %1566 = vmatpush.bf16.msrb.mxu3 %v4043_v25 }
 0x459   :  { %v1212_v1 = vmul.f32 %v1211_v58, %v5729_v21  ;;  %v1213_v49 = vmul.f32 %v1211_v58, %v5731_v22  ;;  %v3976_v21 = vld [vmem:[#allocation7 + $0x8] sm:$0xf0]  ;;  %v3975_v18 = vor.u32 %v4784_v10, %v3974_v9 }
 0x45a   :  { %v3979_v24 = vor.u32 %v4783_v14, %v3976_v21 }
 0x45b   :  { %v1220_v7 = vmul.f32 %v1216_v32, %v1212_v1  ;;  %v1221_v45 = vmul.f32 %v1217_v42, %v1213_v49  ;;  %1527 = vmatpush.bf16.msrb.mxu0 %v3975_v18 }
 0x45c   :  { %1553 = vmatpush.bf16.msrb.mxu2 %v3979_v24 }
 0x45d   :  { %v5748_v15 = vadd.f32 %v1224_v0, %v1220_v7  ;;  %v5750_v22 = vadd.f32 %v1225_v46, %v1221_v45 }
 0x45f   :  { %v5753_v19 = vmul.f32 0.70710677, %v5748_v15  ;;  %v5756_v20 = vmul.f32 0.70710677, %v5750_v22 }
 0x461   :  { %v1234_v26 = vmul.f32 %v5753_v19, %v5753_v19  ;;  %v1274_v59 = vmul.f32 %v5756_v20, %v5756_v20 }
 0x463   :  { %v1235_v27 = vmin.f32 %v1234_v26, 16.0  ;;  %v1275_v62 = vmin.f32 %v1274_v59, 16.0 }
 0x465   :  { %v1236_v28 = vmul.f32 2.1237322e-06, %v1235_v27  ;;  %v1247_v56 = vmul.f32 3.8918573e-05, %v1235_v27  ;;  %v1276_v29 = vmul.f32 2.1237322e-06, %v1275_v62 }
 0x466   :  { %v1287_v60 = vmul.f32 3.8918573e-05, %v1275_v62 }
 0x467   :  { %v1237_v30 = vadd.f32 0.00028619796, %v1236_v28  ;;  %v1248_v33 = vadd.f32 0.001143296, %v1247_v56  ;;  %v1277_v34 = vadd.f32 0.00028619796, %v1276_v29 }
 0x468   :  { %v1288_v35 = vadd.f32 0.001143296, %v1287_v60 }
 0x469   :  { %v1238_v36 = vmul.f32 %v1237_v30, %v1235_v27  ;;  %v1249_v37 = vmul.f32 %v1248_v33, %v1235_v27  ;;  %v1278_v38 = vmul.f32 %v1277_v34, %v1275_v62 }
 0x46a   :  { %v1289_v39 = vmul.f32 %v1288_v35, %v1275_v62 }
 0x46b   :  { %v1239_v40 = vadd.f32 0.0036580483, %v1238_v36  ;;  %v1250_v41 = vadd.f32 0.014752088, %v1249_v37  ;;  %v1279_v47 = vadd.f32 0.0036580483, %v1278_v38 }
 0x46c   :  { %v1290_v32 = vadd.f32 0.014752088, %v1289_v39  ;;  %v1230_v37 = vmul.f32 0.5, %v5748_v15  ;;  %v1354_v15 = vld [vmem:[%s5996_s13] sm:$0x3] }
 0x46d   :  { %v1251_v42 = vmul.f32 %v1250_v41, %v1235_v27  ;;  %v1240_v50 = vmul.f32 %v1239_v40, %v1235_v27  ;;  %v1280_v54 = vmul.f32 %v1279_v47, %v1275_v62 }
 0x46e   :  { %v1291_v48 = vmul.f32 %v1290_v32, %v1275_v62 }
 0x46f   :  { %v1252_v51 = vadd.f32 0.112945676, %v1251_v42  ;;  %v1241_v57 = vadd.f32 0.05243302, %v1240_v50  ;;  %v1281_v63 = vadd.f32 0.05243302, %v1280_v54 }
 0x470   :  { %v1292_v52 = vadd.f32 0.112945676, %v1291_v48  ;;  %v1356_v48 = vperm.slane %v1354_v15, 0 }
 0x471   :  { %v1253_v53 = vmul.f32 %v1252_v51, %v1235_v27  ;;  %v1242_v46 = vmul.f32 %v1241_v57, %v1235_v27  ;;  %v1282_v4 = vmul.f32 %v1281_v63, %v1275_v62  ;;  %v1357_v51 = vperm.slane %v1354_v15, 1  ;;  %v4136_v15 = vld [vmem:[#allocation8 + $0x40] sm:$0xf] }
 0x472   :  { %v1293_v55 = vmul.f32 %v1292_v52, %v1275_v62 }
 0x473   :  { %v1254_v58 = vadd.f32 0.4994258, %v1253_v53  ;;  %v1243_v5 = vadd.f32 0.18741608, %v1242_v46  ;;  %v1283_v43 = vadd.f32 0.18741608, %v1282_v4 }
 0x474   :  { %v1294_v31 = vadd.f32 0.4994258, %v1293_v55 }
 0x475   :  { %v1255_v61 = vmul.f32 %v1254_v58, %v1235_v27  ;;  %v1244_v7 = vmul.f32 %v1243_v5, %v1235_v27  ;;  %v1284_v9 = vmul.f32 %v1283_v43, %v1275_v62 }
 0x476   :  { %v1295_v0 = vmul.f32 %v1294_v31, %v1275_v62 }
 0x477   :  { %v1256_v1 = vadd.f32 1.0, %v1255_v61  ;;  %v1245_v12 = vadd.f32 1.1283791, %v1244_v7  ;;  %v1285_v18 = vadd.f32 1.1283791, %v1284_v9 }
 0x478   :  { %v1296_v49 = vadd.f32 1.0, %v1295_v0  ;;  %v4224_v9 = vld [vmem:[#allocation8 + $0xf0] sm:$0xf] }
 0x479   :  { %5026 = vrcp.f32 %v1256_v1  ;;  %v1268_v13 = vand.u32 2147483648, %v1256_v1  ;;  %v1266_v16 = vand.u32 2147483647, %v1256_v1  ;;  %vm1262_vm1 = vweird.f32 %v1256_v1 }
 0x47a   :  { %5028 = vrcp.f32 %v1296_v49  ;;  %v1308_v17 = vand.u32 2147483648, %v1296_v49  ;;  %v1306_v24 = vand.u32 2147483647, %v1296_v49  ;;  %vm1302_vm3 = vweird.f32 %v1296_v49 }
 0x47b   :  { %v1269_v26 = vor.u32 1.1754944e-38, %v1268_v13  ;;  %v1246_v27 = vmul.f32 %v1245_v12, %v5753_v19  ;;  %vm1267_vm4 = vcmp.eq.f32.partialorder %v1266_v16, 8.507059e+37  ;;  %v1286_v29 = vmul.f32 %v1285_v18, %v5756_v20  ;;  %v4829_v12 = vld [vmem:[#allocation8 + $0x74] sm:$0xf]  ;;  %v4162_v13 = vld [vmem:[#allocation8 + $0x78] sm:$0xf0] }
 0x47c   :  { %v1309_v28 = vor.u32 1.1754944e-38, %v1308_v17  ;;  %vm1307_vm6 = vcmp.eq.f32.partialorder %v1306_v24, 8.507059e+37  ;;  %v1231_v19 = vmul.f32 0.5, %v5750_v22  ;;  %v4165_v16 = vor.u32 %v4829_v12, %v4162_v13  ;;  %v4845_v17 = vld [vmem:[#allocation8 + $0xf4] sm:$0xf] }
 0x47d   :  { %v4226_v18 = vld [vmem:[#allocation8 + $0xf8] sm:$0xf0]  ;;  %v4152_v24 = vld [vmem:[#allocation8 + $0x60] sm:$0xf] }
 0x47e   :  { %1929 = vmatpush.bf16.msra.mxu2 %v4165_v16  ;;  %v4184_v16 = vld [vmem:[#allocation8 + $0xa0] sm:$0xf] }
 0x47f   :  { %v5027_v6 = vpop.eup %5026 }
 0x480   :  { %v5029_v45 = vpop.eup %5028  ;;  %v1258_v8 = vmul.f32 %v5027_v6, %v1256_v1  ;;  %vm1263_vm15 = vweird.f32 %v5027_v6 }
 0x481   :  { %v1298_v10 = vmul.f32 %v5029_v45, %v1296_v49  ;;  %vm1303_vm0 = vweird.f32 %v5029_v45  ;;  %vm1264_vm2 = vmor %vm1262_vm1, %vm1263_vm15 }
 0x482   :  { %v1259_v11 = vsub.f32 1.0, %v1258_v8  ;;  %vm1304_vm5 = vmor %vm1302_vm3, %vm1303_vm0  ;;  %v4830_v8 = vld [vmem:[#allocation8 + $0x74] sm:$0xf0] }
 0x483   :  { %v1299_v14 = vsub.f32 1.0, %v1298_v10 }
 0x484   :  { %v1260_v21 = vmul.f32 %v5027_v6, %v1259_v11  ;;  %v4846_v11 = vld [vmem:[#allocation8 + $0xf4] sm:$0xf0] }
 0x485   :  { %v1300_v23 = vmul.f32 %v5029_v45, %v1299_v14 }
 0x486   :  { %v1261_v25 = vadd.f32 %v5027_v6, %v1260_v21  ;;  %v4225_v21 = vor.u32 %v4846_v11, %v4224_v9  ;;  %v4120_v11 = vld [vmem:[#allocation8 + $0x20] sm:$0xf] }
 0x487   :  { %v1301_v59 = vadd.f32 %v5029_v45, %v1300_v23  ;;  %v4229_v23 = vor.u32 %v4845_v17, %v4226_v18  ;;  %v4836_v17 = vld [vmem:[#allocation8 + $0xa4] sm:$0xf0] }
 0x488   :  { %v1265_v62 = vsel %vm1264_vm2, %v5027_v6, %v1261_v25  ;;  %v4828_v25 = vld [vmem:[#allocation8 + $0x64] sm:$0xf0]  ;;  %1916 = vmatpush.bf16.msra.mxu1 %v4225_v21 }
 0x489   :  { %v1270_v56 = vsel %vm1267_vm4, %v1269_v26, %v1265_v62  ;;  %v1305_v60 = vsel %vm1304_vm5, %v5029_v45, %v1301_v59  ;;  %v4160_v45 = vld [vmem:[#allocation8 + $0x70] sm:$0xf]  ;;  %v4216_v26 = vld [vmem:[#allocation8 + $0xe0] sm:$0xf]  ;;  %v4153_v59 = vor.u32 %v4828_v25, %v4152_v24  ;;  %v4827_v62 = vld [vmem:[#allocation8 + $0x64] sm:$0xf]  ;;  %1942 = vmatpush.bf16.msra.mxu3 %v4229_v23 }
 0x48a   :  { %v1271_v30 = vmul.f32 %v1270_v56, %v1246_v27  ;;  %v1310_v33 = vsel %vm1307_vm6, %v1309_v28, %v1305_v60  ;;  %v4161_v10 = vor.u32 %v4830_v8, %v4160_v45  ;;  %v4844_v27 = vld [vmem:[#allocation8 + $0xe4] sm:$0xf0]  ;;  %v4154_v28 = vld [vmem:[#allocation8 + $0x68] sm:$0xf0]  ;;  %v4843_v60 = vld [vmem:[#allocation8 + $0xe4] sm:$0xf] }
 0x48b   :  { %v1311_v34 = vmul.f32 %v1310_v33, %v1286_v29  ;;  %v4217_v56 = vor.u32 %v4844_v27, %v4216_v26  ;;  %v4157_v29 = vor.u32 %v4827_v62, %v4154_v28  ;;  %v4144_v33 = vld [vmem:[#allocation8 + $0x50] sm:$0xf]  ;;  %v4194_v45 = vld [vmem:[#allocation8 + $0xb8] sm:$0xf0]  ;;  %v1597_v8 = vld [vmem:[%s5997_s17] sm:$0x3] }
 0x48c   :  { %v3970_v35 = vclamps-f32 %v1271_v30, 1.0  ;;  %1903 = vmatpush.bf16.msra.mxu0 %v4161_v10  ;;  %v4218_v30 = vld [vmem:[#allocation8 + $0xe8] sm:$0xf0]  ;;  %v4820_v21 = vld [vmem:[#allocation8 + $0x24] sm:$0xf0]  ;;  %v1599_v27 = vperm.slane %v1597_v8, 0 }
 0x48d   :  { %v3971_v36 = vclamps-f32 %v1311_v34, 1.0  ;;  %v4221_v34 = vor.u32 %v4843_v60, %v4218_v30  ;;  %1917 = vmatpush.bf16.msra.mxu1 %v4217_v56  ;;  %1930 = vmatpush.bf16.msra.mxu2 %v4157_v29  ;;  %v4819_v24 = vld [vmem:[#allocation8 + $0x24] sm:$0xf]  ;;  %v4122_v25 = vld [vmem:[#allocation8 + $0x28] sm:$0xf0]  ;;  %v1600_v62 = vperm.slane %v1597_v8, 1  ;;  %v4121_v29 = vor.u32 %v4820_v21, %v4120_v11 }
 0x48e   :  { %v1314_v38 = vadd.f32 1.0, %v3970_v35  ;;  %v4826_v35 = vld [vmem:[#allocation8 + $0x54] sm:$0xf0]  ;;  %v4835_v26 = vld [vmem:[#allocation8 + $0xa4] sm:$0xf]  ;;  %v4185_v30 = vor.u32 %v4836_v17, %v4184_v16 }
 0x48f   :  { %v1315_v39 = vadd.f32 1.0, %v3971_v36  ;;  %v4208_v36 = vld [vmem:[#allocation8 + $0xd0] sm:$0xf]  ;;  %1943 = vmatpush.bf16.msra.mxu3 %v4221_v34  ;;  %v1605_v28 = vld [vmem:[%s5998_s21] sm:$0x3] }
 0x490   :  { %v1316_v40 = vmul.f32 %v1314_v38, %v1230_v37  ;;  %v4842_v37 = vld [vmem:[#allocation8 + $0xd4] sm:$0xf0]  ;;  %1904 = vmatpush.bf16.msra.mxu0 %v4153_v59  ;;  %v4145_v38 = vor.u32 %v4826_v35, %v4144_v33  ;;  %v4186_v59 = vld [vmem:[#allocation8 + $0xa8] sm:$0xf0]  ;;  %v4112_v60 = vld [vmem:[#allocation8 + $0x10] sm:$0xf]  ;;  %v4125_v33 = vor.u32 %v4819_v24, %v4122_v25 }
 0x491   :  { %v1317_v41 = vmul.f32 %v1315_v39, %v1231_v19  ;;  %v4825_v19 = vld [vmem:[#allocation8 + $0x54] sm:$0xf]  ;;  %v4146_v39 = vld [vmem:[#allocation8 + $0x58] sm:$0xf0]  ;;  %v4818_v34 = vld [vmem:[#allocation8 + $0x14] sm:$0xf0] }
 0x492   :  { %v5767_v32 = vadd.f32 %v1316_v40, %v5719_v2  ;;  %v4841_v40 = vld [vmem:[#allocation8 + $0xd4] sm:$0xf]  ;;  %v4176_v35 = vld [vmem:[#allocation8 + $0x90] sm:$0xf] }
 0x493   :  { %v5770_v20 = vadd.f32 %v1317_v41, %v5721_v3  ;;  %v4209_v41 = vor.u32 %v4842_v37, %v4208_v36  ;;  %v4834_v36 = vld [vmem:[#allocation8 + $0x94] sm:$0xf0] }
 0x494   :  { %v1320_v42 = vpack.c.bf16 %v5767_v32, %v5767_v32  ;;  %1905 = vmatpush.bf16.msra.mxu0 %v4145_v38  ;;  %v4817_v38 = vld [vmem:[#allocation8 + $0x14] sm:$0xf] }
 0x495   :  { %v1321_v47 = vpack.c.bf16 %v5770_v20, %v5770_v20  ;;  %1918 = vmatpush.bf16.msra.mxu1 %v4209_v41 }
 0x496   :  { %1528 = vmatmul.bf16.vlgmr.msrb.gmra.mxu0 %v1320_v42  ;;  %1554 = vmatmul.bf16.vlgmr.msrb.gmra.mxu2 %v1320_v42  ;;  %v4149_v42 = vor.u32 %v4825_v19, %v4146_v39  ;;  %v4114_v19 = vld [vmem:[#allocation8 + $0x18] sm:$0xf0]  ;;  %v1607_v39 = vperm.slane %v1605_v28, 0 }
 0x497   :  { %1541 = vmatmul.bf16.vlgmr.msrb.gmra.mxu1 %v1321_v47  ;;  %1567 = vmatmul.bf16.vlgmr.msrb.gmra.mxu3 %v1321_v47  ;;  %v4210_v47 = vld [vmem:[#allocation8 + $0xd8] sm:$0xf0] }
 0x498   :  { %1931 = vmatpush.bf16.msra.mxu2 %v4149_v42 }
 0x513   :  { %v1529_v22 = vpop.f32.mrf.mxu0 }
 0x514   :  { %v1542_v50 = vpop.f32.mrf.mxu1  ;;  %v1530_v2 = vadd.f32 %v1529_v22, %v1356_v48  ;;  %v4824_v22 = vld [vmem:[#allocation8 + $0x44] sm:$0xf0]  ;;  %v4213_v48 = vor.u32 %v4841_v40, %v4210_v47  ;;  %v1608_v40 = vperm.slane %v1605_v28, 1  ;;  %v4833_v47 = vld [vmem:[#allocation8 + $0x94] sm:$0xf] }
 0x516   :  { %v1543_v55 = vadd.f32 %v1542_v50, %v1530_v2  ;;  %v4200_v50 = vld [vmem:[#allocation8 + $0xc0] sm:$0xf]  ;;  %v4823_v2 = vld [vmem:[#allocation8 + $0x44] sm:$0xf]  ;;  %1944 = vmatpush.bf16.msra.mxu3 %v4213_v48  ;;  %v4177_v48 = vor.u32 %v4834_v36, %v4176_v35 }
 0x519   :  { %v1555_v52 = vpop.f32.mrf.mxu2 }
 0x51a   :  { %v1556_v53 = vadd.f32 %v1555_v52, %v1357_v51  ;;  %v1568_v3 = vpop.f32.mrf.mxu3  ;;  %v4840_v51 = vld [vmem:[#allocation8 + $0xc4] sm:$0xf0] }
 0x51b   :  { %v1531_v54 = vpop.f32.mrf.mxu0 }
 0x51c   :  { %v1569_v57 = vadd.f32 %v1568_v3, %v1556_v53  ;;  %v1544_v58 = vpop.f32.mrf.mxu1  ;;  %v4138_v53 = vld [vmem:[#allocation8 + $0x48] sm:$0xf0]  ;;  %v4839_v3 = vld [vmem:[#allocation8 + $0xc4] sm:$0xf] }
 0x51d   :  { %v4202_v54 = vld [vmem:[#allocation8 + $0xc8] sm:$0xf0]  ;;  %v4201_v58 = vor.u32 %v4840_v51, %v4200_v50 }
 0x51e   :  { %v1572_v31 = vadd.f32 %v1569_v57, %v1543_v55 }
 0x51f   :  { %1919 = vmatpush.bf16.msra.mxu1 %v4201_v58 }
 0x520   :  { %1573 = vadd.xlane.f32.xlu2 %v1572_v31  ;;  %v4141_v31 = vor.u32 %v4823_v2, %v4138_v53  ;;  %v4117_v2 = vor.u32 %v4817_v38, %v4114_v19  ;;  %v4816_v53 = vld [vmem:[#allocation8 + $0x4] sm:$0xf0] }
 0x521   :  { %v1557_v61 = vpop.f32.mrf.mxu2 }
 0x522   :  { %v1570_v63 = vpop.f32.mrf.mxu3  ;;  %v4128_v61 = vld [vmem:[#allocation8 + $0x30] sm:$0xf]  ;;  %1932 = vmatpush.bf16.msra.mxu2 %v4141_v31  ;;  %v4831_v31 = vld [vmem:[#allocation8 + $0x84] sm:$0xf] }
 0x523   :  { %v4822_v63 = vld [vmem:[#allocation8 + $0x34] sm:$0xf0] }
 0x524   :  { %v4129_v10 = vor.u32 %v4822_v63, %v4128_v61  ;;  %v4170_v61 = vld [vmem:[#allocation8 + $0x88] sm:$0xf0] }
 0x593   :  { %v1574_v0 = vpop.xlane.xlu2 %1573 }
 0x594   :  { %v1575_v46 = vmul.f32 %v1574_v0, %v5680_v44  ;;  %v4192_v0 = vld [vmem:[#allocation8 + $0xb0] sm:$0xf] }
 0x596   :  { %v5778_v1 = vsub.f32 %v1543_v55, %v1575_v46  ;;  %v5780_v49 = vsub.f32 %v1569_v57, %v1575_v46  ;;  %v4137_v57 = vor.u32 %v4824_v22, %v4136_v15  ;;  %v4178_v15 = vld [vmem:[#allocation8 + $0x98] sm:$0xf0]  ;;  %v4113_v22 = vor.u32 %v4818_v34, %v4112_v60 }
 0x598   :  { %v1578_v4 = vmul.f32 %v5778_v1, %v5778_v1  ;;  %v1579_v5 = vmul.f32 %v5780_v49, %v5780_v49  ;;  %1906 = vmatpush.bf16.msra.mxu0 %v4137_v57  ;;  %v4815_v57 = vld [vmem:[#allocation8 + $0x4] sm:$0xf] }
 0x59a   :  { %v1580_v43 = vadd.f32 %v1579_v5, %v1578_v4  ;;  %v4205_v4 = vor.u32 %v4839_v3, %v4202_v54  ;;  %v4838_v5 = vld [vmem:[#allocation8 + $0xb4] sm:$0xf0]  ;;  %v4168_v3 = vld [vmem:[#allocation8 + $0x80] sm:$0xf]  ;;  %v4181_v54 = vor.u32 %v4833_v47, %v4178_v15 }
 0x59b   :  { %v4193_v12 = vor.u32 %v4838_v5, %v4192_v0 }
 0x59c   :  { %1581 = vadd.xlane.f32.xlu2 %v1580_v43  ;;  %v4821_v43 = vld [vmem:[#allocation8 + $0x34] sm:$0xf]  ;;  %1945 = vmatpush.bf16.msra.mxu3 %v4205_v4 }
 0x59d   :  { %1907 = vmatpush.bf16.msra.mxu0 %v4129_v10  ;;  %1920 = vmatpush.bf16.msra.mxu1 %v4193_v12 }
 0x5a1   :  { %1908 = vmatpush.bf16.msra.mxu0 %v4121_v29  ;;  %1921 = vmatpush.bf16.msra.mxu1 %v4185_v30 }
 0x5a5   :  { %1909 = vmatpush.bf16.msra.mxu0 %v4113_v22  ;;  %1922 = vmatpush.bf16.msra.mxu1 %v4177_v48 }
 0x60f   :  { %v1582_v6 = vpop.xlane.xlu2 %1581 }
 0x610   :  { %v1583_v7 = vmul.f32 %v1582_v6, %v5680_v44  ;;  %v4130_v6 = vld [vmem:[#allocation8 + $0x38] sm:$0xf0] }
 0x611   :  { %v4133_v13 = vor.u32 %v4821_v43, %v4130_v6  ;;  %v4173_v43 = vor.u32 %v4831_v31, %v4170_v61 }
 0x612   :  { %v5787_v14 = vadd.f32 1e-05, %v1583_v7  ;;  %v4837_v7 = vld [vmem:[#allocation8 + $0xb4] sm:$0xf] }
 0x613   :  { %v4197_v23 = vor.u32 %v4837_v7, %v4194_v45  ;;  %1933 = vmatpush.bf16.msra.mxu2 %v4133_v13 }
 0x614   :  { %5030 = vrsqrt.f32 %v5787_v14  ;;  %vm1591_vm8 = vweird.f32 %v5787_v14 }
 0x615   :  { %1946 = vmatpush.bf16.msra.mxu3 %v4197_v23 }
 0x617   :  { %1934 = vmatpush.bf16.msra.mxu2 %v4125_v33 }
 0x61a   :  { %v5031_v52 = vpop.eup %5030 }
 0x61b   :  { %v1586_v55 = vmul.f32 %v5031_v52, %v5787_v14  ;;  %vm1592_vm7 = vweird.f32 %v5031_v52  ;;  %v4189_v14 = vor.u32 %v4835_v26, %v4186_v59  ;;  %1935 = vmatpush.bf16.msra.mxu2 %v4117_v2 }
 0x61c   :  { %vm1593_vm9 = vmor %vm1591_vm8, %vm1592_vm7 }
 0x61d   :  { %v1587_v46 = vmul.f32 %v5031_v52, %v1586_v55  ;;  %1947 = vmatpush.bf16.msra.mxu3 %v4189_v14  ;;  %v4832_v55 = vld [vmem:[#allocation8 + $0x84] sm:$0xf0] }
 0x61e   :  { %v4169_v4 = vor.u32 %v4832_v55, %v4168_v3 }
 0x61f   :  { %v1588_v9 = vmul.f32 0.5, %v1587_v46 }
 0x620   :  { %1923 = vmatpush.bf16.msra.mxu1 %v4169_v4 }
 0x621   :  { %v1589_v18 = vsub.f32 1.5, %v1588_v9  ;;  %1948 = vmatpush.bf16.msra.mxu3 %v4181_v54 }
 0x623   :  { %v1590_v56 = vmul.f32 %v5031_v52, %v1589_v18 }
 0x625   :  { %v1594_v37 = vsel %vm1593_vm9, %v5031_v52, %v1590_v56  ;;  %v4104_v52 = vld [vmem:[#allocation8] sm:$0xf]  ;;  %1949 = vmatpush.bf16.msra.mxu3 %v4173_v43 }
 0x626   :  { %v1595_v41 = vmul.f32 %v1594_v37, %v5778_v1  ;;  %v1596_v42 = vmul.f32 %v1594_v37, %v5780_v49  ;;  %v4106_v1 = vld [vmem:[#allocation8 + $0x8] sm:$0xf0]  ;;  %v4105_v63 = vor.u32 %v4816_v53, %v4104_v52 }
 0x627   :  { %v4109_v5 = vor.u32 %v4815_v57, %v4106_v1 }
 0x628   :  { %v1603_v50 = vmul.f32 %v1599_v27, %v1595_v41  ;;  %v1604_v51 = vmul.f32 %v1600_v62, %v1596_v42  ;;  %1910 = vmatpush.bf16.msra.mxu0 %v4105_v63 }
 0x629   :  { %1936 = vmatpush.bf16.msra.mxu2 %v4109_v5 }
 0x62a   :  { %v5797_v58 = vadd.f32 %v1607_v39, %v1603_v50  ;;  %v5799_v49 = vadd.f32 %v1608_v40, %v1604_v51 }
 0x62c   :  { %v5802_v0 = vmul.f32 0.70710677, %v5797_v58  ;;  %v5805_v46 = vmul.f32 0.70710677, %v5799_v49 }
 0x62e   :  { %v1617_v6 = vmul.f32 %v5802_v0, %v5802_v0  ;;  %v1657_v7 = vmul.f32 %v5805_v46, %v5805_v46 }
 0x630   :  { %v1618_v45 = vmin.f32 %v1617_v6, 16.0  ;;  %v1658_v8 = vmin.f32 %v1657_v7, 16.0 }
 0x632   :  { %v1619_v9 = vmul.f32 2.1237322e-06, %v1618_v45  ;;  %v1630_v10 = vmul.f32 3.8918573e-05, %v1618_v45  ;;  %v1659_v11 = vmul.f32 2.1237322e-06, %v1658_v8 }
 0x633   :  { %v1670_v12 = vmul.f32 3.8918573e-05, %v1658_v8 }
 0x634   :  { %v1620_v13 = vadd.f32 0.00028619796, %v1619_v9  ;;  %v1631_v21 = vadd.f32 0.001143296, %v1630_v10  ;;  %v1660_v16 = vadd.f32 0.00028619796, %v1659_v11 }
 0x635   :  { %v1671_v17 = vadd.f32 0.001143296, %v1670_v12 }
 0x636   :  { %v1621_v18 = vmul.f32 %v1620_v13, %v1618_v45  ;;  %v1632_v23 = vmul.f32 %v1631_v21, %v1618_v45  ;;  %v1661_v24 = vmul.f32 %v1660_v16, %v1658_v8 }
 0x637   :  { %v1672_v25 = vmul.f32 %v1671_v17, %v1658_v8 }
 0x638   :  { %v1622_v26 = vadd.f32 0.0036580483, %v1621_v18  ;;  %v1633_v59 = vadd.f32 0.014752088, %v1632_v23  ;;  %v1662_v28 = vadd.f32 0.0036580483, %v1661_v24 }
 0x639   :  { %v1673_v27 = vadd.f32 0.014752088, %v1672_v25  ;;  %v1613_v23 = vmul.f32 0.5, %v5797_v58  ;;  %v1737_v58 = vld [vmem:[%s5999_s29] sm:$0x3] }
 0x63a   :  { %v1634_v62 = vmul.f32 %v1633_v59, %v1618_v45  ;;  %v1623_v29 = vmul.f32 %v1622_v26, %v1618_v45  ;;  %v1663_v34 = vmul.f32 %v1662_v28, %v1658_v8 }
 0x63b   :  { %v1674_v56 = vmul.f32 %v1673_v27, %v1658_v8 }
 0x63c   :  { %v1635_v60 = vadd.f32 0.112945676, %v1634_v62  ;;  %v1624_v36 = vadd.f32 0.05243302, %v1623_v29  ;;  %v1664_v19 = vadd.f32 0.05243302, %v1663_v34 }
 0x63d   :  { %v1675_v30 = vadd.f32 0.112945676, %v1674_v56  ;;  %v1739_v56 = vperm.slane %v1737_v58, 0 }
 0x63e   :  { %v1636_v33 = vmul.f32 %v1635_v60, %v1618_v45  ;;  %v1625_v40 = vmul.f32 %v1624_v36, %v1618_v45  ;;  %v1665_v47 = vmul.f32 %v1664_v19, %v1658_v8  ;;  %v1740_v60 = vperm.slane %v1737_v58, 1  ;;  %v4266_v58 = vld [vmem:[#allocation10 + $0x40] sm:$0xf] }
 0x63f   :  { %v1676_v35 = vmul.f32 %v1675_v30, %v1658_v8 }
 0x640   :  { %v1637_v37 = vadd.f32 0.4994258, %v1636_v33  ;;  %v1626_v15 = vadd.f32 0.18741608, %v1625_v40  ;;  %v1666_v22 = vadd.f32 0.18741608, %v1665_v47 }
 0x641   :  { %v1677_v14 = vadd.f32 0.4994258, %v1676_v35 }
 0x642   :  { %v1638_v38 = vmul.f32 %v1637_v37, %v1618_v45  ;;  %v1627_v50 = vmul.f32 %v1626_v15, %v1618_v45  ;;  %v1667_v52 = vmul.f32 %v1666_v22, %v1658_v8 }
 0x643   :  { %v1678_v39 = vmul.f32 %v1677_v14, %v1658_v8 }
 0x644   :  { %v1639_v41 = vadd.f32 1.0, %v1638_v38  ;;  %v1628_v54 = vadd.f32 1.1283791, %v1627_v50  ;;  %v1668_v63 = vadd.f32 1.1283791, %v1667_v52 }
 0x645   :  { %v1679_v42 = vadd.f32 1.0, %v1678_v39  ;;  %v4354_v52 = vld [vmem:[#allocation10 + $0xf0] sm:$0xf] }
 0x646   :  { %5032 = vrcp.f32 %v1639_v41  ;;  %v1651_v55 = vand.u32 2147483648, %v1639_v41  ;;  %v1649_v31 = vand.u32 2147483647, %v1639_v41  ;;  %vm1645_vm12 = vweird.f32 %v1639_v41 }
 0x647   :  { %5034 = vrcp.f32 %v1679_v42  ;;  %v1691_v61 = vand.u32 2147483648, %v1679_v42  ;;  %v1689_v5 = vand.u32 2147483647, %v1679_v42  ;;  %vm1685_vm14 = vweird.f32 %v1679_v42 }
 0x648   :  { %v1652_v6 = vor.u32 1.1754944e-38, %v1651_v55  ;;  %v1629_v45 = vmul.f32 %v1628_v54, %v5802_v0  ;;  %vm1650_vm15 = vcmp.eq.f32.partialorder %v1649_v31, 8.507059e+37  ;;  %v1669_v11 = vmul.f32 %v1668_v63, %v5805_v46  ;;  %v4861_v54 = vld [vmem:[#allocation10 + $0x74] sm:$0xf]  ;;  %v4292_v55 = vld [vmem:[#allocation10 + $0x78] sm:$0xf0] }
 0x649   :  { %v1692_v9 = vor.u32 1.1754944e-38, %v1691_v61  ;;  %vm1690_vm1 = vcmp.eq.f32.partialorder %v1689_v5, 8.507059e+37  ;;  %v1614_v0 = vmul.f32 0.5, %v5799_v49  ;;  %v4295_v31 = vor.u32 %v4861_v54, %v4292_v55  ;;  %v4877_v61 = vld [vmem:[#allocation10 + $0xf4] sm:$0xf] }
 0x64a   :  { %v4356_v63 = vld [vmem:[#allocation10 + $0xf8] sm:$0xf0]  ;;  %v4282_v5 = vld [vmem:[#allocation10 + $0x60] sm:$0xf] }
 0x64b   :  { %2312 = vmatpush.bf16.msrb.mxu2 %v4295_v31  ;;  %v4314_v31 = vld [vmem:[#allocation10 + $0xa0] sm:$0xf] }
 0x64c   :  { %v5033_v48 = vpop.eup %5032 }
 0x64d   :  { %v5035_v51 = vpop.eup %5034  ;;  %v1641_v2 = vmul.f32 %v5033_v48, %v1639_v41  ;;  %vm1646_vm10 = vweird.f32 %v5033_v48 }
 0x64e   :  { %v1681_v53 = vmul.f32 %v5035_v51, %v1679_v42  ;;  %vm1686_vm11 = vweird.f32 %v5035_v51  ;;  %vm1647_vm13 = vmor %vm1645_vm12, %vm1646_vm10 }
 0x64f   :  { %v1642_v3 = vsub.f32 1.0, %v1641_v2  ;;  %vm1687_vm0 = vmor %vm1685_vm14, %vm1686_vm11  ;;  %v4862_v2 = vld [vmem:[#allocation10 + $0x74] sm:$0xf0] }
 0x650   :  { %v1682_v57 = vsub.f32 1.0, %v1681_v53 }
 0x651   :  { %v1643_v1 = vmul.f32 %v5033_v48, %v1642_v3  ;;  %v4878_v3 = vld [vmem:[#allocation10 + $0xf4] sm:$0xf0] }
 0x652   :  { %v1683_v4 = vmul.f32 %v5035_v51, %v1682_v57 }
 0x653   :  { %v1644_v43 = vadd.f32 %v5033_v48, %v1643_v1  ;;  %v4355_v1 = vor.u32 %v4878_v3, %v4354_v52  ;;  %v4250_v3 = vld [vmem:[#allocation10 + $0x20] sm:$0xf] }
 0x654   :  { %v1684_v7 = vadd.f32 %v5035_v51, %v1683_v4  ;;  %v4359_v4 = vor.u32 %v4877_v61, %v4356_v63  ;;  %v4868_v61 = vld [vmem:[#allocation10 + $0xa4] sm:$0xf0] }
 0x655   :  { %v1648_v8 = vsel %vm1647_vm13, %v5033_v48, %v1644_v43  ;;  %v4860_v43 = vld [vmem:[#allocation10 + $0x64] sm:$0xf0]  ;;  %2299 = vmatpush.bf16.msrb.mxu1 %v4355_v1 }
 0x656   :  { %v1653_v10 = vsel %vm1650_vm15, %v1652_v6, %v1648_v8  ;;  %v1688_v12 = vsel %vm1687_vm0, %v5035_v51, %v1684_v7  ;;  %v4290_v51 = vld [vmem:[#allocation10 + $0x70] sm:$0xf]  ;;  %v4346_v6 = vld [vmem:[#allocation10 + $0xe0] sm:$0xf]  ;;  %v4283_v7 = vor.u32 %v4860_v43, %v4282_v5  ;;  %v4859_v8 = vld [vmem:[#allocation10 + $0x64] sm:$0xf]  ;;  %2325 = vmatpush.bf16.msrb.mxu3 %v4359_v4 }
 0x657   :  { %v1654_v13 = vmul.f32 %v1653_v10, %v1629_v45  ;;  %v1693_v21 = vsel %vm1690_vm1, %v1692_v9, %v1688_v12  ;;  %v4291_v53 = vor.u32 %v4862_v2, %v4290_v51  ;;  %v4876_v45 = vld [vmem:[#allocation10 + $0xe4] sm:$0xf0]  ;;  %v4284_v9 = vld [vmem:[#allocation10 + $0x68] sm:$0xf0]  ;;  %v4875_v12 = vld [vmem:[#allocation10 + $0xe4] sm:$0xf] }
 0x658   :  { %v1694_v16 = vmul.f32 %v1693_v21, %v1669_v11  ;;  %v4347_v10 = vor.u32 %v4876_v45, %v4346_v6  ;;  %v4287_v11 = vor.u32 %v4859_v8, %v4284_v9  ;;  %v4274_v21 = vld [vmem:[#allocation10 + $0x50] sm:$0xf]  ;;  %v4324_v51 = vld [vmem:[#allocation10 + $0xb8] sm:$0xf0]  ;;  %v1980_v2 = vld [vmem:[%s6000_s3] sm:$0x3] }
 0x659   :  { %v4100_v17 = vclamps-f32 %v1654_v13, 1.0  ;;  %2286 = vmatpush.bf16.msrb.mxu0 %v4291_v53  ;;  %v4348_v13 = vld [vmem:[#allocation10 + $0xe8] sm:$0xf0]  ;;  %v4852_v1 = vld [vmem:[#allocation10 + $0x24] sm:$0xf0]  ;;  %v1982_v45 = vperm.slane %v1980_v2, 0 }
 0x65a   :  { %v4101_v18 = vclamps-f32 %v1694_v16, 1.0  ;;  %v4351_v16 = vor.u32 %v4875_v12, %v4348_v13  ;;  %2300 = vmatpush.bf16.msrb.mxu1 %v4347_v10  ;;  %2313 = vmatpush.bf16.msrb.mxu2 %v4287_v11  ;;  %v4851_v5 = vld [vmem:[#allocation10 + $0x24] sm:$0xf]  ;;  %v4252_v43 = vld [vmem:[#allocation10 + $0x28] sm:$0xf0]  ;;  %v1983_v8 = vperm.slane %v1980_v2, 1  ;;  %v4251_v11 = vor.u32 %v4852_v1, %v4250_v3 }
 0x65b   :  { %v1697_v24 = vadd.f32 1.0, %v4100_v17  ;;  %v4858_v17 = vld [vmem:[#allocation10 + $0x54] sm:$0xf0]  ;;  %v4867_v6 = vld [vmem:[#allocation10 + $0xa4] sm:$0xf]  ;;  %v4315_v13 = vor.u32 %v4868_v61, %v4314_v31 }
 0x65c   :  { %v1698_v25 = vadd.f32 1.0, %v4101_v18  ;;  %v4338_v18 = vld [vmem:[#allocation10 + $0xd0] sm:$0xf]  ;;  %2326 = vmatpush.bf16.msrb.mxu3 %v4351_v16  ;;  %v1988_v9 = vld [vmem:[%s6001_s8] sm:$0x3] }
 0x65d   :  { %v1699_v26 = vmul.f32 %v1697_v24, %v1613_v23  ;;  %v4874_v23 = vld [vmem:[#allocation10 + $0xd4] sm:$0xf0]  ;;  %2287 = vmatpush.bf16.msrb.mxu0 %v4283_v7  ;;  %v4275_v24 = vor.u32 %v4858_v17, %v4274_v21  ;;  %v4316_v7 = vld [vmem:[#allocation10 + $0xa8] sm:$0xf0]  ;;  %v4242_v12 = vld [vmem:[#allocation10 + $0x10] sm:$0xf]  ;;  %v4255_v21 = vor.u32 %v4851_v5, %v4252_v43 }
 0x65e   :  { %v1700_v59 = vmul.f32 %v1698_v25, %v1614_v0  ;;  %v4857_v0 = vld [vmem:[#allocation10 + $0x54] sm:$0xf]  ;;  %v4276_v25 = vld [vmem:[#allocation10 + $0x58] sm:$0xf0]  ;;  %v4850_v16 = vld [vmem:[#allocation10 + $0x14] sm:$0xf0] }
 0x65f   :  { %v5816_v27 = vadd.f32 %v1699_v26, %v5767_v32  ;;  %v4873_v26 = vld [vmem:[#allocation10 + $0xd4] sm:$0xf]  ;;  %v4306_v17 = vld [vmem:[#allocation10 + $0x90] sm:$0xf] }
 0x660   :  { %v5819_v46 = vadd.f32 %v1700_v59, %v5770_v20  ;;  %v4339_v59 = vor.u32 %v4874_v23, %v4338_v18  ;;  %v4866_v18 = vld [vmem:[#allocation10 + $0x94] sm:$0xf0] }
 0x661   :  { %v1703_v62 = vpack.c.bf16 %v5816_v27, %v5816_v27  ;;  %2288 = vmatpush.bf16.msrb.mxu0 %v4275_v24  ;;  %v4849_v24 = vld [vmem:[#allocation10 + $0x14] sm:$0xf] }
 0x662   :  { %v1704_v28 = vpack.c.bf16 %v5819_v46, %v5819_v46  ;;  %2301 = vmatpush.bf16.msrb.mxu1 %v4339_v59 }
 0x663   :  { %1911 = vmatmul.bf16.vlgmr.msra.gmra.mxu0 %v1703_v62  ;;  %1937 = vmatmul.bf16.vlgmr.msra.gmra.mxu2 %v1703_v62  ;;  %v4279_v62 = vor.u32 %v4857_v0, %v4276_v25  ;;  %v4244_v0 = vld [vmem:[#allocation10 + $0x18] sm:$0xf0]  ;;  %v1990_v25 = vperm.slane %v1988_v9, 0 }
 0x664   :  { %1924 = vmatmul.bf16.vlgmr.msra.gmra.mxu1 %v1704_v28  ;;  %1950 = vmatmul.bf16.vlgmr.msra.gmra.mxu3 %v1704_v28  ;;  %v4340_v28 = vld [vmem:[#allocation10 + $0xd8] sm:$0xf0] }
 0x665   :  { %2314 = vmatpush.bf16.msrb.mxu2 %v4279_v62 }
 0x6e0   :  { %v1912_v49 = vpop.f32.mrf.mxu0 }
 0x6e1   :  { %v1925_v29 = vpop.f32.mrf.mxu1  ;;  %v1913_v32 = vadd.f32 %v1912_v49, %v1739_v56  ;;  %v4856_v49 = vld [vmem:[#allocation10 + $0x44] sm:$0xf0]  ;;  %v4343_v56 = vor.u32 %v4873_v26, %v4340_v28  ;;  %v1991_v26 = vperm.slane %v1988_v9, 1  ;;  %v4865_v28 = vld [vmem:[#allocation10 + $0x94] sm:$0xf] }
 0x6e3   :  { %v1926_v35 = vadd.f32 %v1925_v29, %v1913_v32  ;;  %v4330_v29 = vld [vmem:[#allocation10 + $0xc0] sm:$0xf]  ;;  %v4855_v32 = vld [vmem:[#allocation10 + $0x44] sm:$0xf]  ;;  %2327 = vmatpush.bf16.msrb.mxu3 %v4343_v56  ;;  %v4307_v56 = vor.u32 %v4866_v18, %v4306_v17 }
 0x6e6   :  { %v1938_v30 = vpop.f32.mrf.mxu2 }
 0x6e7   :  { %v1939_v33 = vadd.f32 %v1938_v30, %v1740_v60  ;;  %v1951_v20 = vpop.f32.mrf.mxu3  ;;  %v4872_v60 = vld [vmem:[#allocation10 + $0xc4] sm:$0xf0] }
 0x6e8   :  { %v1914_v34 = vpop.f32.mrf.mxu0 }
 0x6e9   :  { %v1952_v36 = vadd.f32 %v1951_v20, %v1939_v33  ;;  %v1927_v37 = vpop.f32.mrf.mxu1  ;;  %v4268_v33 = vld [vmem:[#allocation10 + $0x48] sm:$0xf0]  ;;  %v4871_v20 = vld [vmem:[#allocation10 + $0xc4] sm:$0xf] }
 0x6ea   :  { %v4332_v34 = vld [vmem:[#allocation10 + $0xc8] sm:$0xf0]  ;;  %v4331_v37 = vor.u32 %v4872_v60, %v4330_v29 }
 0x6eb   :  { %v1955_v14 = vadd.f32 %v1952_v36, %v1926_v35 }
 0x6ec   :  { %2302 = vmatpush.bf16.msrb.mxu1 %v4331_v37 }
 0x6ed   :  { %1956 = vadd.xlane.f32.xlu0 %v1955_v14  ;;  %v4271_v14 = vor.u32 %v4855_v32, %v4268_v33  ;;  %v4247_v32 = vor.u32 %v4849_v24, %v4244_v0  ;;  %v4848_v33 = vld [vmem:[#allocation10 + $0x4] sm:$0xf0] }
 0x6ee   :  { %v1940_v38 = vpop.f32.mrf.mxu2 }
 0x6ef   :  { %v1953_v19 = vpop.f32.mrf.mxu3  ;;  %v4258_v38 = vld [vmem:[#allocation10 + $0x30] sm:$0xf]  ;;  %2315 = vmatpush.bf16.msrb.mxu2 %v4271_v14  ;;  %v4863_v14 = vld [vmem:[#allocation10 + $0x84] sm:$0xf] }
 0x6f0   :  { %v4854_v19 = vld [vmem:[#allocation10 + $0x34] sm:$0xf0] }
 0x6f1   :  { %v4259_v53 = vor.u32 %v4854_v19, %v4258_v38  ;;  %v4300_v38 = vld [vmem:[#allocation10 + $0x88] sm:$0xf0] }
 0x760   :  { %v1957_v39 = vpop.xlane.xlu0 %1956 }
 0x761   :  { %v1958_v40 = vmul.f32 %v1957_v39, %v5680_v44  ;;  %v4322_v39 = vld [vmem:[#allocation10 + $0xb0] sm:$0xf] }
 0x763   :  { %v5827_v41 = vsub.f32 %v1926_v35, %v1958_v40  ;;  %v5829_v42 = vsub.f32 %v1952_v36, %v1958_v40  ;;  %v4267_v36 = vor.u32 %v4856_v49, %v4266_v58  ;;  %v4308_v58 = vld [vmem:[#allocation10 + $0x98] sm:$0xf0]  ;;  %v4243_v49 = vor.u32 %v4850_v16, %v4242_v12 }
 0x765   :  { %v1961_v47 = vmul.f32 %v5827_v41, %v5827_v41  ;;  %v1962_v15 = vmul.f32 %v5829_v42, %v5829_v42  ;;  %2289 = vmatpush.bf16.msrb.mxu0 %v4267_v36  ;;  %v4847_v36 = vld [vmem:[#allocation10 + $0x4] sm:$0xf] }
 0x767   :  { %v1963_v22 = vadd.f32 %v1962_v15, %v1961_v47  ;;  %v4335_v47 = vor.u32 %v4871_v20, %v4332_v34  ;;  %v4870_v15 = vld [vmem:[#allocation10 + $0xb4] sm:$0xf0]  ;;  %v4298_v20 = vld [vmem:[#allocation10 + $0x80] sm:$0xf]  ;;  %v4311_v34 = vor.u32 %v4865_v28, %v4308_v58 }
 0x768   :  { %v4323_v54 = vor.u32 %v4870_v15, %v4322_v39 }
 0x769   :  { %1964 = vadd.xlane.f32.xlu1 %v1963_v22  ;;  %v4853_v22 = vld [vmem:[#allocation10 + $0x34] sm:$0xf]  ;;  %2328 = vmatpush.bf16.msrb.mxu3 %v4335_v47 }
 0x76a   :  { %2290 = vmatpush.bf16.msrb.mxu0 %v4259_v53  ;;  %2303 = vmatpush.bf16.msrb.mxu1 %v4323_v54 }
 0x76e   :  { %2291 = vmatpush.bf16.msrb.mxu0 %v4251_v11  ;;  %2304 = vmatpush.bf16.msrb.mxu1 %v4315_v13 }
 0x772   :  { %2292 = vmatpush.bf16.msrb.mxu0 %v4243_v49  ;;  %2305 = vmatpush.bf16.msrb.mxu1 %v4307_v56 }
 0x7dc   :  { %v1965_v48 = vpop.xlane.xlu1 %1964 }
 0x7dd   :  { %v1966_v50 = vmul.f32 %v1965_v48, %v5680_v44  ;;  %v4260_v48 = vld [vmem:[#allocation10 + $0x38] sm:$0xf0] }
 0x7de   :  { %v4263_v55 = vor.u32 %v4853_v22, %v4260_v48  ;;  %v4303_v22 = vor.u32 %v4863_v14, %v4300_v38 }
 0x7df   :  { %v5836_v57 = vadd.f32 1e-05, %v1966_v50  ;;  %v4869_v50 = vld [vmem:[#allocation10 + $0xb4] sm:$0xf] }
 0x7e0   :  { %v4327_v4 = vor.u32 %v4869_v50, %v4324_v51  ;;  %2316 = vmatpush.bf16.msrb.mxu2 %v4263_v55 }
 0x7e1   :  { %5036 = vrsqrt.f32 %v5836_v57  ;;  %vm1974_vm3 = vweird.f32 %v5836_v57 }
 0x7e2   :  { %2329 = vmatpush.bf16.msrb.mxu3 %v4327_v4 }
 0x7e4   :  { %2317 = vmatpush.bf16.msrb.mxu2 %v4255_v21 }
 0x7e7   :  { %v5037_v30 = vpop.eup %5036 }
 0x7e8   :  { %v1969_v35 = vmul.f32 %v5037_v30, %v5836_v57  ;;  %vm1975_vm2 = vweird.f32 %v5037_v30  ;;  %v4319_v57 = vor.u32 %v4867_v6, %v4316_v7  ;;  %2318 = vmatpush.bf16.msrb.mxu2 %v4247_v32 }
 0x7e9   :  { %vm1976_vm4 = vmor %vm1974_vm3, %vm1975_vm2 }
 0x7ea   :  { %v1970_v40 = vmul.f32 %v5037_v30, %v1969_v35  ;;  %2330 = vmatpush.bf16.msrb.mxu3 %v4319_v57  ;;  %v4864_v35 = vld [vmem:[#allocation10 + $0x84] sm:$0xf0] }
 0x7eb   :  { %v4299_v47 = vor.u32 %v4864_v35, %v4298_v20 }
 0x7ec   :  { %v1971_v52 = vmul.f32 0.5, %v1970_v40 }
 0x7ed   :  { %2306 = vmatpush.bf16.msrb.mxu1 %v4299_v47 }
 0x7ee   :  { %v1972_v63 = vsub.f32 1.5, %v1971_v52  ;;  %2331 = vmatpush.bf16.msrb.mxu3 %v4311_v34 }
 0x7f0   :  { %v1973_v10 = vmul.f32 %v5037_v30, %v1972_v63 }
 0x7f2   :  { %v1977_v23 = vsel %vm1976_vm4, %v5037_v30, %v1973_v10  ;;  %v4234_v30 = vld [vmem:[#allocation10] sm:$0xf]  ;;  %2332 = vmatpush.bf16.msrb.mxu3 %v4303_v22 }
 0x7f3   :  { %v1978_v59 = vmul.f32 %v1977_v23, %v5827_v41  ;;  %v1979_v62 = vmul.f32 %v1977_v23, %v5829_v42  ;;  %v4236_v41 = vld [vmem:[#allocation10 + $0x8] sm:$0xf0]  ;;  %v4235_v19 = vor.u32 %v4848_v33, %v4234_v30 }
 0x7f4   :  { %v4239_v15 = vor.u32 %v4847_v36, %v4236_v41 }
 0x7f5   :  { %v1986_v29 = vmul.f32 %v1982_v45, %v1978_v59  ;;  %v1987_v60 = vmul.f32 %v1983_v8, %v1979_v62  ;;  %2293 = vmatpush.bf16.msrb.mxu0 %v4235_v19 }
 0x7f6   :  { %2319 = vmatpush.bf16.msrb.mxu2 %v4239_v15 }
 0x7f7   :  { %v5846_v37 = vadd.f32 %v1990_v25, %v1986_v29  ;;  %v5848_v42 = vadd.f32 %v1991_v26, %v1987_v60 }
 0x7f9   :  { %v5851_v39 = vmul.f32 0.70710677, %v5846_v37  ;;  %v5854_v40 = vmul.f32 0.70710677, %v5848_v42 }
 0x7fb   :  { %v2000_v48 = vmul.f32 %v5851_v39, %v5851_v39  ;;  %v2040_v50 = vmul.f32 %v5854_v40, %v5854_v40 }
 0x7fd   :  { %v2001_v51 = vmin.f32 %v2000_v48, 16.0  ;;  %v2041_v2 = vmin.f32 %v2040_v50, 16.0 }
 0x7ff   :  { %v2002_v52 = vmul.f32 2.1237322e-06, %v2001_v51  ;;  %v2013_v53 = vmul.f32 3.8918573e-05, %v2001_v51  ;;  %v2042_v3 = vmul.f32 2.1237322e-06, %v2041_v2 }
 0x800   :  { %v2053_v54 = vmul.f32 3.8918573e-05, %v2041_v2 }
 0x801   :  { %v2003_v55 = vadd.f32 0.00028619796, %v2002_v52  ;;  %v2014_v1 = vadd.f32 0.001143296, %v2013_v53  ;;  %v2043_v31 = vadd.f32 0.00028619796, %v2042_v3 }
 0x802   :  { %v2054_v61 = vadd.f32 0.001143296, %v2053_v54 }
 0x803   :  { %v2004_v63 = vmul.f32 %v2003_v55, %v2001_v51  ;;  %v2015_v4 = vmul.f32 %v2014_v1, %v2001_v51  ;;  %v2044_v5 = vmul.f32 %v2043_v31, %v2041_v2 }
 0x804   :  { %v2055_v43 = vmul.f32 %v2054_v61, %v2041_v2 }
 0x805   :  { %v2005_v6 = vadd.f32 0.0036580483, %v2004_v63  ;;  %v2016_v7 = vadd.f32 0.014752088, %v2015_v4  ;;  %v2045_v9 = vadd.f32 0.0036580483, %v2044_v5 }
 0x806   :  { %v2056_v45 = vadd.f32 0.014752088, %v2055_v43  ;;  %v1996_v4 = vmul.f32 0.5, %v5846_v37  ;;  %v2120_v37 = vld [vmem:[%s6002_s15] sm:$0x3] }
 0x807   :  { %v2017_v8 = vmul.f32 %v2016_v7, %v2001_v51  ;;  %v2006_v11 = vmul.f32 %v2005_v6, %v2001_v51  ;;  %v2046_v16 = vmul.f32 %v2045_v9, %v2041_v2 }
 0x808   :  { %v2057_v10 = vmul.f32 %v2056_v45, %v2041_v2 }
 0x809   :  { %v2018_v12 = vadd.f32 0.112945676, %v2017_v8  ;;  %v2007_v18 = vadd.f32 0.05243302, %v2006_v11  ;;  %v2047_v0 = vadd.f32 0.05243302, %v2046_v16 }
 0x80a   :  { %v2058_v13 = vadd.f32 0.112945676, %v2057_v10  ;;  %v2122_v10 = vperm.slane %v2120_v37, 0 }
 0x80b   :  { %v2019_v21 = vmul.f32 %v2018_v12, %v2001_v51  ;;  %v2008_v26 = vmul.f32 %v2007_v18, %v2001_v51  ;;  %v2048_v28 = vmul.f32 %v2047_v0, %v2041_v2  ;;  %v2123_v12 = vperm.slane %v2120_v37, 1 }
 0x80c   :  { %v2059_v17 = vmul.f32 %v2058_v13, %v2041_v2 }
 0x80d   :  { %v2020_v23 = vadd.f32 0.4994258, %v2019_v21  ;;  %v2009_v58 = vadd.f32 0.18741608, %v2008_v26  ;;  %v2049_v49 = vadd.f32 0.18741608, %v2048_v28 }
 0x80e   :  { %v2060_v57 = vadd.f32 0.4994258, %v2059_v17 }
 0x80f   :  { %v2021_v24 = vmul.f32 %v2020_v23, %v2001_v51  ;;  %v2010_v29 = vmul.f32 %v2009_v58, %v2001_v51  ;;  %v2050_v30 = vmul.f32 %v2049_v49, %v2041_v2 }
 0x810   :  { %v2061_v25 = vmul.f32 %v2060_v57, %v2041_v2 }
 0x811   :  { %v2022_v59 = vadd.f32 1.0, %v2021_v24  ;;  %v2011_v34 = vadd.f32 1.1283791, %v2010_v29  ;;  %v2051_v19 = vadd.f32 1.1283791, %v2050_v30 }
 0x812   :  { %v2062_v62 = vadd.f32 1.0, %v2061_v25 }
 0x813   :  { %5038 = vrcp.f32 %v2022_v59  ;;  %v2034_v35 = vand.u32 2147483648, %v2022_v59  ;;  %v2032_v14 = vand.u32 2147483647, %v2022_v59  ;;  %vm2028_vm7 = vweird.f32 %v2022_v59 }
 0x814   :  { %5040 = vrcp.f32 %v2062_v62  ;;  %v2074_v38 = vand.u32 2147483648, %v2062_v62  ;;  %v2072_v15 = vand.u32 2147483647, %v2062_v62  ;;  %vm2068_vm9 = vweird.f32 %v2062_v62 }
 0x815   :  { %v2035_v48 = vor.u32 1.1754944e-38, %v2034_v35  ;;  %v2012_v51 = vmul.f32 %v2011_v34, %v5851_v39  ;;  %vm2033_vm10 = vcmp.eq.f32.partialorder %v2032_v14, 8.507059e+37  ;;  %v2052_v3 = vmul.f32 %v2051_v19, %v5854_v40  ;;  %v4884_v34 = vld [vmem:[#allocation11 + $0x28] sm:$0xff]  ;;  %v4891_v14 = vld [vmem:[#allocation11 + $0x60] sm:$0xff] }
 0x816   :  { %v2075_v52 = vor.u32 1.1754944e-38, %v2074_v38  ;;  %vm2073_vm12 = vcmp.eq.f32.partialorder %v2072_v15, 8.507059e+37  ;;  %v1997_v39 = vmul.f32 0.5, %v5848_v42  ;;  %v4892_v35 = vld [vmem:[#allocation11 + $0x68] sm:$0xff]  ;;  %v4890_v15 = vld [vmem:[#allocation11 + $0x58] sm:$0xff] }
 0x819   :  { %v5039_v56 = vpop.eup %5038 }
 0x81a   :  { %v5041_v60 = vpop.eup %5040  ;;  %v2024_v32 = vmul.f32 %v5039_v56, %v2022_v59  ;;  %vm2029_vm5 = vweird.f32 %v5039_v56 }
 0x81b   :  { %v2064_v33 = vmul.f32 %v5041_v60, %v2062_v62  ;;  %vm2069_vm6 = vweird.f32 %v5041_v60  ;;  %vm2030_vm8 = vmor %vm2028_vm7, %vm2029_vm5 }
 0x81c   :  { %v2025_v20 = vsub.f32 1.0, %v2024_v32  ;;  %vm2070_vm11 = vmor %vm2068_vm9, %vm2069_vm6  ;;  %v4894_v32 = vld [vmem:[#allocation11 + $0x78] sm:$0xff] }
 0x81d   :  { %v2065_v36 = vsub.f32 1.0, %v2064_v33  ;;  %2616 = vmatpush.bf16.msra.mxu1 %v4894_v32  ;;  %v4885_v33 = vld [vmem:[#allocation11 + $0x30] sm:$0xff] }
 0x81e   :  { %v2026_v41 = vmul.f32 %v5039_v56, %v2025_v20  ;;  %v4893_v20 = vld [vmem:[#allocation11 + $0x70] sm:$0xff] }
 0x81f   :  { %v2066_v47 = vmul.f32 %v5041_v60, %v2065_v36 }
 0x820   :  { %v2027_v22 = vadd.f32 %v5039_v56, %v2026_v41  ;;  %v4883_v41 = vld [vmem:[#allocation11 + $0x20] sm:$0xff] }
 0x821   :  { %v2067_v50 = vadd.f32 %v5041_v60, %v2066_v47  ;;  %2617 = vmatpush.bf16.msra.mxu1 %v4893_v20  ;;  %v4882_v47 = vld [vmem:[#allocation11 + $0x18] sm:$0xff] }
 0x822   :  { %v2031_v2 = vsel %vm2030_vm8, %v5039_v56, %v2027_v22 }
 0x823   :  { %v2036_v53 = vsel %vm2033_vm10, %v2035_v48, %v2031_v2  ;;  %v2071_v54 = vsel %vm2070_vm11, %v5041_v60, %v2067_v50  ;;  %v4886_v60 = vld [vmem:[#allocation11 + $0x38] sm:$0xff]  ;;  %v2363_v48 = vld [vmem:[%s6003_s16] sm:$0x3]  ;;  %v4889_v2 = vld [vmem:[#allocation11 + $0x50] sm:$0xff] }
 0x824   :  { %v2037_v55 = vmul.f32 %v2036_v53, %v2012_v51  ;;  %v2076_v1 = vsel %vm2073_vm12, %v2075_v52, %v2071_v54  ;;  %2603 = vmatpush.bf16.msra.mxu0 %v4886_v60  ;;  %v4881_v51 = vld [vmem:[#allocation11 + $0x10] sm:$0xff]  ;;  %v2371_v52 = vld [vmem:[%s6004_s18] sm:$0x3]  ;;  %v2366_v54 = vperm.slane %v2363_v48, 1 }
 0x825   :  { %v2077_v31 = vmul.f32 %v2076_v1, %v2052_v3  ;;  %2618 = vmatpush.bf16.msra.mxu1 %v4892_v35  ;;  %v2365_v3 = vperm.slane %v2363_v48, 0  ;;  %v2373_v1 = vperm.slane %v2371_v52, 0 }
 0x826   :  { %v4230_v61 = vclamps-f32 %v2037_v55, 1.0 }
 0x827   :  { %v4231_v63 = vclamps-f32 %v2077_v31, 1.0  ;;  %v2374_v31 = vperm.slane %v2371_v52, 1 }
 0x828   :  { %v2080_v5 = vadd.f32 1.0, %v4230_v61  ;;  %2604 = vmatpush.bf16.msra.mxu0 %v4885_v33 }
 0x829   :  { %v2081_v43 = vadd.f32 1.0, %v4231_v63  ;;  %2619 = vmatpush.bf16.msra.mxu1 %v4891_v14 }
 0x82a   :  { %v2082_v6 = vmul.f32 %v2080_v5, %v1996_v4  ;;  %v4880_v4 = vld [vmem:[#allocation11 + $0x8] sm:$0xff] }
 0x82b   :  { %v2083_v7 = vmul.f32 %v2081_v43, %v1997_v39  ;;  %v4888_v5 = vld [vmem:[#allocation11 + $0x48] sm:$0xff] }
 0x82c   :  { %v5865_v45 = vadd.f32 %v2082_v6, %v5816_v27  ;;  %2605 = vmatpush.bf16.msra.mxu0 %v4884_v34 }
 0x82d   :  { %v5868_v40 = vadd.f32 %v2083_v7, %v5819_v46  ;;  %2620 = vmatpush.bf16.msra.mxu1 %v4890_v15 }
 0x82e   :  { %v2086_v8 = vpack.c.bf16 %v5865_v45, %v5865_v45 }
 0x82f   :  { %v2087_v9 = vpack.c.bf16 %v5868_v40, %v5868_v40 }
 0x830   :  { %2294 = vmatmul.bf16.vlgmr.msrb.gmra.mxu0 %v2086_v8  ;;  %2320 = vmatmul.bf16.vlgmr.msrb.gmra.mxu2 %v2086_v8  ;;  %v4879_v8 = vld [vmem:[#allocation11] sm:$0xff] }
 0x831   :  { %2307 = vmatmul.bf16.vlgmr.msrb.gmra.mxu1 %v2087_v9  ;;  %2333 = vmatmul.bf16.vlgmr.msrb.gmra.mxu3 %v2087_v9  ;;  %v4887_v9 = vld [vmem:[#allocation11 + $0x40] sm:$0xff] }
 0x832   :  { %2606 = vmatpush.bf16.msra.mxu0 %v4883_v41  ;;  %2621 = vmatpush.bf16.msra.mxu1 %v4889_v2 }
 0x836   :  { %2607 = vmatpush.bf16.msra.mxu0 %v4882_v47  ;;  %2622 = vmatpush.bf16.msra.mxu1 %v4888_v5 }
 0x83a   :  { %2608 = vmatpush.bf16.msra.mxu0 %v4881_v51  ;;  %2623 = vmatpush.bf16.msra.mxu1 %v4887_v9 }
 0x83e   :  { %2609 = vmatpush.bf16.msra.mxu0 %v4880_v4 }
 0x842   :  { %2610 = vmatpush.bf16.msra.mxu0 %v4879_v8 }
 0x8ad   :  { %v2295_v42 = vpop.f32.mrf.mxu0 }
 0x8ae   :  { %v2308_v11 = vpop.f32.mrf.mxu1  ;;  %v2296_v27 = vadd.f32 %v2295_v42, %v2122_v10 }
 0x8b0   :  { %v2309_v17 = vadd.f32 %v2308_v11, %v2296_v27 }
 0x8b3   :  { %v2321_v13 = vpop.f32.mrf.mxu2 }
 0x8b4   :  { %v2322_v21 = vadd.f32 %v2321_v13, %v2123_v12  ;;  %v2334_v46 = vpop.f32.mrf.mxu3 }
 0x8b5   :  { %v2297_v16 = vpop.f32.mrf.mxu0 }
 0x8b6   :  { %v2335_v18 = vadd.f32 %v2334_v46, %v2322_v21  ;;  %v2310_v23 = vpop.f32.mrf.mxu1 }
 0x8b8   :  { %v2338_v57 = vadd.f32 %v2335_v18, %v2309_v17 }
 0x8ba   :  { %2339 = vadd.xlane.f32.xlu2 %v2338_v57 }
 0x8bb   :  { %v2323_v24 = vpop.f32.mrf.mxu2 }
 0x8bc   :  { %v2336_v0 = vpop.f32.mrf.mxu3 }
 0x92d   :  { %v2340_v25 = vpop.xlane.xlu2 %2339 }
 0x92e   :  { %v2341_v26 = vmul.f32 %v2340_v25, %v5680_v44 }
 0x930   :  { %v2342_v59 = vsub.f32 %v2309_v17, %v2341_v26  ;;  %v2343_v62 = vsub.f32 %v2335_v18, %v2341_v26 }
 0x932   :  { %v2344_v28 = vmul.f32 %v2342_v59, %v2342_v59  ;;  %v2345_v58 = vmul.f32 %v2343_v62, %v2343_v62 }
 0x934   :  { %v2346_v49 = vadd.f32 %v2345_v58, %v2344_v28 }
 0x936   :  { %2347 = vadd.xlane.f32.xlu0 %v2346_v49 }
 0x9a9   :  { %v2348_v56 = vpop.xlane.xlu0 %2347 }
 0x9aa   :  { %v2349_v29 = vmul.f32 %v2348_v56, %v5680_v44 }
 0x9ac   :  { %v2350_v30 = vadd.f32 1e-05, %v2349_v29 }
 0x9ae   :  { %5042 = vrsqrt.f32 %v2350_v30  ;;  %vm2357_vm14 = vweird.f32 %v2350_v30 }
 0x9b4   :  { %v5043_v36 = vpop.eup %5042 }
 0x9b5   :  { %v2352_v38 = vmul.f32 %v5043_v36, %v2350_v30  ;;  %vm2358_vm13 = vweird.f32 %v5043_v36 }
 0x9b6   :  { %vm2359_vm15 = vmor %vm2357_vm14, %vm2358_vm13 }
 0x9b7   :  { %v2353_v19 = vmul.f32 %v5043_v36, %v2352_v38 }
 0x9b9   :  { %v2354_v22 = vmul.f32 0.5, %v2353_v19 }
 0x9bb   :  { %v2355_v50 = vsub.f32 1.5, %v2354_v22 }
 0x9bd   :  { %v2356_v53 = vmul.f32 %v5043_v36, %v2355_v50 }
 0x9bf   :  { %v2360_v55 = vsel %vm2359_vm15, %v5043_v36, %v2356_v53 }
 0x9c0   :  { %v2361_v61 = vmul.f32 %v2360_v55, %v2342_v59  ;;  %v2362_v63 = vmul.f32 %v2360_v55, %v2343_v62 }
 0x9c2   :  { %v2369_v39 = vmul.f32 %v2365_v3, %v2361_v61  ;;  %v2370_v43 = vmul.f32 %v2366_v54, %v2362_v63 }
 0x9c4   :  { %v5879_v6 = vadd.f32 %v2373_v1, %v2369_v39  ;;  %v5881_v7 = vadd.f32 %v2374_v31, %v2370_v43 }
 0x9c6   :  { %v5884_v37 = vmul.f32 0.70710677, %v5879_v6  ;;  %v5887_v42 = vmul.f32 0.70710677, %v5881_v7 }
 0x9c8   :  { %v2383_v10 = vmul.f32 %v5884_v37, %v5884_v37  ;;  %v2423_v11 = vmul.f32 %v5887_v42, %v5887_v42 }
 0x9ca   :  { %v2384_v12 = vmin.f32 %v2383_v10, 16.0  ;;  %v2424_v27 = vmin.f32 %v2423_v11, 16.0 }
 0x9cc   :  { %v2385_v13 = vmul.f32 2.1237322e-06, %v2384_v12  ;;  %v2396_v21 = vmul.f32 3.8918573e-05, %v2384_v12  ;;  %v2425_v46 = vmul.f32 2.1237322e-06, %v2424_v27 }
 0x9cd   :  { %v2436_v16 = vmul.f32 3.8918573e-05, %v2424_v27 }
 0x9ce   :  { %v2386_v17 = vadd.f32 0.00028619796, %v2385_v13  ;;  %v2397_v18 = vadd.f32 0.001143296, %v2396_v21  ;;  %v2426_v23 = vadd.f32 0.00028619796, %v2425_v46 }
 0x9cf   :  { %v2437_v57 = vadd.f32 0.001143296, %v2436_v16 }
 0x9d0   :  { %v2387_v24 = vmul.f32 %v2386_v17, %v2384_v12  ;;  %v2398_v0 = vmul.f32 %v2397_v18, %v2384_v12  ;;  %v2427_v25 = vmul.f32 %v2426_v23, %v2424_v27 }
 0x9d1   :  { %v2438_v26 = vmul.f32 %v2437_v57, %v2424_v27 }
 0x9d2   :  { %v2388_v59 = vadd.f32 0.0036580483, %v2387_v24  ;;  %v2399_v62 = vadd.f32 0.014752088, %v2398_v0  ;;  %v2428_v49 = vadd.f32 0.0036580483, %v2427_v25 }
 0x9d3   :  { %v2439_v28 = vadd.f32 0.014752088, %v2438_v26  ;;  %v2379_v0 = vmul.f32 0.5, %v5879_v6 }
 0x9d4   :  { %v2400_v58 = vmul.f32 %v2399_v62, %v2384_v12  ;;  %v2389_v29 = vmul.f32 %v2388_v59, %v2384_v12  ;;  %v2429_v33 = vmul.f32 %v2428_v49, %v2424_v27 }
 0x9d5   :  { %v2440_v56 = vmul.f32 %v2439_v28, %v2424_v27 }
 0x9d6   :  { %v2401_v60 = vadd.f32 0.112945676, %v2400_v58  ;;  %v2390_v34 = vadd.f32 0.05243302, %v2389_v29  ;;  %v2430_v14 = vadd.f32 0.05243302, %v2429_v33 }
 0x9d7   :  { %v2441_v32 = vadd.f32 0.112945676, %v2440_v56  ;;  %v5012_v56 = vld [vmem:[%s6005_s7] ss:$0 sm:$0xff]  ;;  %v5394_v33 = vmov 128.0  }
 0x9d8   :  { %v2402_v30 = vmul.f32 %v2401_v60, %v2384_v12  ;;  %v2391_v19 = vmul.f32 %v2390_v34, %v2384_v12  ;;  %v2431_v22 = vmul.f32 %v2430_v14, %v2424_v27 }
 0x9d9   :  { %v2442_v20 = vmul.f32 %v2441_v32, %v2424_v27 }
 0x9da   :  { %v2403_v35 = vadd.f32 0.4994258, %v2402_v30  ;;  %v2392_v48 = vadd.f32 0.18741608, %v2391_v19  ;;  %v2432_v50 = vadd.f32 0.18741608, %v2431_v22 }
 0x9db   :  { %v2443_v36 = vadd.f32 0.4994258, %v2442_v20  ;;  %v4909_v22 = vld [vmem:[#allocation13 + $0x74] sm:$0xf] }
 0x9dc   :  { %v2404_v41 = vmul.f32 %v2403_v35, %v2384_v12  ;;  %v2393_v2 = vmul.f32 %v2392_v48, %v2384_v12  ;;  %v2433_v3 = vmul.f32 %v2432_v50, %v2424_v27  ;;  %v4487_v50 = vld [vmem:[#allocation13 + $0x78] sm:$0xf0] }
 0x9dd   :  { %v2444_v38 = vmul.f32 %v2443_v36, %v2424_v27 }
 0x9de   :  { %v2405_v47 = vadd.f32 1.0, %v2404_v41  ;;  %v2394_v1 = vadd.f32 1.1283791, %v2393_v2  ;;  %v2434_v39 = vadd.f32 1.1283791, %v2433_v3 }
 0x9df   :  { %v2445_v15 = vadd.f32 1.0, %v2444_v38  ;;  %v4908_v2 = vld [vmem:[#allocation13 + $0x64] sm:$0xf0]  ;;  %v4479_v3 = vld [vmem:[#allocation13 + $0x68] sm:$0xf0] }
 0x9e0   :  { %5044 = vrcp.f32 %v2405_v47  ;;  %v2417_v31 = vand.u32 2147483648, %v2405_v47  ;;  %v2415_v4 = vand.u32 2147483647, %v2405_v47  ;;  %vm2411_vm2 = vweird.f32 %v2405_v47 }
 0x9e1   :  { %5046 = vrcp.f32 %v2445_v15  ;;  %v2457_v5 = vand.u32 2147483648, %v2445_v15  ;;  %v2455_v8 = vand.u32 2147483647, %v2445_v15  ;;  %vm2451_vm4 = vweird.f32 %v2445_v15 }
 0x9e2   :  { %v2418_v10 = vor.u32 1.1754944e-38, %v2417_v31  ;;  %v2395_v12 = vmul.f32 %v2394_v1, %v5884_v37  ;;  %vm2416_vm5 = vcmp.eq.f32.partialorder %v2415_v4, 8.507059e+37  ;;  %v2435_v46 = vmul.f32 %v2434_v39, %v5887_v42  ;;  %v4469_v1 = vld [vmem:[#allocation13 + $0x50] sm:$0xf]  ;;  %v4906_v31 = vld [vmem:[#allocation13 + $0x54] sm:$0xf0] }
 0x9e3   :  { %v2458_v13 = vor.u32 1.1754944e-38, %v2457_v5  ;;  %vm2456_vm7 = vcmp.eq.f32.partialorder %v2455_v8, 8.507059e+37  ;;  %v2380_v37 = vmul.f32 0.5, %v5881_v7  ;;  %5048 = vrcp.f32 %v5394_v33  ;;  %v4461_v8 = vld [vmem:[#allocation13 + $0x40] sm:$0xf] }
 0x9e4   :  { %v4470_v5 = vor.u32 %v4906_v31, %v4469_v1  ;;  %v4895_v33 = vld [vmem:[#allocation13 + $0x4] sm:$0xf] }
 0x9e6   :  { %v5045_v51 = vpop.eup %5044 }
 0x9e7   :  { %v5047_v52 = vpop.eup %5046  ;;  %v2407_v53 = vmul.f32 %v5045_v51, %v2405_v47  ;;  %vm2412_vm0 = vweird.f32 %v5045_v51  ;;  %v4485_v47 = vld [vmem:[#allocation13 + $0x70] sm:$0xf] }
 0x9e8   :  { %v2447_v54 = vmul.f32 %v5047_v52, %v2445_v15  ;;  %vm2452_vm1 = vweird.f32 %v5047_v52  ;;  %vm2413_vm3 = vmor %vm2411_vm2, %vm2412_vm0  ;;  %v4910_v15 = vld [vmem:[#allocation13 + $0x74] sm:$0xf0] }
 0x9e9   :  { %v2408_v55 = vsub.f32 1.0, %v2407_v53  ;;  %vm2453_vm6 = vmor %vm2451_vm4, %vm2452_vm1  ;;  %v5049_v20 = vpop.eup %5048  ;;  %v4486_v48 = vor.u32 %v4910_v15, %v4485_v47  ;;  %v4907_v53 = vld [vmem:[#allocation13 + $0x64] sm:$0xf] }
 0x9ea   :  { %v2448_v61 = vsub.f32 1.0, %v2447_v54  ;;  %v2633_v34 = vmul.f32 128.0, %v5049_v20  ;;  %vm2637_vm8 = vweird.f32 %v5049_v20 }
 0x9eb   :  { %v2409_v63 = vmul.f32 %v5045_v51, %v2408_v55  ;;  %2814 = vmatpush.bf16.msra.mxu2 %v4486_v48  ;;  %v4482_v55 = vor.u32 %v4907_v53, %v4479_v3 }
 0x9ec   :  { %v2449_v43 = vmul.f32 %v5047_v52, %v2448_v61  ;;  %v4905_v61 = vld [vmem:[#allocation13 + $0x54] sm:$0xf] }
 0x9ed   :  { %v2410_v9 = vadd.f32 %v5045_v51, %v2409_v63  ;;  %v4471_v63 = vld [vmem:[#allocation13 + $0x58] sm:$0xf0] }
 0x9ee   :  { %v2450_v11 = vadd.f32 %v5047_v52, %v2449_v43  ;;  %v4474_v43 = vor.u32 %v4905_v61, %v4471_v63 }
 0x9ef   :  { %v2414_v27 = vsel %vm2413_vm3, %v5045_v51, %v2410_v9  ;;  %v4477_v51 = vld [vmem:[#allocation13 + $0x60] sm:$0xf]  ;;  %v4904_v9 = vld [vmem:[#allocation13 + $0x44] sm:$0xf0] }
 0x9f0   :  { %v2419_v21 = vsel %vm2416_vm5, %v2418_v10, %v2414_v27  ;;  %v2454_v16 = vsel %vm2453_vm6, %v5047_v52, %v2450_v11  ;;  %v4490_v52 = vor.u32 %v4909_v22, %v4487_v50  ;;  %v4478_v54 = vor.u32 %v4908_v2, %v4477_v51  ;;  %v4903_v10 = vld [vmem:[#allocation13 + $0x44] sm:$0xf]  ;;  %v4463_v11 = vld [vmem:[#allocation13 + $0x48] sm:$0xf0] }
 0x9f1   :  { %v2420_v17 = vmul.f32 %v2419_v21, %v2395_v12  ;;  %v2459_v18 = vsel %vm2456_vm7, %v2458_v13, %v2454_v16  ;;  %v4462_v27 = vor.u32 %v4904_v9, %v4461_v8  ;;  %v4466_v13 = vor.u32 %v4903_v10, %v4463_v11  ;;  %v4453_v21 = vld [vmem:[#allocation13 + $0x30] sm:$0xf]  ;;  %v4901_v16 = vld [vmem:[#allocation13 + $0x34] sm:$0xf] }
 0x9f2   :  { %v2460_v23 = vmul.f32 %v2459_v18, %v2435_v46  ;;  %2827 = vmatpush.bf16.msra.mxu3 %v4490_v52  ;;  %2815 = vmatpush.bf16.msra.mxu2 %v4478_v54  ;;  %v4902_v46 = vld [vmem:[#allocation13 + $0x34] sm:$0xf0] }
 0x9f3   :  { %v4360_v57 = vclamps-f32 %v2420_v17, 1.0  ;;  %v4455_v17 = vld [vmem:[#allocation13 + $0x38] sm:$0xf0]  ;;  %v4454_v18 = vor.u32 %v4902_v46, %v4453_v21 }
 0x9f4   :  { %v4361_v24 = vclamps-f32 %v2460_v23, 1.0  ;;  %v4458_v23 = vor.u32 %v4901_v16, %v4455_v17 }
 0x9f5   :  { %v2463_v25 = vadd.f32 1.0, %v4360_v57  ;;  %v4445_v57 = vld [vmem:[#allocation13 + $0x20] sm:$0xf] }
 0x9f6   :  { %v2464_v26 = vadd.f32 1.0, %v4361_v24  ;;  %2828 = vmatpush.bf16.msra.mxu3 %v4482_v55  ;;  %2816 = vmatpush.bf16.msra.mxu2 %v4470_v5  ;;  %v4900_v24 = vld [vmem:[#allocation13 + $0x24] sm:$0xf0] }
 0x9f7   :  { %v2465_v59 = vmul.f32 %v2463_v25, %v2379_v0  ;;  %v4899_v0 = vld [vmem:[#allocation13 + $0x24] sm:$0xf]  ;;  %v4447_v25 = vld [vmem:[#allocation13 + $0x28] sm:$0xf0] }
 0x9f8   :  { %v2466_v62 = vmul.f32 %v2464_v26, %v2380_v37 }
 0x9f9   :  { %v2467_v28 = vadd.f32 %v2465_v59, %v5865_v45  ;;  %v2634_v45 = vsub.f32 1.0, %v2633_v34  ;;  %v4446_v59 = vor.u32 %v4900_v24, %v4445_v57 }
 0x9fa   :  { %v2468_v42 = vadd.f32 %v2466_v62, %v5868_v40  ;;  %2829 = vmatpush.bf16.msra.mxu3 %v4474_v43  ;;  %2817 = vmatpush.bf16.msra.mxu2 %v4462_v27  ;;  %v4450_v62 = vor.u32 %v4899_v0, %v4447_v25 }
 0x9fb   :  { %v2469_v58 = vpack.c.bf16 %v2467_v28, %v2467_v28  ;;  %v2635_v35 = vmul.f32 %v5049_v20, %v2634_v45  ;;  %v4437_v28 = vld [vmem:[#allocation13 + $0x10] sm:$0xf] }
 0x9fc   :  { %v2470_v49 = vpack.c.bf16 %v2468_v42, %v2468_v42  ;;  %v4898_v42 = vld [vmem:[#allocation13 + $0x14] sm:$0xf0] }
 0x9fd   :  { %2611 = vmatmul.bf16.vlgmr.msra.gmra.mxu0 %v2469_v58  ;;  %v2636_v40 = vadd.f32 %v5049_v20, %v2635_v35  ;;  %v5013_v35 = vld [vmem:[%s6006_s26] ss:$0 sm:$0xff] }
 0x9fe   :  { %2624 = vmatmul.bf16.vlgmr.msra.gmra.mxu1 %v2470_v49  ;;  %2830 = vmatpush.bf16.msra.mxu3 %v4466_v13  ;;  %v4897_v49 = vld [vmem:[#allocation13 + $0x14] sm:$0xf] }
 0x9ff   :  { %v2638_v36 = vsel %vm2637_vm8, %v5049_v20, %v2636_v40  ;;  %2818 = vmatpush.bf16.msra.mxu2 %v4454_v18  ;;  %v4431_v20 = vld [vmem:[#allocation13 + $0x8] sm:$0xf0] }
 0xa00   :  { %v4434_v40 = vor.u32 %v4895_v33, %v4431_v20 }
 0xa02   :  { %2831 = vmatpush.bf16.msra.mxu3 %v4458_v23 }
 0xa03   :  { %2819 = vmatpush.bf16.msra.mxu2 %v4446_v59 }
 0xa06   :  { %2832 = vmatpush.bf16.msra.mxu3 %v4450_v62  ;;  %v2728_v62 = vld [vmem:[%s6008_s2] sm:$0x3] }
 0xa7a   :  { %v2612_v29 = vpop.f32.mrf.mxu0 }
 0xa7b   :  { %v2613_v60 = vadd.f32 %v5012_v56, %v2612_v29  ;;  %v2625_v32 = vpop.f32.mrf.mxu1  ;;  %v4439_v56 = vld [vmem:[#allocation13 + $0x18] sm:$0xf0] }
 0xa7d   :  { %v2626_v30 = vadd.f32 %v2625_v32, %v2613_v60  ;;  %v4438_v60 = vor.u32 %v4898_v42, %v4437_v28  ;;  %v4442_v32 = vor.u32 %v4897_v49, %v4439_v56  ;;  %v2730_v28 = vperm.slane %v2728_v62, 0 }
 0xa7e   :  { %v2731_v42 = vperm.slane %v2728_v62, 1  ;;  %v4593_v62 = vld [vmem:[#allocation14 + $0xc8] sm:$0xf0] }
 0xa7f   :  { %2629 = vst [vmem:[#allocation17] sm:$0xff] %v2626_v30  ;;  %2630 = vadd.xlane.f32.xlu1 %v2626_v30  ;;  %2820 = vmatpush.bf16.msra.mxu2 %v4438_v60 }
 0xa80   :  { %2833 = vmatpush.bf16.msra.mxu3 %v4442_v32 }
 0xa82   :  { %v2614_v6 = vpop.f32.mrf.mxu0 }
 0xa83   :  { %v2627_v7 = vpop.f32.mrf.mxu1  ;;  %v4896_v6 = vld [vmem:[#allocation13 + $0x4] sm:$0xf0] }
 0xa84   :  { %2834 = vmatpush.bf16.msra.mxu3 %v4434_v40  ;;  %v4551_v40 = vld [vmem:[#allocation14 + $0x70] sm:$0xf] }
 0xaf2   :  { %v2631_v41 = vpop.xlane.xlu1 %2630 }
 0xaf3   :  { %v2639_v14 = vmul.f32 %v2638_v36, %v2631_v41 }
 0xaf5   :  { %v5900_v38 = vsub.f32 %v2626_v30, %v2639_v14  ;;  %v4429_v30 = vld [vmem:[#allocation13] sm:$0xf] }
 0xaf6   :  { %v4430_v45 = vor.u32 %v4896_v6, %v4429_v30  ;;  %v5014_v14 = vld [vmem:[%s6007_s28] ss:$0 sm:$0xff] }
 0xaf7   :  { %v2641_v19 = vmul.f32 %v5900_v38, %v5900_v38 }
 0xaf8   :  { %2821 = vmatpush.bf16.msra.mxu2 %v4430_v45 }
 0xaf9   :  { %2642 = vadd.xlane.f32.xlu2 %v2641_v19 }
 0xb6c   :  { %v2643_v4 = vpop.xlane.xlu2 %2642 }
 0xb6d   :  { %v2644_v39 = vmul.f32 %v2643_v4, %v2638_v36 }
 0xb6f   :  { %v2645_v12 = vadd.f32 1e-05, %v2644_v39 }
 0xb71   :  { %5050 = vrsqrt.f32 %v2645_v12  ;;  %vm2652_vm10 = vweird.f32 %v2645_v12 }
 0xb77   :  { %v5051_v37 = vpop.eup %5050 }
 0xb78   :  { %v2647_v26 = vmul.f32 %v5051_v37, %v2645_v12  ;;  %vm2653_vm9 = vweird.f32 %v5051_v37 }
 0xb79   :  { %vm2654_vm11 = vmor %vm2652_vm10, %vm2653_vm9 }
 0xb7a   :  { %v2648_v58 = vmul.f32 %v5051_v37, %v2647_v26 }
 0xb7c   :  { %v2649_v29 = vmul.f32 0.5, %v2648_v58 }
 0xb7e   :  { %v2650_v7 = vsub.f32 1.5, %v2649_v29 }
 0xb80   :  { %v2651_v34 = vmul.f32 %v5051_v37, %v2650_v7 }
 0xb82   :  { %v2655_v36 = vsel %vm2654_vm11, %v5051_v37, %v2651_v34 }
 0xb83   :  { %v2656_v41 = vmul.f32 %v2655_v36, %v5900_v38  ;;  %v4926_v36 = vld [vmem:[#allocation14 + $0x74] sm:$0xf0] }
 0xb85   :  { %v2661_v19 = vmul.f32 %v5013_v35, %v2656_v41  ;;  %v4615_v41 = vld [vmem:[#allocation14 + $0xf0] sm:$0xf] }
 0xb87   :  { %v2666_v47 = vadd.f32 %v5014_v14, %v2661_v19  ;;  %v4552_v14 = vor.u32 %v4926_v36, %v4551_v40  ;;  %v4942_v19 = vld [vmem:[#allocation14 + $0xf4] sm:$0xf0]  ;;  %v4511_v36 = vld [vmem:[#allocation14 + $0x20] sm:$0xf] }
 0xb89   :  { %v2668_v15 = vmul.f32 0.70710677, %v2666_v47  ;;  %v2667_v25 = vmul.f32 0.5, %v2666_v47  ;;  %v4925_v47 = vld [vmem:[#allocation14 + $0x74] sm:$0xf]  ;;  %3169 = vmatpush.bf16.msrb.mxu0 %v4552_v14 }
 0xb8a   :  { %v4575_v14 = vld [vmem:[#allocation14 + $0xa0] sm:$0xf] }
 0xb8b   :  { %v2669_v22 = vmul.f32 %v2668_v15, %v2668_v15 }
 0xb8d   :  { %v2670_v48 = vmin.f32 %v2669_v22, 16.0  ;;  %v4616_v22 = vor.u32 %v4942_v19, %v4615_v41  ;;  %v4916_v41 = vld [vmem:[#allocation14 + $0x24] sm:$0xf0] }
 0xb8f   :  { %v2671_v50 = vmul.f32 2.1237322e-06, %v2670_v48  ;;  %v2682_v51 = vmul.f32 3.8918573e-05, %v2670_v48  ;;  %3182 = vmatpush.bf16.msrb.mxu1 %v4616_v22  ;;  %v4513_v22 = vld [vmem:[#allocation14 + $0x28] sm:$0xf0] }
 0xb91   :  { %v2672_v2 = vadd.f32 0.00028619796, %v2671_v50  ;;  %v2683_v52 = vadd.f32 0.001143296, %v2682_v51  ;;  %v4941_v50 = vld [vmem:[#allocation14 + $0xf4] sm:$0xf] }
 0xb92   :  { %v4617_v51 = vld [vmem:[#allocation14 + $0xf8] sm:$0xf0] }
 0xb93   :  { %v2673_v53 = vmul.f32 %v2672_v2, %v2670_v48  ;;  %v2684_v3 = vmul.f32 %v2683_v52, %v2670_v48  ;;  %v4543_v2 = vld [vmem:[#allocation14 + $0x60] sm:$0xf]  ;;  %v4620_v52 = vor.u32 %v4941_v50, %v4617_v51  ;;  %v4931_v50 = vld [vmem:[#allocation14 + $0xa4] sm:$0xf]  ;;  %v4577_v51 = vld [vmem:[#allocation14 + $0xa8] sm:$0xf0] }
 0xb95   :  { %v2685_v54 = vadd.f32 0.014752088, %v2684_v3  ;;  %v2674_v55 = vadd.f32 0.0036580483, %v2673_v53  ;;  %v4924_v53 = vld [vmem:[#allocation14 + $0x64] sm:$0xf0]  ;;  %3208 = vmatpush.bf16.msrb.mxu3 %v4620_v52  ;;  %v4512_v52 = vor.u32 %v4916_v41, %v4511_v36 }
 0xb96   :  { %v4607_v3 = vld [vmem:[#allocation14 + $0xe0] sm:$0xf] }
 0xb97   :  { %v2686_v1 = vmul.f32 %v2685_v54, %v2670_v48  ;;  %v2675_v61 = vmul.f32 %v2674_v55, %v2670_v48  ;;  %v4940_v54 = vld [vmem:[#allocation14 + $0xe4] sm:$0xf0]  ;;  %v4544_v55 = vor.u32 %v4924_v53, %v4543_v2 }
 0xb99   :  { %v2687_v31 = vadd.f32 0.112945676, %v2686_v1  ;;  %v2676_v4 = vadd.f32 0.05243302, %v2675_v61  ;;  %v4608_v1 = vor.u32 %v4940_v54, %v4607_v3  ;;  %v4545_v61 = vld [vmem:[#allocation14 + $0x68] sm:$0xf0]  ;;  %3170 = vmatpush.bf16.msrb.mxu0 %v4544_v55 }
 0xb9a   :  { %v4503_v54 = vld [vmem:[#allocation14 + $0x10] sm:$0xf]  ;;  %v4914_v55 = vld [vmem:[#allocation14 + $0x14] sm:$0xf0] }
 0xb9b   :  { %v2688_v38 = vmul.f32 %v2687_v31, %v2670_v48  ;;  %v2677_v43 = vmul.f32 %v2676_v4, %v2670_v48  ;;  %v4923_v31 = vld [vmem:[#allocation14 + $0x64] sm:$0xf]  ;;  %v4609_v4 = vld [vmem:[#allocation14 + $0xe8] sm:$0xf0]  ;;  %3183 = vmatpush.bf16.msrb.mxu1 %v4608_v1  ;;  %v4567_v1 = vld [vmem:[#allocation14 + $0x90] sm:$0xf] }
 0xb9d   :  { %v2689_v63 = vadd.f32 0.4994258, %v2688_v38  ;;  %v2678_v8 = vadd.f32 0.18741608, %v2677_v43  ;;  %v4939_v38 = vld [vmem:[#allocation14 + $0xe4] sm:$0xf] }
 0xb9e   :  { %v4612_v43 = vor.u32 %v4939_v38, %v4609_v4  ;;  %v4930_v38 = vld [vmem:[#allocation14 + $0x94] sm:$0xf0]  ;;  %v4505_v4 = vld [vmem:[#allocation14 + $0x18] sm:$0xf0] }
 0xb9f   :  { %v2690_v5 = vmul.f32 %v2689_v63, %v2670_v48  ;;  %v2679_v10 = vmul.f32 %v2678_v8, %v2670_v48  ;;  %v4548_v63 = vor.u32 %v4923_v31, %v4545_v61  ;;  %v4599_v8 = vld [vmem:[#allocation14 + $0xd0] sm:$0xf]  ;;  %v4580_v61 = vor.u32 %v4931_v50, %v4577_v51 }
 0xba0   :  { %3209 = vmatpush.bf16.msrb.mxu3 %v4612_v43  ;;  %v2865_v43 = vld [vmem:[%s6009_s14] sm:$0x3] }
 0xba1   :  { %v2691_v39 = vadd.f32 1.0, %v2690_v5  ;;  %v2680_v13 = vadd.f32 1.1283791, %v2679_v10  ;;  %v4535_v5 = vld [vmem:[#allocation14 + $0x50] sm:$0xf] }
 0xba2   :  { %v4921_v10 = vld [vmem:[#allocation14 + $0x54] sm:$0xf] }
 0xba3   :  { %5052 = vrcp.f32 %v2691_v39  ;;  %v2703_v27 = vand.u32 2147483648, %v2691_v39  ;;  %v2701_v46 = vand.u32 2147483647, %v2691_v39  ;;  %vm2697_vm13 = vweird.f32 %v2691_v39 }
 0xba4   :  { %v2681_v18 = vmul.f32 %v2680_v13, %v2668_v15  ;;  %v4553_v15 = vld [vmem:[#allocation14 + $0x78] sm:$0xf0]  ;;  %v4937_v13 = vld [vmem:[#allocation14 + $0xd4] sm:$0xf] }
 0xba5   :  { %v2704_v17 = vor.u32 1.1754944e-38, %v2703_v27  ;;  %vm2702_vm15 = vcmp.eq.f32.partialorder %v2701_v46, 8.507059e+37  ;;  %v4556_v48 = vor.u32 %v4925_v47, %v4553_v15  ;;  %v4537_v27 = vld [vmem:[#allocation14 + $0x58] sm:$0xf0]  ;;  %v4932_v47 = vld [vmem:[#allocation14 + $0xa4] sm:$0xf0] }
 0xba6   :  { %v4915_v15 = vld [vmem:[#allocation14 + $0x24] sm:$0xf]  ;;  %v4576_v53 = vor.u32 %v4932_v47, %v4575_v14 }
 0xba7   :  { %3195 = vmatpush.bf16.msrb.mxu2 %v4556_v48  ;;  %v4516_v3 = vor.u32 %v4915_v15, %v4513_v22 }
 0xba9   :  { %v5053_v9 = vpop.eup %5052 }
 0xbaa   :  { %v2693_v11 = vmul.f32 %v5053_v9, %v2691_v39  ;;  %vm2698_vm12 = vweird.f32 %v5053_v9  ;;  %v4922_v39 = vld [vmem:[#allocation14 + $0x54] sm:$0xf0] }
 0xbab   :  { %vm2699_vm14 = vmor %vm2697_vm13, %vm2698_vm12  ;;  %3196 = vmatpush.bf16.msrb.mxu2 %v4548_v63  ;;  %v4913_v63 = vld [vmem:[#allocation14 + $0x14] sm:$0xf] }
 0xbac   :  { %v2694_v12 = vsub.f32 1.0, %v2693_v11 }
 0xbae   :  { %v2695_v21 = vmul.f32 %v5053_v9, %v2694_v12  ;;  %v4536_v12 = vor.u32 %v4922_v39, %v4535_v5  ;;  %v4929_v5 = vld [vmem:[#allocation14 + $0x94] sm:$0xf]  ;;  %v4569_v39 = vld [vmem:[#allocation14 + $0x98] sm:$0xf0] }
 0xbb0   :  { %v2696_v16 = vadd.f32 %v5053_v9, %v2695_v21  ;;  %v4601_v21 = vld [vmem:[#allocation14 + $0xd8] sm:$0xf0]  ;;  %3171 = vmatpush.bf16.msrb.mxu0 %v4536_v12  ;;  %v4508_v12 = vor.u32 %v4913_v63, %v4505_v4 }
 0xbb2   :  { %v2700_v23 = vsel %vm2699_vm14, %v5053_v9, %v2696_v16  ;;  %v4938_v9 = vld [vmem:[#allocation14 + $0xd4] sm:$0xf0] }
 0xbb3   :  { %v2705_v57 = vsel %vm2702_vm15, %v2704_v17, %v2700_v23  ;;  %v4600_v16 = vor.u32 %v4938_v9, %v4599_v8  ;;  %v4540_v17 = vor.u32 %v4921_v10, %v4537_v27  ;;  %v4920_v23 = vld [vmem:[#allocation14 + $0x44] sm:$0xf0]  ;;  %v4504_v9 = vor.u32 %v4914_v55, %v4503_v54  ;;  %v4495_v10 = vld [vmem:[#allocation14] sm:$0xf] }
 0xbb4   :  { %v2706_v24 = vmul.f32 %v2705_v57, %v2681_v18  ;;  %v4527_v18 = vld [vmem:[#allocation14 + $0x40] sm:$0xf]  ;;  %v4912_v27 = vld [vmem:[#allocation14 + $0x4] sm:$0xf0] }
 0xbb5   :  { %v4591_v57 = vld [vmem:[#allocation14 + $0xc0] sm:$0xf]  ;;  %3184 = vmatpush.bf16.msrb.mxu1 %v4600_v16  ;;  %3197 = vmatpush.bf16.msrb.mxu2 %v4540_v17  ;;  %v4572_v16 = vor.u32 %v4929_v5, %v4569_v39  ;;  %v4911_v17 = vld [vmem:[#allocation14 + $0x4] sm:$0xf] }
 0xbb6   :  { %v4426_v0 = vclamps-f32 %v2706_v24, 1.0  ;;  %v4604_v24 = vor.u32 %v4937_v13, %v4601_v21  ;;  %v4559_v13 = vld [vmem:[#allocation14 + $0x80] sm:$0xf]  ;;  %v4928_v21 = vld [vmem:[#allocation14 + $0x84] sm:$0xf0] }
 0xbb8   :  { %v2709_v37 = vadd.f32 1.0, %v4426_v0  ;;  %v4936_v0 = vld [vmem:[#allocation14 + $0xc4] sm:$0xf0]  ;;  %3210 = vmatpush.bf16.msrb.mxu3 %v4604_v24 }
 0xbba   :  { %v2710_v26 = vmul.f32 %v2709_v37, %v2667_v25  ;;  %v4919_v25 = vld [vmem:[#allocation14 + $0x44] sm:$0xf]  ;;  %v4529_v37 = vld [vmem:[#allocation14 + $0x48] sm:$0xf0] }
 0xbbc   :  { %v2711_v59 = vpack.c.bf16 %v2710_v26, %v2710_v26 }
 0xbbe   :  { %2822 = vmatmul.bf16.vlgmr.msra.gmra.mxu2 %v2711_v59  ;;  %2835 = vmatmul.bf16.vlgmr.msra.gmra.mxu3 %v2711_v59  ;;  %v4935_v59 = vld [vmem:[#allocation14 + $0xc4] sm:$0xf] }
 0xc41   :  { %v2823_v58 = vpop.f32.mrf.mxu2  ;;  %v2836_v49 = vpop.f32.mrf.mxu3 }
 0xc42   :  { %v2824_v56 = vadd.f32 %v2823_v58, %v2730_v28  ;;  %v2837_v29 = vadd.f32 %v2836_v49, %v2731_v42  ;;  %v4528_v28 = vor.u32 %v4920_v23, %v4527_v18  ;;  %v4592_v42 = vor.u32 %v4936_v0, %v4591_v57  ;;  %v4519_v49 = vld [vmem:[#allocation14 + $0x30] sm:$0xf]  ;;  %v4497_v18 = vld [vmem:[#allocation14 + $0x8] sm:$0xf0]  ;;  %v4927_v23 = vld [vmem:[#allocation14 + $0x84] sm:$0xf] }
 0xc43   :  { %v4532_v58 = vor.u32 %v4919_v25, %v4529_v37  ;;  %v4561_v57 = vld [vmem:[#allocation14 + $0x88] sm:$0xf0]  ;;  %v4496_v0 = vor.u32 %v4912_v27, %v4495_v10  ;;  %v2873_v25 = vld [vmem:[%s6010_s0] sm:$0x3]  ;;  %v2867_v37 = vperm.slane %v2865_v43, 0 }
 0xc44   :  { %v2840_v60 = vadd.f32 %v2837_v29, %v2824_v56  ;;  %3172 = vmatpush.bf16.msrb.mxu0 %v4528_v28  ;;  %3185 = vmatpush.bf16.msrb.mxu1 %v4592_v42  ;;  %v4500_v28 = vor.u32 %v4911_v17, %v4497_v18 }
 0xc45   :  { %3198 = vmatpush.bf16.msrb.mxu2 %v4532_v58  ;;  %v4564_v58 = vor.u32 %v4927_v23, %v4561_v57 }
 0xc46   :  { %2841 = vadd.xlane.f32.xlu0 %v2840_v60  ;;  %v4596_v60 = vor.u32 %v4935_v59, %v4593_v62  ;;  %v2868_v59 = vperm.slane %v2865_v43, 1  ;;  %v4560_v62 = vor.u32 %v4928_v21, %v4559_v13 }
 0xc48   :  { %3211 = vmatpush.bf16.msrb.mxu3 %v4596_v60  ;;  %v2876_v60 = vperm.slane %v2873_v25, 1 }
 0xc49   :  { %v2825_v32 = vpop.f32.mrf.mxu2  ;;  %v2838_v30 = vpop.f32.mrf.mxu3 }
 0xc4a   :  { %v4934_v32 = vld [vmem:[#allocation14 + $0xb4] sm:$0xf0]  ;;  %v4917_v30 = vld [vmem:[#allocation14 + $0x34] sm:$0xf] }
 0xcb9   :  { %v2842_v6 = vpop.xlane.xlu0 %2841 }
 0xcba   :  { %v2843_v7 = vmul.f32 %v2842_v6, %v5680_v44  ;;  %v4521_v6 = vld [vmem:[#allocation14 + $0x38] sm:$0xf0] }
 0xcbb   :  { %v4524_v40 = vor.u32 %v4917_v30, %v4521_v6 }
 0xcbc   :  { %v5909_v33 = vsub.f32 %v2824_v56, %v2843_v7  ;;  %v5911_v20 = vsub.f32 %v2837_v29, %v2843_v7  ;;  %v4918_v56 = vld [vmem:[#allocation14 + $0x34] sm:$0xf0]  ;;  %v4583_v29 = vld [vmem:[#allocation14 + $0xb0] sm:$0xf]  ;;  %v4933_v7 = vld [vmem:[#allocation14 + $0xb4] sm:$0xf] }
 0xcbd   :  { %3199 = vmatpush.bf16.msrb.mxu2 %v4524_v40 }
 0xcbe   :  { %v2846_v34 = vmul.f32 %v5909_v33, %v5909_v33  ;;  %v2847_v45 = vmul.f32 %v5911_v20, %v5911_v20 }
 0xcc0   :  { %v2848_v35 = vadd.f32 %v2847_v45, %v2846_v34  ;;  %v4585_v34 = vld [vmem:[#allocation14 + $0xb8] sm:$0xf0]  ;;  %v4520_v45 = vor.u32 %v4918_v56, %v4519_v49 }
 0xcc1   :  { %v4588_v19 = vor.u32 %v4933_v7, %v4585_v34  ;;  %3200 = vmatpush.bf16.msrb.mxu2 %v4516_v3 }
 0xcc2   :  { %2849 = vadd.xlane.f32.xlu1 %v2848_v35  ;;  %v4584_v35 = vor.u32 %v4934_v32, %v4583_v29  ;;  %3173 = vmatpush.bf16.msrb.mxu0 %v4520_v45  ;;  %v2875_v29 = vperm.slane %v2873_v25, 0 }
 0xcc3   :  { %3212 = vmatpush.bf16.msrb.mxu3 %v4588_v19 }
 0xcc4   :  { %3186 = vmatpush.bf16.msrb.mxu1 %v4584_v35 }
 0xcc5   :  { %3201 = vmatpush.bf16.msrb.mxu2 %v4508_v12 }
 0xcc6   :  { %3174 = vmatpush.bf16.msrb.mxu0 %v4512_v52 }
 0xcc7   :  { %3213 = vmatpush.bf16.msrb.mxu3 %v4580_v61 }
 0xcc8   :  { %3187 = vmatpush.bf16.msrb.mxu1 %v4576_v53 }
 0xcc9   :  { %3202 = vmatpush.bf16.msrb.mxu2 %v4500_v28 }
 0xcca   :  { %3175 = vmatpush.bf16.msrb.mxu0 %v4504_v9 }
 0xccb   :  { %3214 = vmatpush.bf16.msrb.mxu3 %v4572_v16 }
 0xcce   :  { %3176 = vmatpush.bf16.msrb.mxu0 %v4496_v0 }
 0xccf   :  { %3215 = vmatpush.bf16.msrb.mxu3 %v4564_v58 }
 0xd35   :  { %v2850_v11 = vpop.xlane.xlu1 %2849 }
 0xd36   :  { %v2851_v46 = vmul.f32 %v2850_v11, %v5680_v44  ;;  %v4568_v11 = vor.u32 %v4930_v38, %v4567_v1 }
 0xd38   :  { %v5918_v26 = vadd.f32 1e-05, %v2851_v46  ;;  %3188 = vmatpush.bf16.msrb.mxu1 %v4568_v11 }
 0xd3a   :  { %5054 = vrsqrt.f32 %v5918_v26  ;;  %vm2859_vm1 = vweird.f32 %v5918_v26 }
 0xd3c   :  { %3189 = vmatpush.bf16.msrb.mxu1 %v4560_v62 }
 0xd40   :  { %v5055_v48 = vpop.eup %5054 }
 0xd41   :  { %v2854_v2 = vmul.f32 %v5055_v48, %v5918_v26  ;;  %vm2860_vm0 = vweird.f32 %v5055_v48 }
 0xd42   :  { %vm2861_vm2 = vmor %vm2859_vm1, %vm2860_vm0 }
 0xd43   :  { %v2855_v31 = vmul.f32 %v5055_v48, %v2854_v2 }
 0xd45   :  { %v2856_v8 = vmul.f32 0.5, %v2855_v31 }
 0xd47   :  { %v2857_v46 = vsub.f32 1.5, %v2856_v8 }
 0xd49   :  { %v2858_v24 = vmul.f32 %v5055_v48, %v2857_v46 }
 0xd4b   :  { %v2862_v42 = vsel %vm2861_vm2, %v5055_v48, %v2858_v24 }
 0xd4c   :  { %v2863_v49 = vmul.f32 %v2862_v42, %v5909_v33  ;;  %v2864_v56 = vmul.f32 %v2862_v42, %v5911_v20 }
 0xd4e   :  { %v2871_v26 = vmul.f32 %v2867_v37, %v2863_v49  ;;  %v2872_v32 = vmul.f32 %v2868_v59, %v2864_v56 }
 0xd50   :  { %v5927_v30 = vadd.f32 %v2875_v29, %v2871_v26  ;;  %v5929_v6 = vadd.f32 %v2876_v60, %v2872_v32 }
 0xd52   :  { %v5932_v7 = vmul.f32 0.70710677, %v5927_v30  ;;  %v5935_v34 = vmul.f32 0.70710677, %v5929_v6 }
 0xd54   :  { %v2885_v33 = vmul.f32 %v5932_v7, %v5932_v7  ;;  %v2925_v20 = vmul.f32 %v5935_v34, %v5935_v34 }
 0xd56   :  { %v2886_v45 = vmin.f32 %v2885_v33, 16.0  ;;  %v2926_v35 = vmin.f32 %v2925_v20, 16.0 }
 0xd58   :  { %v2887_v40 = vmul.f32 2.1237322e-06, %v2886_v45  ;;  %v2898_v36 = vmul.f32 3.8918573e-05, %v2886_v45  ;;  %v2927_v41 = vmul.f32 2.1237322e-06, %v2926_v35 }
 0xd59   :  { %v2938_v14 = vmul.f32 3.8918573e-05, %v2926_v35 }
 0xd5a   :  { %v2888_v19 = vadd.f32 0.00028619796, %v2887_v40  ;;  %v2899_v47 = vadd.f32 0.001143296, %v2898_v36  ;;  %v2928_v15 = vadd.f32 0.00028619796, %v2927_v41 }
 0xd5b   :  { %v2939_v22 = vadd.f32 0.001143296, %v2938_v14 }
 0xd5c   :  { %v2889_v48 = vmul.f32 %v2888_v19, %v2886_v45  ;;  %v2900_v50 = vmul.f32 %v2899_v47, %v2886_v45  ;;  %v2929_v51 = vmul.f32 %v2928_v15, %v2926_v35 }
 0xd5d   :  { %v2940_v2 = vmul.f32 %v2939_v22, %v2926_v35  ;;  %v2881_v22 = vmul.f32 0.5, %v5927_v30 }
 0xd5e   :  { %v2890_v52 = vadd.f32 0.0036580483, %v2889_v48  ;;  %v2901_v53 = vadd.f32 0.014752088, %v2900_v50  ;;  %v2930_v55 = vadd.f32 0.0036580483, %v2929_v51 }
 0xd5f   :  { %v2941_v3 = vadd.f32 0.014752088, %v2940_v2 }
 0xd60   :  { %v2902_v54 = vmul.f32 %v2901_v53, %v2886_v45  ;;  %v2891_v31 = vmul.f32 %v2890_v52, %v2886_v45  ;;  %v2931_v4 = vmul.f32 %v2930_v55, %v2926_v35 }
 0xd61   :  { %v2942_v1 = vmul.f32 %v2941_v3, %v2926_v35 }
 0xd62   :  { %v2903_v61 = vadd.f32 0.112945676, %v2902_v54  ;;  %v2892_v39 = vadd.f32 0.05243302, %v2891_v31  ;;  %v2932_v10 = vadd.f32 0.05243302, %v2931_v4 }
 0xd63   :  { %v2943_v38 = vadd.f32 0.112945676, %v2942_v1 }
 0xd64   :  { %v2904_v63 = vmul.f32 %v2903_v61, %v2886_v45  ;;  %v2893_v12 = vmul.f32 %v2892_v39, %v2886_v45  ;;  %v2933_v21 = vmul.f32 %v2932_v10, %v2926_v35 }
 0xd65   :  { %v2944_v5 = vmul.f32 %v2943_v38, %v2926_v35 }
 0xd66   :  { %v2905_v43 = vadd.f32 0.4994258, %v2904_v63  ;;  %v2894_v46 = vadd.f32 0.18741608, %v2893_v12  ;;  %v2934_v16 = vadd.f32 0.18741608, %v2933_v21 }
 0xd67   :  { %v2945_v8 = vadd.f32 0.4994258, %v2944_v5 }
 0xd68   :  { %v2906_v9 = vmul.f32 %v2905_v43, %v2886_v45  ;;  %v2895_v18 = vmul.f32 %v2894_v46, %v2886_v45  ;;  %v2935_v24 = vmul.f32 %v2934_v16, %v2926_v35  ;;  %v4950_v46 = vld [vmem:[#allocation16 + $0x38] sm:$0xff] }
 0xd69   :  { %v2946_v11 = vmul.f32 %v2945_v8, %v2926_v35  ;;  %v4958_v16 = vld [vmem:[#allocation16 + $0x78] sm:$0xff]  ;;  %3484 = vmatpush.bf16.msra.mxu0 %v4950_v46 }
 0xd6a   :  { %v2907_v27 = vadd.f32 1.0, %v2906_v9  ;;  %v2896_v37 = vadd.f32 1.1283791, %v2895_v18  ;;  %v2936_v49 = vadd.f32 1.1283791, %v2935_v24  ;;  %3497 = vmatpush.bf16.msra.mxu1 %v4958_v16  ;;  %v4957_v18 = vld [vmem:[#allocation16 + $0x70] sm:$0xff] }
 0xd6b   :  { %v2947_v13 = vadd.f32 1.0, %v2946_v11 }
 0xd6c   :  { %5056 = vrcp.f32 %v2907_v27  ;;  %v2919_v59 = vand.u32 2147483648, %v2907_v27  ;;  %v2917_v42 = vand.u32 2147483647, %v2907_v27  ;;  %vm2913_vm5 = vweird.f32 %v2907_v27 }
 0xd6d   :  { %5058 = vrcp.f32 %v2947_v13  ;;  %v2959_v58 = vand.u32 2147483648, %v2947_v13  ;;  %v2957_v29 = vand.u32 2147483647, %v2947_v13  ;;  %vm2953_vm7 = vweird.f32 %v2947_v13 }
 0xd6e   :  { %v2920_v26 = vor.u32 1.1754944e-38, %v2919_v59  ;;  %v2897_v33 = vmul.f32 %v2896_v37, %v5932_v7  ;;  %vm2918_vm8 = vcmp.eq.f32.partialorder %v2917_v42, 8.507059e+37  ;;  %v2937_v40 = vmul.f32 %v2936_v49, %v5935_v34  ;;  %v3003_v34 = vld [vmem:[%s6011_s11] sm:$0x3]  ;;  %3498 = vmatpush.bf16.msra.mxu1 %v4957_v18  ;;  %v4953_v49 = vld [vmem:[#allocation16 + $0x50] sm:$0xff] }
 0xd6f   :  { %v2960_v45 = vor.u32 1.1754944e-38, %v2959_v58  ;;  %vm2958_vm10 = vcmp.eq.f32.partialorder %v2957_v29, 8.507059e+37  ;;  %v2882_v7 = vmul.f32 0.5, %v5929_v6  ;;  %v3005_v54 = vperm.slane %v3003_v34, 0  ;;  %v4947_v37 = vld [vmem:[#allocation16 + $0x20] sm:$0xff]  ;;  %v4945_v58 = vld [vmem:[#allocation16 + $0x10] sm:$0xff] }
 0xd70   :  { %v3006_v1 = vperm.slane %v3003_v34, 1  ;;  %v4955_v59 = vld [vmem:[#allocation16 + $0x60] sm:$0xff] }
 0xd72   :  { %v5057_v17 = vpop.eup %5056 }
 0xd73   :  { %v5059_v23 = vpop.eup %5058  ;;  %v2909_v57 = vmul.f32 %v5057_v17, %v2907_v27  ;;  %vm2914_vm3 = vweird.f32 %v5057_v17 }
 0xd74   :  { %v2949_v0 = vmul.f32 %v5059_v23, %v2947_v13  ;;  %vm2954_vm4 = vweird.f32 %v5059_v23  ;;  %vm2915_vm6 = vmor %vm2913_vm5, %vm2914_vm3 }
 0xd75   :  { %v2910_v25 = vsub.f32 1.0, %v2909_v57  ;;  %vm2955_vm9 = vmor %vm2953_vm7, %vm2954_vm4  ;;  %v4956_v57 = vld [vmem:[#allocation16 + $0x68] sm:$0xff] }
 0xd76   :  { %v2950_v62 = vsub.f32 1.0, %v2949_v0  ;;  %3499 = vmatpush.bf16.msra.mxu1 %v4956_v57 }
 0xd77   :  { %v2911_v28 = vmul.f32 %v5057_v17, %v2910_v25 }
 0xd78   :  { %v2951_v56 = vmul.f32 %v5059_v23, %v2950_v62  ;;  %v4946_v62 = vld [vmem:[#allocation16 + $0x18] sm:$0xff] }
 0xd79   :  { %v2912_v60 = vadd.f32 %v5057_v17, %v2911_v28  ;;  %v4954_v28 = vld [vmem:[#allocation16 + $0x58] sm:$0xff] }
 0xd7a   :  { %v2952_v32 = vadd.f32 %v5059_v23, %v2951_v56  ;;  %3500 = vmatpush.bf16.msra.mxu1 %v4955_v59 }
 0xd7b   :  { %v2916_v20 = vsel %vm2915_vm6, %v5057_v17, %v2912_v60  ;;  %v4949_v17 = vld [vmem:[#allocation16 + $0x30] sm:$0xff]  ;;  %v4952_v60 = vld [vmem:[#allocation16 + $0x48] sm:$0xff] }
 0xd7c   :  { %v2921_v35 = vsel %vm2918_vm8, %v2920_v26, %v2916_v20  ;;  %v2956_v36 = vsel %vm2955_vm9, %v5059_v23, %v2952_v32  ;;  %3485 = vmatpush.bf16.msra.mxu0 %v4949_v17  ;;  %v4948_v23 = vld [vmem:[#allocation16 + $0x28] sm:$0xff]  ;;  %v3246_v32 = vld [vmem:[%s6012_s23] sm:$0x3] }
 0xd7d   :  { %v2922_v41 = vmul.f32 %v2921_v35, %v2897_v33  ;;  %v2961_v14 = vsel %vm2958_vm10, %v2960_v45, %v2956_v36  ;;  %v4943_v20 = vld [vmem:[#allocation16] sm:$0xff]  ;;  %v3248_v36 = vperm.slane %v3246_v32, 0 }
 0xd7e   :  { %v2962_v19 = vmul.f32 %v2961_v14, %v2937_v40  ;;  %3501 = vmatpush.bf16.msra.mxu1 %v4954_v28  ;;  %v4951_v45 = vld [vmem:[#allocation16 + $0x40] sm:$0xff] }
 0xd7f   :  { %v4491_v47 = vclamps-f32 %v2922_v41, 1.0  ;;  %v3254_v40 = vld [vmem:[%s6013_s19] sm:$0x3]  ;;  %v3249_v41 = vperm.slane %v3246_v32, 1 }
 0xd80   :  { %v4492_v15 = vclamps-f32 %v2962_v19, 1.0  ;;  %3486 = vmatpush.bf16.msra.mxu0 %v4948_v23 }
 0xd81   :  { %v2965_v48 = vadd.f32 1.0, %v4491_v47 }
 0xd82   :  { %v2966_v50 = vadd.f32 1.0, %v4492_v15  ;;  %3502 = vmatpush.bf16.msra.mxu1 %v4953_v49  ;;  %v3256_v15 = vperm.slane %v3254_v40, 0 }
 0xd83   :  { %v2967_v51 = vmul.f32 %v2965_v48, %v2881_v22  ;;  %v3257_v22 = vperm.slane %v3254_v40, 1 }
 0xd84   :  { %v2968_v2 = vmul.f32 %v2966_v50, %v2882_v7  ;;  %3487 = vmatpush.bf16.msra.mxu0 %v4947_v37 }
 0xd85   :  { %v2969_v52 = vpack.c.bf16 %v2967_v51, %v2967_v51 }
 0xd86   :  { %v2970_v53 = vpack.c.bf16 %v2968_v2, %v2968_v2  ;;  %3503 = vmatpush.bf16.msra.mxu1 %v4952_v60 }
 0xd87   :  { %3177 = vmatmul.bf16.vlgmr.msrb.gmra.mxu0 %v2969_v52  ;;  %3203 = vmatmul.bf16.vlgmr.msrb.gmra.mxu2 %v2969_v52 }
 0xd88   :  { %3190 = vmatmul.bf16.vlgmr.msrb.gmra.mxu1 %v2970_v53  ;;  %3216 = vmatmul.bf16.vlgmr.msrb.gmra.mxu3 %v2970_v53 }
 0xd89   :  { %3488 = vmatpush.bf16.msra.mxu0 %v4946_v62 }
 0xd8a   :  { %3504 = vmatpush.bf16.msra.mxu1 %v4951_v45 }
 0xd8d   :  { %3489 = vmatpush.bf16.msra.mxu0 %v4945_v58 }
 0xe04   :  { %v3178_v3 = vpop.f32.mrf.mxu0 }
 0xe05   :  { %v3191_v55 = vpop.f32.mrf.mxu1  ;;  %v3179_v31 = vadd.f32 %v3178_v3, %v3005_v54 }
 0xe07   :  { %v3192_v6 = vadd.f32 %v3191_v55, %v3179_v31 }
 0xe0a   :  { %v3204_v61 = vpop.f32.mrf.mxu2 }
 0xe0b   :  { %v3205_v30 = vadd.f32 %v3204_v61, %v3006_v1  ;;  %v3217_v38 = vpop.f32.mrf.mxu3 }
 0xe0c   :  { %v3180_v63 = vpop.f32.mrf.mxu0 }
 0xe0d   :  { %v3218_v4 = vadd.f32 %v3217_v38, %v3205_v30  ;;  %v3193_v5 = vpop.f32.mrf.mxu1 }
 0xe0f   :  { %v3221_v39 = vadd.f32 %v3218_v4, %v3192_v6 }
 0xe11   :  { %3222 = vadd.xlane.f32.xlu2 %v3221_v39 }
 0xe12   :  { %v3206_v43 = vpop.f32.mrf.mxu2 }
 0xe13   :  { %v3219_v8 = vpop.f32.mrf.mxu3 }
 0xe84   :  { %v3223_v9 = vpop.xlane.xlu2 %3222 }
 0xe85   :  { %v3224_v10 = vmul.f32 %v3223_v9, %v5680_v44 }
 0xe87   :  { %v3225_v11 = vsub.f32 %v3192_v6, %v3224_v10  ;;  %v3226_v12 = vsub.f32 %v3218_v4, %v3224_v10 }
 0xe89   :  { %v3227_v27 = vmul.f32 %v3225_v11, %v3225_v11  ;;  %v3228_v13 = vmul.f32 %v3226_v12, %v3226_v12 }
 0xe8b   :  { %v3229_v21 = vadd.f32 %v3228_v13, %v3227_v27 }
 0xe8d   :  { %3230 = vadd.xlane.f32.xlu0 %v3229_v21 }
 0xf00   :  { %v3231_v24 = vpop.xlane.xlu0 %3230 }
 0xf01   :  { %v3232_v0 = vmul.f32 %v3231_v24, %v5680_v44  ;;  %v4944_v44 = vld [vmem:[#allocation16 + $0x8] sm:$0xff] }
 0xf02   :  { %3490 = vmatpush.bf16.msra.mxu0 %v4944_v44 }
 0xf03   :  { %v3233_v25 = vadd.f32 1e-05, %v3232_v0 }
 0xf05   :  { %5060 = vrsqrt.f32 %v3233_v25  ;;  %vm3240_vm12 = vweird.f32 %v3233_v25 }
 0xf06   :  { %3491 = vmatpush.bf16.msra.mxu0 %v4943_v20 }
 0xf0b   :  { %v5061_v42 = vpop.eup %5060 }
 0xf0c   :  { %v3235_v56 = vmul.f32 %v5061_v42, %v3233_v25  ;;  %vm3241_vm11 = vweird.f32 %v5061_v42 }
 0xf0d   :  { %vm3242_vm13 = vmor %vm3240_vm12, %vm3241_vm11 }
 0xf0e   :  { %v3236_v29 = vmul.f32 %v5061_v42, %v3235_v56 }
 0xf10   :  { %v3237_v26 = vmul.f32 0.5, %v3236_v29 }
 0xf12   :  { %v3238_v33 = vsub.f32 1.5, %v3237_v26 }
 0xf14   :  { %v3239_v35 = vmul.f32 %v5061_v42, %v3238_v33 }
 0xf16   :  { %v3243_v14 = vsel %vm3242_vm13, %v5061_v42, %v3239_v35 }
 0xf17   :  { %v3244_v19 = vmul.f32 %v3243_v14, %v3225_v11  ;;  %v3245_v47 = vmul.f32 %v3243_v14, %v3226_v12 }
 0xf19   :  { %v3252_v48 = vmul.f32 %v3248_v36, %v3244_v19  ;;  %v3253_v7 = vmul.f32 %v3249_v41, %v3245_v47 }
 0xf1b   :  { %v5950_v50 = vadd.f32 %v3256_v15, %v3252_v48  ;;  %v5952_v51 = vadd.f32 %v3257_v22, %v3253_v7 }
 0xf1d   :  { %v5955_v2 = vmul.f32 0.70710677, %v5950_v50  ;;  %v5958_v52 = vmul.f32 0.70710677, %v5952_v51 }
 0xf1f   :  { %v3266_v53 = vmul.f32 %v5955_v2, %v5955_v2  ;;  %v3306_v34 = vmul.f32 %v5958_v52, %v5958_v52 }
 0xf21   :  { %v3267_v3 = vmin.f32 %v3266_v53, 16.0  ;;  %v3307_v54 = vmin.f32 %v3306_v34, 16.0 }
 0xf23   :  { %v3268_v55 = vmul.f32 2.1237322e-06, %v3267_v3  ;;  %v3279_v1 = vmul.f32 3.8918573e-05, %v3267_v3  ;;  %v3308_v31 = vmul.f32 2.1237322e-06, %v3307_v54 }
 0xf24   :  { %v3319_v61 = vmul.f32 3.8918573e-05, %v3307_v54 }
 0xf25   :  { %v3269_v30 = vadd.f32 0.00028619796, %v3268_v55  ;;  %v3280_v38 = vadd.f32 0.001143296, %v3279_v1  ;;  %v3309_v63 = vadd.f32 0.00028619796, %v3308_v31 }
 0xf26   :  { %v3320_v6 = vadd.f32 0.001143296, %v3319_v61 }
 0xf27   :  { %v3270_v4 = vmul.f32 %v3269_v30, %v3267_v3  ;;  %v3281_v5 = vmul.f32 %v3280_v38, %v3267_v3  ;;  %v3310_v39 = vmul.f32 %v3309_v63, %v3307_v54  ;;  %v3262_v63 = vmul.f32 0.5, %v5950_v50 }
 0xf28   :  { %v3321_v43 = vmul.f32 %v3320_v6, %v3307_v54 }
 0xf29   :  { %v3271_v8 = vadd.f32 0.0036580483, %v3270_v4  ;;  %v3282_v9 = vadd.f32 0.014752088, %v3281_v5  ;;  %v3311_v12 = vadd.f32 0.0036580483, %v3310_v39 }
 0xf2a   :  { %v3322_v10 = vadd.f32 0.014752088, %v3321_v43 }
 0xf2b   :  { %v3283_v11 = vmul.f32 %v3282_v9, %v3267_v3  ;;  %v3272_v13 = vmul.f32 %v3271_v8, %v3267_v3  ;;  %v3312_v17 = vmul.f32 %v3311_v12, %v3307_v54 }
 0xf2c   :  { %v3323_v27 = vmul.f32 %v3322_v10, %v3307_v54 }
 0xf2d   :  { %v3284_v21 = vadd.f32 0.112945676, %v3283_v11  ;;  %v3273_v23 = vadd.f32 0.05243302, %v3272_v13  ;;  %v3313_v25 = vadd.f32 0.05243302, %v3312_v17 }
 0xf2e   :  { %v3324_v46 = vadd.f32 0.112945676, %v3323_v27 }
 0xf2f   :  { %v3285_v16 = vmul.f32 %v3284_v21, %v3267_v3  ;;  %v3274_v59 = vmul.f32 %v3273_v23, %v3267_v3  ;;  %v3314_v42 = vmul.f32 %v3313_v25, %v3307_v54 }
 0xf30   :  { %v3325_v18 = vmul.f32 %v3324_v46, %v3307_v54 }
 0xf31   :  { %v3286_v57 = vadd.f32 0.4994258, %v3285_v16  ;;  %v3275_v58 = vadd.f32 0.18741608, %v3274_v59  ;;  %v3315_v49 = vadd.f32 0.18741608, %v3314_v42 }
 0xf32   :  { %v3326_v24 = vadd.f32 0.4994258, %v3325_v18 }
 0xf33   :  { %v3287_v0 = vmul.f32 %v3286_v57, %v3267_v3  ;;  %v3276_v29 = vmul.f32 %v3275_v58, %v3267_v3  ;;  %v3316_v26 = vmul.f32 %v3315_v49, %v3307_v54 }
 0xf34   :  { %v3327_v37 = vmul.f32 %v3326_v24, %v3307_v54 }
 0xf35   :  { %v3288_v62 = vadd.f32 1.0, %v3287_v0  ;;  %v3277_v20 = vadd.f32 1.1283791, %v3276_v29  ;;  %v3317_v14 = vadd.f32 1.1283791, %v3316_v26 }
 0xf36   :  { %v3328_v28 = vadd.f32 1.0, %v3327_v37 }
 0xf37   :  { %5062 = vrcp.f32 %v3288_v62  ;;  %v3300_v45 = vand.u32 2147483648, %v3288_v62  ;;  %v3298_v36 = vand.u32 2147483647, %v3288_v62  ;;  %vm3294_vm0 = vweird.f32 %v3288_v62 }
 0xf38   :  { %5064 = vrcp.f32 %v3328_v28  ;;  %v3340_v41 = vand.u32 2147483648, %v3328_v28  ;;  %v3338_v47 = vand.u32 2147483647, %v3328_v28  ;;  %vm3334_vm2 = vweird.f32 %v3328_v28 }
 0xf39   :  { %v3301_v22 = vor.u32 1.1754944e-38, %v3300_v45  ;;  %v3278_v7 = vmul.f32 %v3277_v20, %v5955_v2  ;;  %vm3299_vm3 = vcmp.eq.f32.partialorder %v3298_v36, 8.507059e+37  ;;  %v3318_v54 = vmul.f32 %v3317_v14, %v5958_v52 }
 0xf3a   :  { %v3341_v34 = vor.u32 1.1754944e-38, %v3340_v41  ;;  %vm3339_vm5 = vcmp.eq.f32.partialorder %v3338_v47, 8.507059e+37  ;;  %v3263_v2 = vmul.f32 0.5, %v5952_v51 }
 0xf3d   :  { %v5063_v56 = vpop.eup %5062 }
 0xf3e   :  { %v5065_v44 = vpop.eup %5064  ;;  %v3290_v60 = vmul.f32 %v5063_v56, %v3288_v62  ;;  %vm3295_vm14 = vweird.f32 %v5063_v56 }
 0xf3f   :  { %v3330_v32 = vmul.f32 %v5065_v44, %v3328_v28  ;;  %vm3335_vm15 = vweird.f32 %v5065_v44  ;;  %vm3296_vm1 = vmor %vm3294_vm0, %vm3295_vm14 }
 0xf40   :  { %v3291_v33 = vsub.f32 1.0, %v3290_v60  ;;  %vm3336_vm4 = vmor %vm3334_vm2, %vm3335_vm15 }
 0xf41   :  { %v3331_v35 = vsub.f32 1.0, %v3330_v32 }
 0xf42   :  { %v3292_v40 = vmul.f32 %v5063_v56, %v3291_v33 }
 0xf43   :  { %v3332_v19 = vmul.f32 %v5065_v44, %v3331_v35 }
 0xf44   :  { %v3293_v15 = vadd.f32 %v5063_v56, %v3292_v40 }
 0xf45   :  { %v3333_v48 = vadd.f32 %v5065_v44, %v3332_v19 }
 0xf46   :  { %v3297_v53 = vsel %vm3296_vm1, %v5063_v56, %v3293_v15 }
 0xf47   :  { %v3302_v3 = vsel %vm3299_vm3, %v3301_v22, %v3297_v53  ;;  %v3337_v55 = vsel %vm3336_vm4, %v5065_v44, %v3333_v48 }
 0xf48   :  { %v3303_v1 = vmul.f32 %v3302_v3, %v3278_v7  ;;  %v3342_v31 = vsel %vm3339_vm5, %v3341_v34, %v3337_v55 }
 0xf49   :  { %v3343_v61 = vmul.f32 %v3342_v31, %v3318_v54 }
 0xf4a   :  { %v4621_v30 = vclamps-f32 %v3303_v1, 1.0 }
 0xf4b   :  { %v4622_v38 = vclamps-f32 %v3343_v61, 1.0 }
 0xf4c   :  { %v3346_v6 = vadd.f32 1.0, %v4621_v30 }
 0xf4d   :  { %v3347_v4 = vadd.f32 1.0, %v4622_v38 }
 0xf4e   :  { %v3348_v5 = vmul.f32 %v3346_v6, %v3262_v63 }
 0xf4f   :  { %v3349_v39 = vmul.f32 %v3347_v4, %v3263_v2 }
 0xf50   :  { %v3350_v43 = vpack.c.bf16 %v3348_v5, %v3348_v5 }
 0xf51   :  { %v3351_v52 = vpack.c.bf16 %v3349_v39, %v3349_v39 }
 0xf52   :  { %3492 = vmatmul.bf16.vlgmr.msra.gmra.mxu0 %v3350_v43 }
 0xf53   :  { %3505 = vmatmul.bf16.vlgmr.msra.gmra.mxu1 %v3351_v52 }
 0xf54   :  { %5305 = shalt.err (!%p5302_p7)
}
 0xf55   :  { %3521 = dma.vmem_to_hbm [thread:$0]  %s3517_s10, 128, %s3519_s4, [#allocation4]   ;;  %v5015_v50 = vld [vmem:[%s5575_s12] ss:$0 sm:$0xff] }
 0xf56   :  { %s5396_s30 = smov [#allocation18]   ;;  %s3529_s24 = sshll.u32 %s5585_s27, 4  ;;  %s3530_s24 = int_to_ptr.hbm [resolvable:$true] %s3529_s24 }
 0xf57   :  { %s3527_s1 = sshll.u32 %s5396_s30, 4  ;;  %s5318_s20 = sshra.s32 %s3530_s24, 4  ;;  %s3528_s1 = int_to_ptr.vmem [resolvable:$true] %s3527_s1  ;;  %s5319_s20 = int_to_ptr.hbm [resolvable:$true] %s5318_s20 }
 0xf58   :  { %s5320_s5 = scalar_lea.hbm %s5319_s20, 8  ;;  %s5322_s13 = scalar_lea.hbm %s5585_s27, 8 }
 0xf59   :  { %p5321_p8 = scmp.ne.s32.totalorder %s5319_s20, %s5320_s5  ;;  %p5323_p9 = scmp.lt.s32.totalorder %s5319_s20, %s5585_s27 }
 0xf5a   :  { %p5324_p10 = scmp.lt.s32.totalorder %s5322_s13, %s5320_s5 }
 0xf5c   :  { %p5325_p11 = por %p5324_p10, %p5323_p9 }
 0xf5e   :  { %p5326_p12 = pnand %p5325_p11, %p5321_p8 }
 0xfcf   :  { %v3493_v51 = vpop.f32.mrf.mxu0 }
 0xfd0   :  { %v3494_v8 = vadd.f32 %v5015_v50, %v3493_v51  ;;  %v3506_v9 = vpop.f32.mrf.mxu1 }
 0xfd2   :  { %v3507_v10 = vadd.f32 %v3506_v9, %v3494_v8 }
 0xfd4   :  { %3510 = vst [vmem:[#allocation18] sm:$0xff] %v3507_v10 }
 0xfd5   :  { %5329 = shalt.err (!%p5326_p12)
}
 0xfd6   :  { %3532 = dma.vmem_to_hbm [thread:$0]  %s3528_s1, 128, %s3530_s24, [#allocation19]  }
 0xfd7   :  { %v3495_v11 = vpop.f32.mrf.mxu0 }
 0xfd8   :  { %v3508_v12 = vpop.f32.mrf.mxu1 }
 0xfd9   :  { %5340 = dma.done.wait [#allocation4], 128  }
 0xfda   :  { %5341 = vsyncadd [#allocation4], 4294967168 }
 0xfdb   :  { %5342 = dma.done.wait [#allocation19], 128  }
 0xfdc   :  { %5343 = vsyncadd [#allocation19], 4294967168 }
 0xfdd   :  { %3541 = vsyncpa [#allocation3], 1 }
 0xfde   :  { %3542 = vsyncpa [#allocation6], 1 }
 0xfdf   :  { %3543 = vsyncpa [#allocation9], 1 }
 0xfe0   :  { %3544 = vsyncpa [#allocation12], 1 }
 0xfe1   :  { %3545 = vsyncpa [#allocation15], 1 }
 0xfe2   :  { %3546 = vsyncpa [#allocation4], 1 }
 0xfe3   :  { %3547 = vsyncpa [#allocation19], 1 }

</bundles_post_ra>
